<compile_context>
chip_gen: v7x
topology: tpu7x:2x2x1
jax: 0.10.0
libtpu: 0.0.40
codegen_flags: <defaults>
</compile_context>

<pallas_src>
import functools

import jax
import jax.numpy as jnp
from jax import lax
from jax.experimental import pallas as pl
from jax.experimental.pallas import tpu as pltpu

BN_EPS = 1e-5


def _round_up(x, m):
    return (x + m - 1) // m * m


def _cdiv(a, b):
    return (a + b - 1) // b


# ---------------------------------------------------------------------------
# Pallas kernels
# ---------------------------------------------------------------------------

def _conv_mm_kernel(a_ref, b_ref, o_ref, stats_ref, acc_ref):
    """Tiled matmul (bf16 in, f32 acc, bf16 out) + per-channel sum / sumsq."""
    k = pl.program_id(2)

    @pl.when(k == 0)
    def _():
        acc_ref[...] = jnp.zeros_like(acc_ref)

    acc_ref[...] += jnp.dot(a_ref[...], b_ref[...],
                            preferred_element_type=jnp.float32)

    @pl.when(k == pl.num_programs(2) - 1)
    def _():
        acc = acc_ref[...]
        o_ref[...] = acc.astype(o_ref.dtype)                     # bf16 writeback
        s = jnp.sum(acc, axis=0, keepdims=True)                  # (1, tn)
        ss = jnp.sum(acc * acc, axis=0, keepdims=True)           # (1, tn)
        stats_ref[...] = jnp.concatenate([s, ss], axis=0)[None]  # (1, 2, tn)


def pallas_conv_matmul(a_bf16, w_packed):
    """a: (M, K) bf16 patches; w_packed: (Kp, Np) bf16 pre-packed weights.

    Returns (y_pad (Mp, Np) bf16, col_sum (Np,) f32, col_sumsq (Np,) f32).
    Padded rows / lanes of y_pad are exactly zero, so downstream folding and
    the batch statistics are exact.
    """
    M, K = a_bf16.shape
    Kp, Np = w_packed.shape
    # Row tile: multiple of 16 (bf16 sublane packing), and sized so the
    # parallel grid has >=2 blocks when M allows (v7x megacore).
    tm = min(256, max(16, _round_up(_cdiv(M, 2), 16)))
    Mp = _round_up(M, tm)
    tn = 256 if Np % 256 == 0 else 128
    if Kp <= 512:
        tk = Kp
    elif Kp % 512 == 0:
        tk = 512
    elif Kp % 256 == 0:
        tk = 256
    else:
        tk = 128
    a_p = jnp.pad(a_bf16, ((0, Mp - M), (0, Kp - K)))
    gm, gn, gk = Mp // tm, Np // tn, Kp // tk
    y, stats = pl.pallas_call(
        _conv_mm_kernel,
        out_shape=(jax.ShapeDtypeStruct((Mp, Np), jnp.bfloat16),
                   jax.ShapeDtypeStruct((gm, 2, Np), jnp.float32)),
        grid=(gm, gn, gk),
        in_specs=[pl.BlockSpec((tm, tk), lambda i, j, k: (i, k)),
                  pl.BlockSpec((tk, tn), lambda i, j, k: (k, j))],
        out_specs=[pl.BlockSpec((tm, tn), lambda i, j, k: (i, j)),
                   pl.BlockSpec((1, 2, tn), lambda i, j, k: (i, 0, j))],
        scratch_shapes=[pltpu.VMEM((tm, tn), jnp.float32)],
        compiler_params=pltpu.CompilerParams(
            dimension_semantics=("parallel", "parallel", "arbitrary")),
    )(a_p, w_packed)
    col_sum = jnp.sum(stats[:, 0, :], axis=0)
    col_sumsq = jnp.sum(stats[:, 1, :], axis=0)
    return y, col_sum, col_sumsq


def _bn_act_kernel(x_ref, sc_ref, sh_ref, o_ref, *, relu):
    y = x_ref[...].astype(jnp.float32) * sc_ref[...] + sh_ref[...]
    if relu:
        y = jnp.maximum(y, 0.0)
    o_ref[...] = y.astype(o_ref.dtype)


def _bn_add_relu_kernel(x_ref, xs_ref, xh_ref, r_ref, rs_ref, rh_ref, o_ref):
    y = x_ref[...].astype(jnp.float32) * xs_ref[...] + xh_ref[...]
    y = y + (r_ref[...].astype(jnp.float32) * rs_ref[...] + rh_ref[...])
    o_ref[...] = jnp.maximum(y, 0.0).astype(o_ref.dtype)


def _row_block(mf):
    """Row block dividing mf, multiple of 16 when halved, >=2 blocks if possible."""
    bm = mf
    while bm > 512 and bm % 2 == 0 and (bm // 2) % 16 == 0:
        bm //= 2
    if bm == mf and mf % 32 == 0:
        bm = mf // 2
    return bm


def pallas_bn_act(x2d, scale_row, shift_row, relu):
    """Lane-dense BN apply (+ReLU). x2d: (Mf, W) bf16, scale/shift: (1, W) f32."""
    mf, w = x2d.shape
    bm = _row_block(mf)
    return pl.pallas_call(
        functools.partial(_bn_act_kernel, relu=relu),
        out_shape=jax.ShapeDtypeStruct((mf, w), jnp.bfloat16),
        grid=(mf // bm,),
        in_specs=[pl.BlockSpec((bm, w), lambda i: (i, 0)),
                  pl.BlockSpec((1, w), lambda i: (0, 0)),
                  pl.BlockSpec((1, w), lambda i: (0, 0))],
        out_specs=pl.BlockSpec((bm, w), lambda i: (i, 0)),
        compiler_params=pltpu.CompilerParams(
            dimension_semantics=("parallel",)),
    )(x2d, scale_row, shift_row)


def pallas_bn_add_relu(x2d, xs, xh, r2d, rs, rh):
    """relu( BN(out) + BN/identity(residual) ) on lane-dense (Mf, W) tiles."""
    mf, w = x2d.shape
    bm = _row_block(mf)
    return pl.pallas_call(
        _bn_add_relu_kernel,
        out_shape=jax.ShapeDtypeStruct((mf, w), jnp.bfloat16),
        grid=(mf // bm,),
        in_specs=[pl.BlockSpec((bm, w), lambda i: (i, 0)),
                  pl.BlockSpec((1, w), lambda i: (0, 0)),
                  pl.BlockSpec((1, w), lambda i: (0, 0)),
                  pl.BlockSpec((bm, w), lambda i: (i, 0)),
                  pl.BlockSpec((1, w), lambda i: (0, 0)),
                  pl.BlockSpec((1, w), lambda i: (0, 0))],
        out_specs=pl.BlockSpec((bm, w), lambda i: (i, 0)),
        compiler_params=pltpu.CompilerParams(
            dimension_semantics=("parallel",)),
    )(x2d, xs, xh, r2d, rs, rh)


def _head_kernel(x_ref, fcw_ref, fcb_ref, g1_ref, b1_ref, w1_ref, lb1_ref,
                 g2_ref, b2_ref, w2_ref, lb2_ref, we_ref, be_ref, o_ref,
                 *, n_rows, eps):
    """Fused fc + Expander: fc -> bn1 -> l1+ReLU -> bn2 -> l2+ReLU -> emb."""
    x = x_ref[...]
    mp = x.shape[0]
    row = lax.broadcasted_iota(jnp.int32, (mp, 1), 0)
    mask = (row < n_rows).astype(jnp.float32)      # exclude padded batch rows
    inv_n = 1.0 / n_rows

    def bn(v, g, b):
        v = v * mask
        mean = jnp.sum(v, axis=0, keepdims=True) * inv_n
        var = jnp.maximum(
            jnp.sum(v * v, axis=0, keepdims=True) * inv_n - mean * mean, 0.0)
        return (v - mean) * (g * lax.rsqrt(var + eps)) + b

    r = jnp.dot(x, fcw_ref[...], preferred_element_type=jnp.float32) + fcb_ref[...]
    r = bn(r, g1_ref[...], b1_ref[...])
    h = jnp.dot(r, w1_ref[...], preferred_element_type=jnp.float32) + lb1_ref[...]
    h = jnp.maximum(h, 0.0)
    h = bn(h, g2_ref[...], b2_ref[...])
    h = jnp.dot(h, w2_ref[...], preferred_element_type=jnp.float32) + lb2_ref[...]
    h = jnp.maximum(h, 0.0)
    o_ref[...] = jnp.dot(h, we_ref[...], preferred_element_type=jnp.float32) + be_ref[...]


def pallas_head(pooled, p, e):
    """pooled: (batch, planes*4) f32. Returns (batch, hidden_dim) f32."""
    M, C3 = pooled.shape
    R = p["fc_b"].shape[0]
    H = e["l1_b"].shape[0]
    Mp, C3p = _round_up(M, 8), _round_up(C3, 128)
    Rp, Hp = _round_up(R, 128), _round_up(H, 128)

    def pm(w, r, c):   # weight already (in, out)
        return jnp.pad(w.astype(jnp.float32),
                       ((0, r - w.shape[0]), (0, c - w.shape[1])))

    def pv(v, c):
        return jnp.pad(v.astype(jnp.float32), (0, c - v.shape[0])).reshape(1, c)

    args = [
        jnp.pad(pooled.astype(jnp.float32), ((0, Mp - M), (0, C3p - C3))),
        pm(p["fc_w"].T, C3p, Rp), pv(p["fc_b"], Rp),
        pv(e["bn1_g"], Rp), pv(e["bn1_b"], Rp),
        pm(e["l1_w"].T, Rp, Hp), pv(e["l1_b"], Hp),
        pv(e["bn2_g"], Hp), pv(e["bn2_b"], Hp),
        pm(e["l2_w"].T, Hp, Hp), pv(e["l2_b"], Hp),
        pm(e["emb_w"].T, Hp, Hp), pv(e["emb_b"], Hp),
    ]
    in_specs = [pl.BlockSpec(a.shape, lambda i: (0, 0)) for a in args]
    out = pl.pallas_call(
        functools.partial(_head_kernel, n_rows=M, eps=BN_EPS),
        out_shape=jax.ShapeDtypeStruct((Mp, Hp), jnp.float32),
        grid=(1,),
        in_specs=in_specs,
        out_specs=pl.BlockSpec((Mp, Hp), lambda i: (0, 0)),
    )(*args)
    return out[:M, :H]


# ---------------------------------------------------------------------------
# Lane folding helpers (keep elementwise kernels 128-lane dense)
# ---------------------------------------------------------------------------

def _fold_meta(m, c):
    """Return (fold_factor, folded_width, m_fold)."""
    if c < 128 and 128 % c == 0:
        f = 128 // c
        return f, 128, _round_up(m, f)
    return 1, _round_up(c, 128), _round_up(m, 8)


def _fold_padded(y_pad, m, c):
    """Lane-dense 2-D view of a channel-padded (Mp, Np) matmul output."""
    f, w, m_fold = _fold_meta(m, c)
    if f > 1:
        return y_pad[:m_fold, :c].reshape(m_fold // f, 128)
    return y_pad[:m_fold, :w]


def _fold_compact(x2d, m, c):
    """Lane-dense 2-D view of a compact (m, c) activation (zero row padding)."""
    f, w, m_fold = _fold_meta(m, c)
    if f > 1:
        return jnp.pad(x2d, ((0, m_fold - m), (0, 0))).reshape(m_fold // f, 128)
    return jnp.pad(x2d, ((0, m_fold - m), (0, w - c)))


def _fold_vec(v, c):
    f, w, _ = _fold_meta(1, c)
    if f > 1:
        return jnp.tile(v.astype(jnp.float32), f).reshape(1, 128)
    return jnp.pad(v.astype(jnp.float32), (0, w - c)).reshape(1, w)


def _unfold(y2d, m, c):
    f, w, m_fold = _fold_meta(m, c)
    if f > 1:
        return y2d.reshape(m_fold, c)[:m]
    return y2d[:m, :c]


# ---------------------------------------------------------------------------
# JAX glue: im2col, BN scale/shift from in-kernel stats
# ---------------------------------------------------------------------------

def im2col(x, kh, kw, stride, pad):
    """x: NHWC bf16 -> (N*Ho*Wo, kh*kw*C) bf16, column order (kh, kw, C)."""
    # TODO(synk): stream the kh*kw taps as an extra reduction grid axis (manual
    # DMA gather) so the patches matrix never materializes in HBM.
    N, H, W, C = x.shape
    xp = jnp.pad(x, ((0, 0), (pad, pad), (pad, pad), (0, 0)))
    Ho = (H + 2 * pad - kh) // stride + 1
    Wo = (W + 2 * pad - kw) // stride + 1
    cols = []
    for i in range(kh):
        for j in range(kw):
            cols.append(xp[:, i:i + stride * Ho:stride, j:j + stride * Wo:stride, :])
    patches = jnp.stack(cols, axis=3)            # (N, Ho, Wo, kh*kw, C)
    return patches.reshape(N * Ho * Wo, kh * kw * C), Ho, Wo


def conv2d_stats(x, w_packed, k, stride, pad):
    """x: NHWC bf16; w_packed: pre-packed (Kp, Np) bf16 weight.

    Returns (y_pad (Mp, Np) bf16, col_sum, col_sumsq, (N, Ho, Wo)).
    """
    N = x.shape[0]
    cols, Ho, Wo = im2col(x, k, k, stride, pad)
    y_pad, s, ss = pallas_conv_matmul(cols, w_packed)
    return y_pad, s, ss, (N, Ho, Wo)


def _bn_scale_shift(col_sum, col_sumsq, count, gamma, beta, eps=BN_EPS):
    """Training-mode BN (biased variance) from per-channel sum / sumsq."""
    c = gamma.shape[0]
    mean = col_sum[:c] / count
    var = jnp.maximum(col_sumsq[:c] / count - mean * mean, 0.0)
    scale = gamma * lax.rsqrt(var + eps)
    shift = beta - mean * scale
    return scale, shift


def conv_bn_act(x, w_packed, k, stride, pad, gamma, beta, relu=True):
    y_pad, s, ss, (N, Ho, Wo) = conv2d_stats(x, w_packed, k, stride, pad)
    c = gamma.shape[0]
    m = N * Ho * Wo
    scale, shift = _bn_scale_shift(s, ss, float(m), gamma, beta)
    out = pallas_bn_act(_fold_padded(y_pad, m, c),
                        _fold_vec(scale, c), _fold_vec(shift, c), relu)
    return _unfold(out, m, c).reshape(N, Ho, Wo, c)


def basic_block(x, bp):
    N, H, W, Cin = x.shape
    stride = bp["stride"]
    c = bp["bn2_g"].shape[0]
    # conv1 -> bn1 -> relu (fused)
    h = conv_bn_act(x, bp["conv1_wp"], 3, stride, 1, bp["bn1_g"], bp["bn1_b"])
    # conv2; its BN is applied inside the fused add+relu kernel
    y2, s2, ss2, (_, Ho, Wo) = conv2d_stats(h, bp["conv2_wp"], 3, 1, 1)
    m = N * Ho * Wo
    sc2, sh2 = _bn_scale_shift(s2, ss2, float(m), bp["bn2_g"], bp["bn2_b"])
    if "ds_wp" in bp:
        yi, si, ssi, _ = conv2d_stats(x, bp["ds_wp"], 1, stride, 0)
        sci, shi = _bn_scale_shift(si, ssi, float(m), bp["ds_bn_g"], bp["ds_bn_b"])
        idn = _fold_padded(yi, m, c)
    else:
        idn = _fold_compact(x.reshape(-1, Cin), m, c)
        sci = jnp.ones((c,), jnp.float32)
        shi = jnp.zeros((c,), jnp.float32)
    out = pallas_bn_add_relu(_fold_padded(y2, m, c),
                             _fold_vec(sc2, c), _fold_vec(sh2, c),
                             idn, _fold_vec(sci, c), _fold_vec(shi, c))
    return _unfold(out, m, c).reshape(N, Ho, Wo, c)


def resnet15_with_expander_forward(x_nchw, p):
    # NCHW (PyTorch) -> NHWC, bf16 activations end-to-end.
    x = jnp.transpose(x_nchw, (0, 2, 3, 1)).astype(jnp.bfloat16)
    # Stem: conv(7x7,s2,p3) -> bn -> relu (fused) -> maxpool(2,2,pad=1)
    x = conv_bn_act(x, p["conv1_wp"], 7, 2, 3, p["bn1_g"], p["bn1_b"])
    # TODO(synk): fuse the 2x2/s2/p1 maxpool into the stem BN+ReLU epilogue.
    x = lax.reduce_window(x, jnp.array(-jnp.inf, x.dtype), lax.max,
                          (1, 2, 2, 1), (1, 2, 2, 1),
                          ((0, 0), (1, 1), (1, 1), (0, 0)))
    for layer_name in ("layer1", "layer2", "layer3"):
        for bp in p[layer_name]:
            x = basic_block(x, bp)
    pooled = jnp.max(x, axis=(1, 2)).astype(jnp.float32)  # AdaptiveMaxPool2d + flatten
    # Fused fc + Expander head in one Pallas kernel.
    return pallas_head(pooled, p, p["expander"])


# ---------------------------------------------------------------------------
# Parameters: PyTorch-shaped init + one-time packing for the kernels
# ---------------------------------------------------------------------------

def init_params(key, in_channels, inplanes, planes, layers, repr_dim, hidden_dim):
    keys = iter(jax.random.split(key, 256))

    def conv_w(cout, cin, k):
        return 0.1 * jax.random.normal(next(keys), (cout, cin, k, k), jnp.float32)

    def lin(cout, cin):
        w = 0.1 * jax.random.normal(next(keys), (cout, cin), jnp.float32)
        b = 0.1 * jax.random.normal(next(keys), (cout,), jnp.float32)
        return w, b

    def bn(c):  # PyTorch default BN init: gamma=1, beta=0
        return jnp.ones((c,), jnp.float32), jnp.zeros((c,), jnp.float32)

    p = {}
    p["conv1_w"] = conv_w(inplanes, in_channels, 7)
    p["bn1_g"], p["bn1_b"] = bn(inplanes)

    def make_layer(cur, planes_l, blocks, stride):
        blk_params = []
        strides = [stride] + [1] * (blocks - 1)
        for bi, s in enumerate(strides):
            bp = {"conv1_w": conv_w(planes_l, cur, 3),
                  "conv2_w": conv_w(planes_l, planes_l, 3),
                  "stride": s}
            bp["bn1_g"], bp["bn1_b"] = bn(planes_l)
            bp["bn2_g"], bp["bn2_b"] = bn(planes_l)
            if bi == 0 and (s != 1 or cur != planes_l):
                bp["ds_w"] = conv_w(planes_l, cur, 1)
                bp["ds_bn_g"], bp["ds_bn_b"] = bn(planes_l)
            blk_params.append(bp)
            cur = planes_l
        return blk_params, cur

    cur = inplanes
    p["layer1"], cur = make_layer(cur, planes, layers[0], 1)
    p["layer2"], cur = make_layer(cur, planes * 2, layers[1], 2)
    p["layer3"], cur = make_layer(cur, planes * 4, layers[2], 2)
    p["fc_w"], p["fc_b"] = lin(repr_dim, planes * 4)

    e = {}
    e["bn1_g"], e["bn1_b"] = bn(repr_dim)
    e["l1_w"], e["l1_b"] = lin(hidden_dim, repr_dim)
    e["bn2_g"], e["bn2_b"] = bn(hidden_dim)
    e["l2_w"], e["l2_b"] = lin(hidden_dim, hidden_dim)
    e["emb_w"], e["emb_b"] = lin(hidden_dim, hidden_dim)
    p["expander"] = e
    return p


def _pack_conv(w_oihw):
    """PyTorch (Cout,Cin,kh,kw) -> (Kp, Np) bf16, padded once for the MXU."""
    cout, cin, kh, kw = w_oihw.shape
    k = kh * kw * cin
    wm = jnp.transpose(w_oihw, (2, 3, 1, 0)).reshape(k, cout)
    kp, np_ = _round_up(k, 128), _round_up(cout, 128)
    return jnp.pad(wm, ((0, kp - k), (0, np_ - cout))).astype(jnp.bfloat16)


def pack_params(p):
    """One-time weight packing (transpose/pad/cast outside the per-layer path)."""
    q = {"conv1_wp": _pack_conv(p["conv1_w"]),
         "bn1_g": p["bn1_g"], "bn1_b": p["bn1_b"],
         "fc_w": p["fc_w"], "fc_b": p["fc_b"],
         "expander": p["expander"]}
    for ln in ("layer1", "layer2", "layer3"):
        blocks = []
        for bp in p[ln]:
            nb = {"conv1_wp": _pack_conv(bp["conv1_w"]),
                  "conv2_wp": _pack_conv(bp["conv2_w"]),
                  "bn1_g": bp["bn1_g"], "bn1_b": bp["bn1_b"],
                  "bn2_g": bp["bn2_g"], "bn2_b": bp["bn2_b"],
                  "stride": bp["stride"]}
            if "ds_w" in bp:
                nb["ds_wp"] = _pack_conv(bp["ds_w"])
                nb["ds_bn_g"], nb["ds_bn_b"] = bp["ds_bn_g"], bp["ds_bn_b"]
            blocks.append(nb)
        q[ln] = blocks
    return q


if __name__ == "__main__":
    key = jax.random.PRNGKey(0)
    k_param, k_x = jax.random.split(key)

    # Small, shape-consistent configuration of ResNet15WithExpander
    IN_CH, INPLANES, PLANES = 3, 8, 8
    LAYERS = (2, 2, 3)             # module default for ResNet15WithExpander
    REPR_DIM, HIDDEN_DIM = 16, 32

    raw_params = init_params(k_param, IN_CH, INPLANES, PLANES, LAYERS,
                             REPR_DIM, HIDDEN_DIM)
    params = pack_params(raw_params)           # one-time weight packing
    x = jax.random.normal(k_x, (2, IN_CH, 16, 16), jnp.float32)  # NCHW input

    fwd = jax.jit(lambda xx: resnet15_with_expander_forward(xx, params))
    out = fwd(x)
    jax.block_until_ready(out)
    assert out.shape == (2, HIDDEN_DIM), out.shape
    assert jnp.all(jnp.isfinite(out))
    print("KERNEL_OK")
</pallas_src>

<mosaic_0001>
module attributes {stable_mosaic.version = 11 : i64} {
  func.func @_conv_mm_kernel(%arg0: i32, %arg1: i32, %arg2: i32, %arg3: memref<64x256xbf16, #tpu.memory_space<vmem>>, %arg4: memref<256x128xbf16, #tpu.memory_space<vmem>>, %arg5: memref<64x128xbf16, #tpu.memory_space<vmem>>, %arg6: memref<1x2x128xf32, #tpu.memory_space<vmem>>, %arg7: memref<64x128xf32, #tpu.memory_space<vmem>>) attributes {dimension_semantics = [#tpu.dimension_semantics<parallel>, #tpu.dimension_semantics<parallel>, #tpu.dimension_semantics<arbitrary>], iteration_bounds = array<i64: 2, 1, 1>, scalar_prefetch = 0 : i64, scratch_operands = 1 : i64, tpu.core_type = #tpu.core_type<tc>, window_params = [{transform_indices = @transform_0, window_bounds = array<i64: 64, 256>}, {transform_indices = @transform_1, window_bounds = array<i64: 256, 128>}, {transform_indices = @transform_2, window_bounds = array<i64: 64, 128>}, {transform_indices = @transform_3, window_bounds = array<i64: 1, 2, 128>}]} {
    %c0_i32 = arith.constant 0 : i32
    %0 = arith.cmpi eq, %arg2, %c0_i32 : i32
    %1 = arith.extui %0 : i1 to i32
    %c0_i32_0 = arith.constant 0 : i32
    %2 = arith.cmpi ne, %1, %c0_i32_0 : i32
    scf.if %2 {
      %cst_10 = arith.constant 0.000000e+00 : f32
      %12 = vector.broadcast %cst_10 : f32 to vector<64x128xf32>
      %c0_11 = arith.constant 0 : index
      %c0_12 = arith.constant 0 : index
      %13 = vector.load %arg7[%c0_11, %c0_12] : memref<64x128xf32, #tpu.memory_space<vmem>>, vector<64x128xf32>
      tpu.vector_store %arg7[%c0_11, %c0_12], %12 {strides = array<i32>} : memref<64x128xf32, #tpu.memory_space<vmem>>, vector<64x128xf32>,
    } else {
    }
    %c0 = arith.constant 0 : index
    %c0_1 = arith.constant 0 : index
    %3 = vector.load %arg7[%c0, %c0_1] : memref<64x128xf32, #tpu.memory_space<vmem>>, vector<64x128xf32>
    %c0_2 = arith.constant 0 : index
    %c0_3 = arith.constant 0 : index
    %4 = vector.load %arg3[%c0_2, %c0_3] : memref<64x256xbf16, #tpu.memory_space<vmem>>, vector<64x256xbf16>
    %c0_4 = arith.constant 0 : index
    %c0_5 = arith.constant 0 : index
    %5 = vector.load %arg4[%c0_4, %c0_5] : memref<256x128xbf16, #tpu.memory_space<vmem>>, vector<256x128xbf16>
    %cst = arith.constant dense<0.000000e+00> : vector<64x128xf32>
    %6 = tpu.matmul %4, %5, %cst {dimension_numbers = #tpu.dot_dimension_numbers<[1], [0], [0], [1], [0, 0, 1, 1], [], []>} : vector<64x256xbf16>, vector<256x128xbf16>, vector<64x128xf32> -> vector<64x128xf32>
    %7 = arith.addf %3, %6 : vector<64x128xf32>
    %c0_6 = arith.constant 0 : index
    %c0_7 = arith.constant 0 : index
    %8 = vector.load %arg7[%c0_6, %c0_7] : memref<64x128xf32, #tpu.memory_space<vmem>>, vector<64x128xf32>
    tpu.vector_store %arg7[%c0_6, %c0_7], %7 {strides = array<i32>} : memref<64x128xf32, #tpu.memory_space<vmem>>, vector<64x128xf32>,
    %c0_i32_8 = arith.constant 0 : i32
    %9 = arith.cmpi eq, %arg2, %c0_i32_8 : i32
    %10 = arith.extui %9 : i1 to i32
    %c0_i32_9 = arith.constant 0 : i32
    %11 = arith.cmpi ne, %10, %c0_i32_9 : i32
    scf.if %11 {
      %c0_10 = arith.constant 0 : index
      %c0_11 = arith.constant 0 : index
      %12 = vector.load %arg7[%c0_10, %c0_11] : memref<64x128xf32, #tpu.memory_space<vmem>>, vector<64x128xf32>
      %13 = arith.truncf %12 : vector<64x128xf32> to vector<64x128xbf16>
      %c0_12 = arith.constant 0 : index
      %c0_13 = arith.constant 0 : index
      %14 = vector.load %arg5[%c0_12, %c0_13] : memref<64x128xbf16, #tpu.memory_space<vmem>>, vector<64x128xbf16>
      tpu.vector_store %arg5[%c0_12, %c0_13], %13 {strides = array<i32>} : memref<64x128xbf16, #tpu.memory_space<vmem>>, vector<64x128xbf16>,
      %cst_14 = arith.constant dense<0.000000e+00> : vector<128xf32>
      %15 = vector.multi_reduction <add>, %12, %cst_14 [0] : vector<64x128xf32> to vector<128xf32>
      %16 = vector.shape_cast %15 : vector<128xf32> to vector<1x128xf32>
      %17 = arith.mulf %12, %12 : vector<64x128xf32>
      %cst_15 = arith.constant dense<0.000000e+00> : vector<128xf32>
      %18 = vector.multi_reduction <add>, %17, %cst_15 [0] : vector<64x128xf32> to vector<128xf32>
      %19 = vector.shape_cast %18 : vector<128xf32> to vector<1x128xf32>
      %20 = tpu.concatenate %16, %19 in 0 : vector<1x128xf32>, vector<1x128xf32> -> vector<2x128xf32>
      %21 = vector.shape_cast %20 : vector<2x128xf32> to vector<1x2x128xf32>
      %c0_16 = arith.constant 0 : index
      %c0_17 = arith.constant 0 : index
      %c0_18 = arith.constant 0 : index
      %22 = vector.load %arg6[%c0_16, %c0_17, %c0_18] : memref<1x2x128xf32, #tpu.memory_space<vmem>>, vector<1x2x128xf32>
      tpu.vector_store %arg6[%c0_16, %c0_17, %c0_18], %21 {strides = array<i32>} : memref<1x2x128xf32, #tpu.memory_space<vmem>>, vector<1x2x128xf32>,
    } else {
    }
    return
  }
  func.func @transform_0(%arg0: i32, %arg1: i32, %arg2: i32) -> (i32, i32) {
    %c0_i32 = arith.constant 0 : i32
    return %arg0, %arg2 : i32, i32
  }
  func.func @transform_1(%arg0: i32, %arg1: i32, %arg2: i32) -> (i32, i32) {
    %c0_i32 = arith.constant 0 : i32
    return %arg2, %arg1 : i32, i32
  }
  func.func @transform_2(%arg0: i32, %arg1: i32, %arg2: i32) -> (i32, i32) {
    %c0_i32 = arith.constant 0 : i32
    return %arg0, %arg1 : i32, i32
  }
  func.func @transform_3(%arg0: i32, %arg1: i32, %arg2: i32) -> (i32, i32, i32) {
    %c0_i32 = arith.constant 0 : i32
    %c0_i32_0 = arith.constant 0 : i32
    return %arg0, %c0_i32, %arg1 : i32, i32, i32
  }
}

module attributes {stable_mosaic.version = 11 : i64} {
  func.func @_bn_act_kernel(%arg0: i32, %arg1: memref<8x128xbf16, #tpu.memory_space<vmem>>, %arg2: memref<1x128xf32, #tpu.memory_space<vmem>>, %arg3: memref<1x128xf32, #tpu.memory_space<vmem>>, %arg4: memref<8x128xbf16, #tpu.memory_space<vmem>>) attributes {dimension_semantics = [#tpu.dimension_semantics<parallel>], iteration_bounds = array<i64: 1>, scalar_prefetch = 0 : i64, scratch_operands = 0 : i64, tpu.core_type = #tpu.core_type<tc>, window_params = [{transform_indices = @transform_0, window_bounds = array<i64: 8, 128>}, {pipeline_mode = #tpu.pipeline_mode<synchronous>, transform_indices = @transform_1, window_bounds = array<i64: 1, 128>}, {pipeline_mode = #tpu.pipeline_mode<synchronous>, transform_indices = @transform_2, window_bounds = array<i64: 1, 128>}, {transform_indices = @transform_3, window_bounds = array<i64: 8, 128>}]} {
    %c0 = arith.constant 0 : index
    %c0_0 = arith.constant 0 : index
    %0 = vector.load %arg1[%c0, %c0_0] : memref<8x128xbf16, #tpu.memory_space<vmem>>, vector<8x128xbf16>
    %1 = arith.extf %0 : vector<8x128xbf16> to vector<8x128xf32>
    %c0_1 = arith.constant 0 : index
    %c0_2 = arith.constant 0 : index
    %2 = vector.load %arg2[%c0_1, %c0_2] : memref<1x128xf32, #tpu.memory_space<vmem>>, vector<1x128xf32>
    %3 = vector.broadcast %2 : vector<1x128xf32> to vector<8x128xf32>
    %4 = arith.mulf %1, %3 : vector<8x128xf32>
    %c0_3 = arith.constant 0 : index
    %c0_4 = arith.constant 0 : index
    %5 = vector.load %arg3[%c0_3, %c0_4] : memref<1x128xf32, #tpu.memory_space<vmem>>, vector<1x128xf32>
    %6 = vector.broadcast %5 : vector<1x128xf32> to vector<8x128xf32>
    %7 = arith.addf %4, %6 : vector<8x128xf32>
    %cst = arith.constant 0.000000e+00 : f32
    %8 = vector.broadcast %cst : f32 to vector<8x128xf32>
    %9 = arith.maximumf %7, %8 : vector<8x128xf32>
    %10 = arith.truncf %9 : vector<8x128xf32> to vector<8x128xbf16>
    %c0_5 = arith.constant 0 : index
    %c0_6 = arith.constant 0 : index
    %11 = vector.load %arg4[%c0_5, %c0_6] : memref<8x128xbf16, #tpu.memory_space<vmem>>, vector<8x128xbf16>
    tpu.vector_store %arg4[%c0_5, %c0_6], %10 {strides = array<i32>} : memref<8x128xbf16, #tpu.memory_space<vmem>>, vector<8x128xbf16>,
    return
  }
  func.func @transform_0(%arg0: i32) -> (i32, i32) {
    %c0_i32 = arith.constant 0 : i32
    %c0_i32_0 = arith.constant 0 : i32
    return %arg0, %c0_i32 : i32, i32
  }
  func.func @transform_1(%arg0: i32) -> (i32, i32) {
    %c0_i32 = arith.constant 0 : i32
    %c0_i32_0 = arith.constant 0 : i32
    %c0_i32_1 = arith.constant 0 : i32
    return %c0_i32, %c0_i32_0 : i32, i32
  }
  func.func @transform_2(%arg0: i32) -> (i32, i32) {
    %c0_i32 = arith.constant 0 : i32
    %c0_i32_0 = arith.constant 0 : i32
    %c0_i32_1 = arith.constant 0 : i32
    return %c0_i32, %c0_i32_0 : i32, i32
  }
  func.func @transform_3(%arg0: i32) -> (i32, i32) {
    %c0_i32 = arith.constant 0 : i32
    %c0_i32_0 = arith.constant 0 : i32
    return %arg0, %c0_i32 : i32, i32
  }
}

module attributes {stable_mosaic.version = 11 : i64} {
  func.func @_conv_mm_kernel(%arg0: i32, %arg1: i32, %arg2: i32, %arg3: memref<32x128xbf16, #tpu.memory_space<vmem>>, %arg4: memref<128x128xbf16, #tpu.memory_space<vmem>>, %arg5: memref<32x128xbf16, #tpu.memory_space<vmem>>, %arg6: memref<1x2x128xf32, #tpu.memory_space<vmem>>, %arg7: memref<32x128xf32, #tpu.memory_space<vmem>>) attributes {dimension_semantics = [#tpu.dimension_semantics<parallel>, #tpu.dimension_semantics<parallel>, #tpu.dimension_semantics<arbitrary>], iteration_bounds = array<i64: 2, 1, 1>, scalar_prefetch = 0 : i64, scratch_operands = 1 : i64, tpu.core_type = #tpu.core_type<tc>, window_params = [{transform_indices = @transform_0, window_bounds = array<i64: 32, 128>}, {transform_indices = @transform_1, window_bounds = array<i64: 128, 128>}, {transform_indices = @transform_2, window_bounds = array<i64: 32, 128>}, {transform_indices = @transform_3, window_bounds = array<i64: 1, 2, 128>}]} {
    %c0_i32 = arith.constant 0 : i32
    %0 = arith.cmpi eq, %arg2, %c0_i32 : i32
    %1 = arith.extui %0 : i1 to i32
    %c0_i32_0 = arith.constant 0 : i32
    %2 = arith.cmpi ne, %1, %c0_i32_0 : i32
    scf.if %2 {
      %cst_10 = arith.constant 0.000000e+00 : f32
      %12 = vector.broadcast %cst_10 : f32 to vector<32x128xf32>
      %c0_11 = arith.constant 0 : index
      %c0_12 = arith.constant 0 : index
      %13 = vector.load %arg7[%c0_11, %c0_12] : memref<32x128xf32, #tpu.memory_space<vmem>>, vector<32x128xf32>
      tpu.vector_store %arg7[%c0_11, %c0_12], %12 {strides = array<i32>} : memref<32x128xf32, #tpu.memory_space<vmem>>, vector<32x128xf32>,
    } else {
    }
    %c0 = arith.constant 0 : index
    %c0_1 = arith.constant 0 : index
    %3 = vector.load %arg7[%c0, %c0_1] : memref<32x128xf32, #tpu.memory_space<vmem>>, vector<32x128xf32>
    %c0_2 = arith.constant 0 : index
    %c0_3 = arith.constant 0 : index
    %4 = vector.load %arg3[%c0_2, %c0_3] : memref<32x128xbf16, #tpu.memory_space<vmem>>, vector<32x128xbf16>
    %c0_4 = arith.constant 0 : index
    %c0_5 = arith.constant 0 : index
    %5 = vector.load %arg4[%c0_4, %c0_5] : memref<128x128xbf16, #tpu.memory_space<vmem>>, vector<128x128xbf16>
    %cst = arith.constant dense<0.000000e+00> : vector<32x128xf32>
    %6 = tpu.matmul %4, %5, %cst {dimension_numbers = #tpu.dot_dimension_numbers<[1], [0], [0], [1], [0, 0, 1, 1], [], []>} : vector<32x128xbf16>, vector<128x128xbf16>, vector<32x128xf32> -> vector<32x128xf32>
    %7 = arith.addf %3, %6 : vector<32x128xf32>
    %c0_6 = arith.constant 0 : index
    %c0_7 = arith.constant 0 : index
    %8 = vector.load %arg7[%c0_6, %c0_7] : memref<32x128xf32, #tpu.memory_space<vmem>>, vector<32x128xf32>
    tpu.vector_store %arg7[%c0_6, %c0_7], %7 {strides = array<i32>} : memref<32x128xf32, #tpu.memory_space<vmem>>, vector<32x128xf32>,
    %c0_i32_8 = arith.constant 0 : i32
    %9 = arith.cmpi eq, %arg2, %c0_i32_8 : i32
    %10 = arith.extui %9 : i1 to i32
    %c0_i32_9 = arith.constant 0 : i32
    %11 = arith.cmpi ne, %10, %c0_i32_9 : i32
    scf.if %11 {
      %c0_10 = arith.constant 0 : index
      %c0_11 = arith.constant 0 : index
      %12 = vector.load %arg7[%c0_10, %c0_11] : memref<32x128xf32, #tpu.memory_space<vmem>>, vector<32x128xf32>
      %13 = arith.truncf %12 : vector<32x128xf32> to vector<32x128xbf16>
      %c0_12 = arith.constant 0 : index
      %c0_13 = arith.constant 0 : index
      %14 = vector.load %arg5[%c0_12, %c0_13] : memref<32x128xbf16, #tpu.memory_space<vmem>>, vector<32x128xbf16>
      tpu.vector_store %arg5[%c0_12, %c0_13], %13 {strides = array<i32>} : memref<32x128xbf16, #tpu.memory_space<vmem>>, vector<32x128xbf16>,
      %cst_14 = arith.constant dense<0.000000e+00> : vector<128xf32>
      %15 = vector.multi_reduction <add>, %12, %cst_14 [0] : vector<32x128xf32> to vector<128xf32>
      %16 = vector.shape_cast %15 : vector<128xf32> to vector<1x128xf32>
      %17 = arith.mulf %12, %12 : vector<32x128xf32>
      %cst_15 = arith.constant dense<0.000000e+00> : vector<128xf32>
      %18 = vector.multi_reduction <add>, %17, %cst_15 [0] : vector<32x128xf32> to vector<128xf32>
      %19 = vector.shape_cast %18 : vector<128xf32> to vector<1x128xf32>
      %20 = tpu.concatenate %16, %19 in 0 : vector<1x128xf32>, vector<1x128xf32> -> vector<2x128xf32>
      %21 = vector.shape_cast %20 : vector<2x128xf32> to vector<1x2x128xf32>
      %c0_16 = arith.constant 0 : index
      %c0_17 = arith.constant 0 : index
      %c0_18 = arith.constant 0 : index
      %22 = vector.load %arg6[%c0_16, %c0_17, %c0_18] : memref<1x2x128xf32, #tpu.memory_space<vmem>>, vector<1x2x128xf32>
      tpu.vector_store %arg6[%c0_16, %c0_17, %c0_18], %21 {strides = array<i32>} : memref<1x2x128xf32, #tpu.memory_space<vmem>>, vector<1x2x128xf32>,
    } else {
    }
    return
  }
  func.func @transform_0(%arg0: i32, %arg1: i32, %arg2: i32) -> (i32, i32) {
    %c0_i32 = arith.constant 0 : i32
    return %arg0, %arg2 : i32, i32
  }
  func.func @transform_1(%arg0: i32, %arg1: i32, %arg2: i32) -> (i32, i32) {
    %c0_i32 = arith.constant 0 : i32
    return %arg2, %arg1 : i32, i32
  }
  func.func @transform_2(%arg0: i32, %arg1: i32, %arg2: i32) -> (i32, i32) {
    %c0_i32 = arith.constant 0 : i32
    return %arg0, %arg1 : i32, i32
  }
  func.func @transform_3(%arg0: i32, %arg1: i32, %arg2: i32) -> (i32, i32, i32) {
    %c0_i32 = arith.constant 0 : i32
    %c0_i32_0 = arith.constant 0 : i32
    return %arg0, %c0_i32, %arg1 : i32, i32, i32
  }
}

module attributes {stable_mosaic.version = 11 : i64} {
  func.func @_bn_act_kernel(%arg0: i32, %arg1: memref<4x128xbf16, #tpu.memory_space<vmem>>, %arg2: memref<1x128xf32, #tpu.memory_space<vmem>>, %arg3: memref<1x128xf32, #tpu.memory_space<vmem>>, %arg4: memref<4x128xbf16, #tpu.memory_space<vmem>>) attributes {dimension_semantics = [#tpu.dimension_semantics<parallel>], iteration_bounds = array<i64: 1>, scalar_prefetch = 0 : i64, scratch_operands = 0 : i64, tpu.core_type = #tpu.core_type<tc>, window_params = [{transform_indices = @transform_0, window_bounds = array<i64: 4, 128>}, {pipeline_mode = #tpu.pipeline_mode<synchronous>, transform_indices = @transform_1, window_bounds = array<i64: 1, 128>}, {pipeline_mode = #tpu.pipeline_mode<synchronous>, transform_indices = @transform_2, window_bounds = array<i64: 1, 128>}, {transform_indices = @transform_3, window_bounds = array<i64: 4, 128>}]} {
    %c0 = arith.constant 0 : index
    %c0_0 = arith.constant 0 : index
    %0 = vector.load %arg1[%c0, %c0_0] : memref<4x128xbf16, #tpu.memory_space<vmem>>, vector<4x128xbf16>
    %1 = arith.extf %0 : vector<4x128xbf16> to vector<4x128xf32>
    %c0_1 = arith.constant 0 : index
    %c0_2 = arith.constant 0 : index
    %2 = vector.load %arg2[%c0_1, %c0_2] : memref<1x128xf32, #tpu.memory_space<vmem>>, vector<1x128xf32>
    %3 = vector.broadcast %2 : vector<1x128xf32> to vector<4x128xf32>
    %4 = arith.mulf %1, %3 : vector<4x128xf32>
    %c0_3 = arith.constant 0 : index
    %c0_4 = arith.constant 0 : index
    %5 = vector.load %arg3[%c0_3, %c0_4] : memref<1x128xf32, #tpu.memory_space<vmem>>, vector<1x128xf32>
    %6 = vector.broadcast %5 : vector<1x128xf32> to vector<4x128xf32>
    %7 = arith.addf %4, %6 : vector<4x128xf32>
    %cst = arith.constant 0.000000e+00 : f32
    %8 = vector.broadcast %cst : f32 to vector<4x128xf32>
    %9 = arith.maximumf %7, %8 : vector<4x128xf32>
    %10 = arith.truncf %9 : vector<4x128xf32> to vector<4x128xbf16>
    %c0_5 = arith.constant 0 : index
    %c0_6 = arith.constant 0 : index
    %11 = vector.load %arg4[%c0_5, %c0_6] : memref<4x128xbf16, #tpu.memory_space<vmem>>, vector<4x128xbf16>
    tpu.vector_store %arg4[%c0_5, %c0_6], %10 {strides = array<i32>} : memref<4x128xbf16, #tpu.memory_space<vmem>>, vector<4x128xbf16>,
    return
  }
  func.func @transform_0(%arg0: i32) -> (i32, i32) {
    %c0_i32 = arith.constant 0 : i32
    %c0_i32_0 = arith.constant 0 : i32
    return %arg0, %c0_i32 : i32, i32
  }
  func.func @transform_1(%arg0: i32) -> (i32, i32) {
    %c0_i32 = arith.constant 0 : i32
    %c0_i32_0 = arith.constant 0 : i32
    %c0_i32_1 = arith.constant 0 : i32
    return %c0_i32, %c0_i32_0 : i32, i32
  }
  func.func @transform_2(%arg0: i32) -> (i32, i32) {
    %c0_i32 = arith.constant 0 : i32
    %c0_i32_0 = arith.constant 0 : i32
    %c0_i32_1 = arith.constant 0 : i32
    return %c0_i32, %c0_i32_0 : i32, i32
  }
  func.func @transform_3(%arg0: i32) -> (i32, i32) {
    %c0_i32 = arith.constant 0 : i32
    %c0_i32_0 = arith.constant 0 : i32
    return %arg0, %c0_i32 : i32, i32
  }
}

module attributes {stable_mosaic.version = 11 : i64} {
  func.func @_bn_add_relu_kernel(%arg0: i32, %arg1: memref<4x128xbf16, #tpu.memory_space<vmem>>, %arg2: memref<1x128xf32, #tpu.memory_space<vmem>>, %arg3: memref<1x128xf32, #tpu.memory_space<vmem>>, %arg4: memref<4x128xbf16, #tpu.memory_space<vmem>>, %arg5: memref<1x128xf32, #tpu.memory_space<vmem>>, %arg6: memref<1x128xf32, #tpu.memory_space<vmem>>, %arg7: memref<4x128xbf16, #tpu.memory_space<vmem>>) attributes {dimension_semantics = [#tpu.dimension_semantics<parallel>], iteration_bounds = array<i64: 1>, scalar_prefetch = 0 : i64, scratch_operands = 0 : i64, tpu.core_type = #tpu.core_type<tc>, window_params = [{transform_indices = @transform_0, window_bounds = array<i64: 4, 128>}, {pipeline_mode = #tpu.pipeline_mode<synchronous>, transform_indices = @transform_1, window_bounds = array<i64: 1, 128>}, {pipeline_mode = #tpu.pipeline_mode<synchronous>, transform_indices = @transform_2, window_bounds = array<i64: 1, 128>}, {transform_indices = @transform_3, window_bounds = array<i64: 4, 128>}, {pipeline_mode = #tpu.pipeline_mode<synchronous>, transform_indices = @transform_4, window_bounds = array<i64: 1, 128>}, {pipeline_mode = #tpu.pipeline_mode<synchronous>, transform_indices = @transform_5, window_bounds = array<i64: 1, 128>}, {transform_indices = @transform_6, window_bounds = array<i64: 4, 128>}]} {
    %c0 = arith.constant 0 : index
    %c0_0 = arith.constant 0 : index
    %0 = vector.load %arg1[%c0, %c0_0] : memref<4x128xbf16, #tpu.memory_space<vmem>>, vector<4x128xbf16>
    %1 = arith.extf %0 : vector<4x128xbf16> to vector<4x128xf32>
    %c0_1 = arith.constant 0 : index
    %c0_2 = arith.constant 0 : index
    %2 = vector.load %arg2[%c0_1, %c0_2] : memref<1x128xf32, #tpu.memory_space<vmem>>, vector<1x128xf32>
    %3 = vector.broadcast %2 : vector<1x128xf32> to vector<4x128xf32>
    %4 = arith.mulf %1, %3 : vector<4x128xf32>
    %c0_3 = arith.constant 0 : index
    %c0_4 = arith.constant 0 : index
    %5 = vector.load %arg3[%c0_3, %c0_4] : memref<1x128xf32, #tpu.memory_space<vmem>>, vector<1x128xf32>
    %6 = vector.broadcast %5 : vector<1x128xf32> to vector<4x128xf32>
    %7 = arith.addf %4, %6 : vector<4x128xf32>
    %c0_5 = arith.constant 0 : index
    %c0_6 = arith.constant 0 : index
    %8 = vector.load %arg4[%c0_5, %c0_6] : memref<4x128xbf16, #tpu.memory_space<vmem>>, vector<4x128xbf16>
    %9 = arith.extf %8 : vector<4x128xbf16> to vector<4x128xf32>
    %c0_7 = arith.constant 0 : index
    %c0_8 = arith.constant 0 : index
    %10 = vector.load %arg5[%c0_7, %c0_8] : memref<1x128xf32, #tpu.memory_space<vmem>>, vector<1x128xf32>
    %11 = vector.broadcast %10 : vector<1x128xf32> to vector<4x128xf32>
    %12 = arith.mulf %9, %11 : vector<4x128xf32>
    %c0_9 = arith.constant 0 : index
    %c0_10 = arith.constant 0 : index
    %13 = vector.load %arg6[%c0_9, %c0_10] : memref<1x128xf32, #tpu.memory_space<vmem>>, vector<1x128xf32>
    %14 = vector.broadcast %13 : vector<1x128xf32> to vector<4x128xf32>
    %15 = arith.addf %12, %14 : vector<4x128xf32>
    %16 = arith.addf %7, %15 : vector<4x128xf32>
    %cst = arith.constant 0.000000e+00 : f32
    %17 = vector.broadcast %cst : f32 to vector<4x128xf32>
    %18 = arith.maximumf %16, %17 : vector<4x128xf32>
    %19 = arith.truncf %18 : vector<4x128xf32> to vector<4x128xbf16>
    %c0_11 = arith.constant 0 : index
    %c0_12 = arith.constant 0 : index
    %20 = vector.load %arg7[%c0_11, %c0_12] : memref<4x128xbf16, #tpu.memory_space<vmem>>, vector<4x128xbf16>
    tpu.vector_store %arg7[%c0_11, %c0_12], %19 {strides = array<i32>} : memref<4x128xbf16, #tpu.memory_space<vmem>>, vector<4x128xbf16>,
    return
  }
  func.func @transform_0(%arg0: i32) -> (i32, i32) {
    %c0_i32 = arith.constant 0 : i32
    %c0_i32_0 = arith.constant 0 : i32
    return %arg0, %c0_i32 : i32, i32
  }
  func.func @transform_1(%arg0: i32) -> (i32, i32) {
    %c0_i32 = arith.constant 0 : i32
    %c0_i32_0 = arith.constant 0 : i32
    %c0_i32_1 = arith.constant 0 : i32
    return %c0_i32, %c0_i32_0 : i32, i32
  }
  func.func @transform_2(%arg0: i32) -> (i32, i32) {
    %c0_i32 = arith.constant 0 : i32
    %c0_i32_0 = arith.constant 0 : i32
    %c0_i32_1 = arith.constant 0 : i32
    return %c0_i32, %c0_i32_0 : i32, i32
  }
  func.func @transform_3(%arg0: i32) -> (i32, i32) {
    %c0_i32 = arith.constant 0 : i32
    %c0_i32_0 = arith.constant 0 : i32
    return %arg0, %c0_i32 : i32, i32
  }
  func.func @transform_4(%arg0: i32) -> (i32, i32) {
    %c0_i32 = arith.constant 0 : i32
    %c0_i32_0 = arith.constant 0 : i32
    %c0_i32_1 = arith.constant 0 : i32
    return %c0_i32, %c0_i32_0 : i32, i32
  }
  func.func @transform_5(%arg0: i32) -> (i32, i32) {
    %c0_i32 = arith.constant 0 : i32
    %c0_i32_0 = arith.constant 0 : i32
    %c0_i32_1 = arith.constant 0 : i32
    return %c0_i32, %c0_i32_0 : i32, i32
  }
  func.func @transform_6(%arg0: i32) -> (i32, i32) {
    %c0_i32 = arith.constant 0 : i32
    %c0_i32_0 = arith.constant 0 : i32
    return %arg0, %c0_i32 : i32, i32
  }
}

module attributes {stable_mosaic.version = 11 : i64} {
  func.func @_conv_mm_kernel(%arg0: i32, %arg1: i32, %arg2: i32, %arg3: memref<16x128xbf16, #tpu.memory_space<vmem>>, %arg4: memref<128x128xbf16, #tpu.memory_space<vmem>>, %arg5: memref<16x128xbf16, #tpu.memory_space<vmem>>, %arg6: memref<1x2x128xf32, #tpu.memory_space<vmem>>, %arg7: memref<16x128xf32, #tpu.memory_space<vmem>>) attributes {dimension_semantics = [#tpu.dimension_semantics<parallel>, #tpu.dimension_semantics<parallel>, #tpu.dimension_semantics<arbitrary>], iteration_bounds = array<i64: 2, 1, 1>, scalar_prefetch = 0 : i64, scratch_operands = 1 : i64, tpu.core_type = #tpu.core_type<tc>, window_params = [{transform_indices = @transform_0, window_bounds = array<i64: 16, 128>}, {transform_indices = @transform_1, window_bounds = array<i64: 128, 128>}, {transform_indices = @transform_2, window_bounds = array<i64: 16, 128>}, {transform_indices = @transform_3, window_bounds = array<i64: 1, 2, 128>}]} {
    %c0_i32 = arith.constant 0 : i32
    %0 = arith.cmpi eq, %arg2, %c0_i32 : i32
    %1 = arith.extui %0 : i1 to i32
    %c0_i32_0 = arith.constant 0 : i32
    %2 = arith.cmpi ne, %1, %c0_i32_0 : i32
    scf.if %2 {
      %cst_10 = arith.constant 0.000000e+00 : f32
      %12 = vector.broadcast %cst_10 : f32 to vector<16x128xf32>
      %c0_11 = arith.constant 0 : index
      %c0_12 = arith.constant 0 : index
      %13 = vector.load %arg7[%c0_11, %c0_12] : memref<16x128xf32, #tpu.memory_space<vmem>>, vector<16x128xf32>
      tpu.vector_store %arg7[%c0_11, %c0_12], %12 {strides = array<i32>} : memref<16x128xf32, #tpu.memory_space<vmem>>, vector<16x128xf32>,
    } else {
    }
    %c0 = arith.constant 0 : index
    %c0_1 = arith.constant 0 : index
    %3 = vector.load %arg7[%c0, %c0_1] : memref<16x128xf32, #tpu.memory_space<vmem>>, vector<16x128xf32>
    %c0_2 = arith.constant 0 : index
    %c0_3 = arith.constant 0 : index
    %4 = vector.load %arg3[%c0_2, %c0_3] : memref<16x128xbf16, #tpu.memory_space<vmem>>, vector<16x128xbf16>
    %c0_4 = arith.constant 0 : index
    %c0_5 = arith.constant 0 : index
    %5 = vector.load %arg4[%c0_4, %c0_5] : memref<128x128xbf16, #tpu.memory_space<vmem>>, vector<128x128xbf16>
    %cst = arith.constant dense<0.000000e+00> : vector<16x128xf32>
    %6 = tpu.matmul %4, %5, %cst {dimension_numbers = #tpu.dot_dimension_numbers<[1], [0], [0], [1], [0, 0, 1, 1], [], []>} : vector<16x128xbf16>, vector<128x128xbf16>, vector<16x128xf32> -> vector<16x128xf32>
    %7 = arith.addf %3, %6 : vector<16x128xf32>
    %c0_6 = arith.constant 0 : index
    %c0_7 = arith.constant 0 : index
    %8 = vector.load %arg7[%c0_6, %c0_7] : memref<16x128xf32, #tpu.memory_space<vmem>>, vector<16x128xf32>
    tpu.vector_store %arg7[%c0_6, %c0_7], %7 {strides = array<i32>} : memref<16x128xf32, #tpu.memory_space<vmem>>, vector<16x128xf32>,
    %c0_i32_8 = arith.constant 0 : i32
    %9 = arith.cmpi eq, %arg2, %c0_i32_8 : i32
    %10 = arith.extui %9 : i1 to i32
    %c0_i32_9 = arith.constant 0 : i32
    %11 = arith.cmpi ne, %10, %c0_i32_9 : i32
    scf.if %11 {
      %c0_10 = arith.constant 0 : index
      %c0_11 = arith.constant 0 : index
      %12 = vector.load %arg7[%c0_10, %c0_11] : memref<16x128xf32, #tpu.memory_space<vmem>>, vector<16x128xf32>
      %13 = arith.truncf %12 : vector<16x128xf32> to vector<16x128xbf16>
      %c0_12 = arith.constant 0 : index
      %c0_13 = arith.constant 0 : index
      %14 = vector.load %arg5[%c0_12, %c0_13] : memref<16x128xbf16, #tpu.memory_space<vmem>>, vector<16x128xbf16>
      tpu.vector_store %arg5[%c0_12, %c0_13], %13 {strides = array<i32>} : memref<16x128xbf16, #tpu.memory_space<vmem>>, vector<16x128xbf16>,
      %cst_14 = arith.constant dense<0.000000e+00> : vector<128xf32>
      %15 = vector.multi_reduction <add>, %12, %cst_14 [0] : vector<16x128xf32> to vector<128xf32>
      %16 = vector.shape_cast %15 : vector<128xf32> to vector<1x128xf32>
      %17 = arith.mulf %12, %12 : vector<16x128xf32>
      %cst_15 = arith.constant dense<0.000000e+00> : vector<128xf32>
      %18 = vector.multi_reduction <add>, %17, %cst_15 [0] : vector<16x128xf32> to vector<128xf32>
      %19 = vector.shape_cast %18 : vector<128xf32> to vector<1x128xf32>
      %20 = tpu.concatenate %16, %19 in 0 : vector<1x128xf32>, vector<1x128xf32> -> vector<2x128xf32>
      %21 = vector.shape_cast %20 : vector<2x128xf32> to vector<1x2x128xf32>
      %c0_16 = arith.constant 0 : index
      %c0_17 = arith.constant 0 : index
      %c0_18 = arith.constant 0 : index
      %22 = vector.load %arg6[%c0_16, %c0_17, %c0_18] : memref<1x2x128xf32, #tpu.memory_space<vmem>>, vector<1x2x128xf32>
      tpu.vector_store %arg6[%c0_16, %c0_17, %c0_18], %21 {strides = array<i32>} : memref<1x2x128xf32, #tpu.memory_space<vmem>>, vector<1x2x128xf32>,
    } else {
    }
    return
  }
  func.func @transform_0(%arg0: i32, %arg1: i32, %arg2: i32) -> (i32, i32) {
    %c0_i32 = arith.constant 0 : i32
    return %arg0, %arg2 : i32, i32
  }
  func.func @transform_1(%arg0: i32, %arg1: i32, %arg2: i32) -> (i32, i32) {
    %c0_i32 = arith.constant 0 : i32
    return %arg2, %arg1 : i32, i32
  }
  func.func @transform_2(%arg0: i32, %arg1: i32, %arg2: i32) -> (i32, i32) {
    %c0_i32 = arith.constant 0 : i32
    return %arg0, %arg1 : i32, i32
  }
  func.func @transform_3(%arg0: i32, %arg1: i32, %arg2: i32) -> (i32, i32, i32) {
    %c0_i32 = arith.constant 0 : i32
    %c0_i32_0 = arith.constant 0 : i32
    return %arg0, %c0_i32, %arg1 : i32, i32, i32
  }
}

module attributes {stable_mosaic.version = 11 : i64} {
  func.func @_bn_act_kernel(%arg0: i32, %arg1: memref<3x128xbf16, #tpu.memory_space<vmem>>, %arg2: memref<1x128xf32, #tpu.memory_space<vmem>>, %arg3: memref<1x128xf32, #tpu.memory_space<vmem>>, %arg4: memref<3x128xbf16, #tpu.memory_space<vmem>>) attributes {dimension_semantics = [#tpu.dimension_semantics<parallel>], iteration_bounds = array<i64: 1>, scalar_prefetch = 0 : i64, scratch_operands = 0 : i64, tpu.core_type = #tpu.core_type<tc>, window_params = [{transform_indices = @transform_0, window_bounds = array<i64: 3, 128>}, {pipeline_mode = #tpu.pipeline_mode<synchronous>, transform_indices = @transform_1, window_bounds = array<i64: 1, 128>}, {pipeline_mode = #tpu.pipeline_mode<synchronous>, transform_indices = @transform_2, window_bounds = array<i64: 1, 128>}, {transform_indices = @transform_3, window_bounds = array<i64: 3, 128>}]} {
    %c0 = arith.constant 0 : index
    %c0_0 = arith.constant 0 : index
    %0 = vector.load %arg1[%c0, %c0_0] : memref<3x128xbf16, #tpu.memory_space<vmem>>, vector<3x128xbf16>
    %1 = arith.extf %0 : vector<3x128xbf16> to vector<3x128xf32>
    %c0_1 = arith.constant 0 : index
    %c0_2 = arith.constant 0 : index
    %2 = vector.load %arg2[%c0_1, %c0_2] : memref<1x128xf32, #tpu.memory_space<vmem>>, vector<1x128xf32>
    %3 = vector.broadcast %2 : vector<1x128xf32> to vector<3x128xf32>
    %4 = arith.mulf %1, %3 : vector<3x128xf32>
    %c0_3 = arith.constant 0 : index
    %c0_4 = arith.constant 0 : index
    %5 = vector.load %arg3[%c0_3, %c0_4] : memref<1x128xf32, #tpu.memory_space<vmem>>, vector<1x128xf32>
    %6 = vector.broadcast %5 : vector<1x128xf32> to vector<3x128xf32>
    %7 = arith.addf %4, %6 : vector<3x128xf32>
    %cst = arith.constant 0.000000e+00 : f32
    %8 = vector.broadcast %cst : f32 to vector<3x128xf32>
    %9 = arith.maximumf %7, %8 : vector<3x128xf32>
    %10 = arith.truncf %9 : vector<3x128xf32> to vector<3x128xbf16>
    %c0_5 = arith.constant 0 : index
    %c0_6 = arith.constant 0 : index
    %11 = vector.load %arg4[%c0_5, %c0_6] : memref<3x128xbf16, #tpu.memory_space<vmem>>, vector<3x128xbf16>
    tpu.vector_store %arg4[%c0_5, %c0_6], %10 {strides = array<i32>} : memref<3x128xbf16, #tpu.memory_space<vmem>>, vector<3x128xbf16>,
    return
  }
  func.func @transform_0(%arg0: i32) -> (i32, i32) {
    %c0_i32 = arith.constant 0 : i32
    %c0_i32_0 = arith.constant 0 : i32
    return %arg0, %c0_i32 : i32, i32
  }
  func.func @transform_1(%arg0: i32) -> (i32, i32) {
    %c0_i32 = arith.constant 0 : i32
    %c0_i32_0 = arith.constant 0 : i32
    %c0_i32_1 = arith.constant 0 : i32
    return %c0_i32, %c0_i32_0 : i32, i32
  }
  func.func @transform_2(%arg0: i32) -> (i32, i32) {
    %c0_i32 = arith.constant 0 : i32
    %c0_i32_0 = arith.constant 0 : i32
    %c0_i32_1 = arith.constant 0 : i32
    return %c0_i32, %c0_i32_0 : i32, i32
  }
  func.func @transform_3(%arg0: i32) -> (i32, i32) {
    %c0_i32 = arith.constant 0 : i32
    %c0_i32_0 = arith.constant 0 : i32
    return %arg0, %c0_i32 : i32, i32
  }
}

module attributes {stable_mosaic.version = 11 : i64} {
  func.func @_conv_mm_kernel(%arg0: i32, %arg1: i32, %arg2: i32, %arg3: memref<16x256xbf16, #tpu.memory_space<vmem>>, %arg4: memref<256x128xbf16, #tpu.memory_space<vmem>>, %arg5: memref<16x128xbf16, #tpu.memory_space<vmem>>, %arg6: memref<1x2x128xf32, #tpu.memory_space<vmem>>, %arg7: memref<16x128xf32, #tpu.memory_space<vmem>>) attributes {dimension_semantics = [#tpu.dimension_semantics<parallel>, #tpu.dimension_semantics<parallel>, #tpu.dimension_semantics<arbitrary>], iteration_bounds = array<i64: 2, 1, 1>, scalar_prefetch = 0 : i64, scratch_operands = 1 : i64, tpu.core_type = #tpu.core_type<tc>, window_params = [{transform_indices = @transform_0, window_bounds = array<i64: 16, 256>}, {transform_indices = @transform_1, window_bounds = array<i64: 256, 128>}, {transform_indices = @transform_2, window_bounds = array<i64: 16, 128>}, {transform_indices = @transform_3, window_bounds = array<i64: 1, 2, 128>}]} {
    %c0_i32 = arith.constant 0 : i32
    %0 = arith.cmpi eq, %arg2, %c0_i32 : i32
    %1 = arith.extui %0 : i1 to i32
    %c0_i32_0 = arith.constant 0 : i32
    %2 = arith.cmpi ne, %1, %c0_i32_0 : i32
    scf.if %2 {
      %cst_10 = arith.constant 0.000000e+00 : f32
      %12 = vector.broadcast %cst_10 : f32 to vector<16x128xf32>
      %c0_11 = arith.constant 0 : index
      %c0_12 = arith.constant 0 : index
      %13 = vector.load %arg7[%c0_11, %c0_12] : memref<16x128xf32, #tpu.memory_space<vmem>>, vector<16x128xf32>
      tpu.vector_store %arg7[%c0_11, %c0_12], %12 {strides = array<i32>} : memref<16x128xf32, #tpu.memory_space<vmem>>, vector<16x128xf32>,
    } else {
    }
    %c0 = arith.constant 0 : index
    %c0_1 = arith.constant 0 : index
    %3 = vector.load %arg7[%c0, %c0_1] : memref<16x128xf32, #tpu.memory_space<vmem>>, vector<16x128xf32>
    %c0_2 = arith.constant 0 : index
    %c0_3 = arith.constant 0 : index
    %4 = vector.load %arg3[%c0_2, %c0_3] : memref<16x256xbf16, #tpu.memory_space<vmem>>, vector<16x256xbf16>
    %c0_4 = arith.constant 0 : index
    %c0_5 = arith.constant 0 : index
    %5 = vector.load %arg4[%c0_4, %c0_5] : memref<256x128xbf16, #tpu.memory_space<vmem>>, vector<256x128xbf16>
    %cst = arith.constant dense<0.000000e+00> : vector<16x128xf32>
    %6 = tpu.matmul %4, %5, %cst {dimension_numbers = #tpu.dot_dimension_numbers<[1], [0], [0], [1], [0, 0, 1, 1], [], []>} : vector<16x256xbf16>, vector<256x128xbf16>, vector<16x128xf32> -> vector<16x128xf32>
    %7 = arith.addf %3, %6 : vector<16x128xf32>
    %c0_6 = arith.constant 0 : index
    %c0_7 = arith.constant 0 : index
    %8 = vector.load %arg7[%c0_6, %c0_7] : memref<16x128xf32, #tpu.memory_space<vmem>>, vector<16x128xf32>
    tpu.vector_store %arg7[%c0_6, %c0_7], %7 {strides = array<i32>} : memref<16x128xf32, #tpu.memory_space<vmem>>, vector<16x128xf32>,
    %c0_i32_8 = arith.constant 0 : i32
    %9 = arith.cmpi eq, %arg2, %c0_i32_8 : i32
    %10 = arith.extui %9 : i1 to i32
    %c0_i32_9 = arith.constant 0 : i32
    %11 = arith.cmpi ne, %10, %c0_i32_9 : i32
    scf.if %11 {
      %c0_10 = arith.constant 0 : index
      %c0_11 = arith.constant 0 : index
      %12 = vector.load %arg7[%c0_10, %c0_11] : memref<16x128xf32, #tpu.memory_space<vmem>>, vector<16x128xf32>
      %13 = arith.truncf %12 : vector<16x128xf32> to vector<16x128xbf16>
      %c0_12 = arith.constant 0 : index
      %c0_13 = arith.constant 0 : index
      %14 = vector.load %arg5[%c0_12, %c0_13] : memref<16x128xbf16, #tpu.memory_space<vmem>>, vector<16x128xbf16>
      tpu.vector_store %arg5[%c0_12, %c0_13], %13 {strides = array<i32>} : memref<16x128xbf16, #tpu.memory_space<vmem>>, vector<16x128xbf16>,
      %cst_14 = arith.constant dense<0.000000e+00> : vector<128xf32>
      %15 = vector.multi_reduction <add>, %12, %cst_14 [0] : vector<16x128xf32> to vector<128xf32>
      %16 = vector.shape_cast %15 : vector<128xf32> to vector<1x128xf32>
      %17 = arith.mulf %12, %12 : vector<16x128xf32>
      %cst_15 = arith.constant dense<0.000000e+00> : vector<128xf32>
      %18 = vector.multi_reduction <add>, %17, %cst_15 [0] : vector<16x128xf32> to vector<128xf32>
      %19 = vector.shape_cast %18 : vector<128xf32> to vector<1x128xf32>
      %20 = tpu.concatenate %16, %19 in 0 : vector<1x128xf32>, vector<1x128xf32> -> vector<2x128xf32>
      %21 = vector.shape_cast %20 : vector<2x128xf32> to vector<1x2x128xf32>
      %c0_16 = arith.constant 0 : index
      %c0_17 = arith.constant 0 : index
      %c0_18 = arith.constant 0 : index
      %22 = vector.load %arg6[%c0_16, %c0_17, %c0_18] : memref<1x2x128xf32, #tpu.memory_space<vmem>>, vector<1x2x128xf32>
      tpu.vector_store %arg6[%c0_16, %c0_17, %c0_18], %21 {strides = array<i32>} : memref<1x2x128xf32, #tpu.memory_space<vmem>>, vector<1x2x128xf32>,
    } else {
    }
    return
  }
  func.func @transform_0(%arg0: i32, %arg1: i32, %arg2: i32) -> (i32, i32) {
    %c0_i32 = arith.constant 0 : i32
    return %arg0, %arg2 : i32, i32
  }
  func.func @transform_1(%arg0: i32, %arg1: i32, %arg2: i32) -> (i32, i32) {
    %c0_i32 = arith.constant 0 : i32
    return %arg2, %arg1 : i32, i32
  }
  func.func @transform_2(%arg0: i32, %arg1: i32, %arg2: i32) -> (i32, i32) {
    %c0_i32 = arith.constant 0 : i32
    return %arg0, %arg1 : i32, i32
  }
  func.func @transform_3(%arg0: i32, %arg1: i32, %arg2: i32) -> (i32, i32, i32) {
    %c0_i32 = arith.constant 0 : i32
    %c0_i32_0 = arith.constant 0 : i32
    return %arg0, %c0_i32, %arg1 : i32, i32, i32
  }
}

module attributes {stable_mosaic.version = 11 : i64} {
  func.func @_bn_add_relu_kernel(%arg0: i32, %arg1: memref<3x128xbf16, #tpu.memory_space<vmem>>, %arg2: memref<1x128xf32, #tpu.memory_space<vmem>>, %arg3: memref<1x128xf32, #tpu.memory_space<vmem>>, %arg4: memref<3x128xbf16, #tpu.memory_space<vmem>>, %arg5: memref<1x128xf32, #tpu.memory_space<vmem>>, %arg6: memref<1x128xf32, #tpu.memory_space<vmem>>, %arg7: memref<3x128xbf16, #tpu.memory_space<vmem>>) attributes {dimension_semantics = [#tpu.dimension_semantics<parallel>], iteration_bounds = array<i64: 1>, scalar_prefetch = 0 : i64, scratch_operands = 0 : i64, tpu.core_type = #tpu.core_type<tc>, window_params = [{transform_indices = @transform_0, window_bounds = array<i64: 3, 128>}, {pipeline_mode = #tpu.pipeline_mode<synchronous>, transform_indices = @transform_1, window_bounds = array<i64: 1, 128>}, {pipeline_mode = #tpu.pipeline_mode<synchronous>, transform_indices = @transform_2, window_bounds = array<i64: 1, 128>}, {transform_indices = @transform_3, window_bounds = array<i64: 3, 128>}, {pipeline_mode = #tpu.pipeline_mode<synchronous>, transform_indices = @transform_4, window_bounds = array<i64: 1, 128>}, {pipeline_mode = #tpu.pipeline_mode<synchronous>, transform_indices = @transform_5, window_bounds = array<i64: 1, 128>}, {transform_indices = @transform_6, window_bounds = array<i64: 3, 128>}]} {
    %c0 = arith.constant 0 : index
    %c0_0 = arith.constant 0 : index
    %0 = vector.load %arg1[%c0, %c0_0] : memref<3x128xbf16, #tpu.memory_space<vmem>>, vector<3x128xbf16>
    %1 = arith.extf %0 : vector<3x128xbf16> to vector<3x128xf32>
    %c0_1 = arith.constant 0 : index
    %c0_2 = arith.constant 0 : index
    %2 = vector.load %arg2[%c0_1, %c0_2] : memref<1x128xf32, #tpu.memory_space<vmem>>, vector<1x128xf32>
    %3 = vector.broadcast %2 : vector<1x128xf32> to vector<3x128xf32>
    %4 = arith.mulf %1, %3 : vector<3x128xf32>
    %c0_3 = arith.constant 0 : index
    %c0_4 = arith.constant 0 : index
    %5 = vector.load %arg3[%c0_3, %c0_4] : memref<1x128xf32, #tpu.memory_space<vmem>>, vector<1x128xf32>
    %6 = vector.broadcast %5 : vector<1x128xf32> to vector<3x128xf32>
    %7 = arith.addf %4, %6 : vector<3x128xf32>
    %c0_5 = arith.constant 0 : index
    %c0_6 = arith.constant 0 : index
    %8 = vector.load %arg4[%c0_5, %c0_6] : memref<3x128xbf16, #tpu.memory_space<vmem>>, vector<3x128xbf16>
    %9 = arith.extf %8 : vector<3x128xbf16> to vector<3x128xf32>
    %c0_7 = arith.constant 0 : index
    %c0_8 = arith.constant 0 : index
    %10 = vector.load %arg5[%c0_7, %c0_8] : memref<1x128xf32, #tpu.memory_space<vmem>>, vector<1x128xf32>
    %11 = vector.broadcast %10 : vector<1x128xf32> to vector<3x128xf32>
    %12 = arith.mulf %9, %11 : vector<3x128xf32>
    %c0_9 = arith.constant 0 : index
    %c0_10 = arith.constant 0 : index
    %13 = vector.load %arg6[%c0_9, %c0_10] : memref<1x128xf32, #tpu.memory_space<vmem>>, vector<1x128xf32>
    %14 = vector.broadcast %13 : vector<1x128xf32> to vector<3x128xf32>
    %15 = arith.addf %12, %14 : vector<3x128xf32>
    %16 = arith.addf %7, %15 : vector<3x128xf32>
    %cst = arith.constant 0.000000e+00 : f32
    %17 = vector.broadcast %cst : f32 to vector<3x128xf32>
    %18 = arith.maximumf %16, %17 : vector<3x128xf32>
    %19 = arith.truncf %18 : vector<3x128xf32> to vector<3x128xbf16>
    %c0_11 = arith.constant 0 : index
    %c0_12 = arith.constant 0 : index
    %20 = vector.load %arg7[%c0_11, %c0_12] : memref<3x128xbf16, #tpu.memory_space<vmem>>, vector<3x128xbf16>
    tpu.vector_store %arg7[%c0_11, %c0_12], %19 {strides = array<i32>} : memref<3x128xbf16, #tpu.memory_space<vmem>>, vector<3x128xbf16>,
    return
  }
  func.func @transform_0(%arg0: i32) -> (i32, i32) {
    %c0_i32 = arith.constant 0 : i32
    %c0_i32_0 = arith.constant 0 : i32
    return %arg0, %c0_i32 : i32, i32
  }
  func.func @transform_1(%arg0: i32) -> (i32, i32) {
    %c0_i32 = arith.constant 0 : i32
    %c0_i32_0 = arith.constant 0 : i32
    %c0_i32_1 = arith.constant 0 : i32
    return %c0_i32, %c0_i32_0 : i32, i32
  }
  func.func @transform_2(%arg0: i32) -> (i32, i32) {
    %c0_i32 = arith.constant 0 : i32
    %c0_i32_0 = arith.constant 0 : i32
    %c0_i32_1 = arith.constant 0 : i32
    return %c0_i32, %c0_i32_0 : i32, i32
  }
  func.func @transform_3(%arg0: i32) -> (i32, i32) {
    %c0_i32 = arith.constant 0 : i32
    %c0_i32_0 = arith.constant 0 : i32
    return %arg0, %c0_i32 : i32, i32
  }
  func.func @transform_4(%arg0: i32) -> (i32, i32) {
    %c0_i32 = arith.constant 0 : i32
    %c0_i32_0 = arith.constant 0 : i32
    %c0_i32_1 = arith.constant 0 : i32
    return %c0_i32, %c0_i32_0 : i32, i32
  }
  func.func @transform_5(%arg0: i32) -> (i32, i32) {
    %c0_i32 = arith.constant 0 : i32
    %c0_i32_0 = arith.constant 0 : i32
    %c0_i32_1 = arith.constant 0 : i32
    return %c0_i32, %c0_i32_0 : i32, i32
  }
  func.func @transform_6(%arg0: i32) -> (i32, i32) {
    %c0_i32 = arith.constant 0 : i32
    %c0_i32_0 = arith.constant 0 : i32
    return %arg0, %c0_i32 : i32, i32
  }
}

module attributes {stable_mosaic.version = 11 : i64} {
  func.func @_conv_mm_kernel(%arg0: i32, %arg1: i32, %arg2: i32, %arg3: memref<16x128xbf16, #tpu.memory_space<vmem>>, %arg4: memref<128x128xbf16, #tpu.memory_space<vmem>>, %arg5: memref<16x128xbf16, #tpu.memory_space<vmem>>, %arg6: memref<1x2x128xf32, #tpu.memory_space<vmem>>, %arg7: memref<16x128xf32, #tpu.memory_space<vmem>>) attributes {dimension_semantics = [#tpu.dimension_semantics<parallel>, #tpu.dimension_semantics<parallel>, #tpu.dimension_semantics<arbitrary>], iteration_bounds = array<i64: 1, 1, 1>, scalar_prefetch = 0 : i64, scratch_operands = 1 : i64, tpu.core_type = #tpu.core_type<tc>, window_params = [{transform_indices = @transform_0, window_bounds = array<i64: 16, 128>}, {transform_indices = @transform_1, window_bounds = array<i64: 128, 128>}, {transform_indices = @transform_2, window_bounds = array<i64: 16, 128>}, {transform_indices = @transform_3, window_bounds = array<i64: 1, 2, 128>}]} {
    %c0_i32 = arith.constant 0 : i32
    %0 = arith.cmpi eq, %arg2, %c0_i32 : i32
    %1 = arith.extui %0 : i1 to i32
    %c0_i32_0 = arith.constant 0 : i32
    %2 = arith.cmpi ne, %1, %c0_i32_0 : i32
    scf.if %2 {
      %cst_10 = arith.constant 0.000000e+00 : f32
      %12 = vector.broadcast %cst_10 : f32 to vector<16x128xf32>
      %c0_11 = arith.constant 0 : index
      %c0_12 = arith.constant 0 : index
      %13 = vector.load %arg7[%c0_11, %c0_12] : memref<16x128xf32, #tpu.memory_space<vmem>>, vector<16x128xf32>
      tpu.vector_store %arg7[%c0_11, %c0_12], %12 {strides = array<i32>} : memref<16x128xf32, #tpu.memory_space<vmem>>, vector<16x128xf32>,
    } else {
    }
    %c0 = arith.constant 0 : index
    %c0_1 = arith.constant 0 : index
    %3 = vector.load %arg7[%c0, %c0_1] : memref<16x128xf32, #tpu.memory_space<vmem>>, vector<16x128xf32>
    %c0_2 = arith.constant 0 : index
    %c0_3 = arith.constant 0 : index
    %4 = vector.load %arg3[%c0_2, %c0_3] : memref<16x128xbf16, #tpu.memory_space<vmem>>, vector<16x128xbf16>
    %c0_4 = arith.constant 0 : index
    %c0_5 = arith.constant 0 : index
    %5 = vector.load %arg4[%c0_4, %c0_5] : memref<128x128xbf16, #tpu.memory_space<vmem>>, vector<128x128xbf16>
    %cst = arith.constant dense<0.000000e+00> : vector<16x128xf32>
    %6 = tpu.matmul %4, %5, %cst {dimension_numbers = #tpu.dot_dimension_numbers<[1], [0], [0], [1], [0, 0, 1, 1], [], []>} : vector<16x128xbf16>, vector<128x128xbf16>, vector<16x128xf32> -> vector<16x128xf32>
    %7 = arith.addf %3, %6 : vector<16x128xf32>
    %c0_6 = arith.constant 0 : index
    %c0_7 = arith.constant 0 : index
    %8 = vector.load %arg7[%c0_6, %c0_7] : memref<16x128xf32, #tpu.memory_space<vmem>>, vector<16x128xf32>
    tpu.vector_store %arg7[%c0_6, %c0_7], %7 {strides = array<i32>} : memref<16x128xf32, #tpu.memory_space<vmem>>, vector<16x128xf32>,
    %c0_i32_8 = arith.constant 0 : i32
    %9 = arith.cmpi eq, %arg2, %c0_i32_8 : i32
    %10 = arith.extui %9 : i1 to i32
    %c0_i32_9 = arith.constant 0 : i32
    %11 = arith.cmpi ne, %10, %c0_i32_9 : i32
    scf.if %11 {
      %c0_10 = arith.constant 0 : index
      %c0_11 = arith.constant 0 : index
      %12 = vector.load %arg7[%c0_10, %c0_11] : memref<16x128xf32, #tpu.memory_space<vmem>>, vector<16x128xf32>
      %13 = arith.truncf %12 : vector<16x128xf32> to vector<16x128xbf16>
      %c0_12 = arith.constant 0 : index
      %c0_13 = arith.constant 0 : index
      %14 = vector.load %arg5[%c0_12, %c0_13] : memref<16x128xbf16, #tpu.memory_space<vmem>>, vector<16x128xbf16>
      tpu.vector_store %arg5[%c0_12, %c0_13], %13 {strides = array<i32>} : memref<16x128xbf16, #tpu.memory_space<vmem>>, vector<16x128xbf16>,
      %cst_14 = arith.constant dense<0.000000e+00> : vector<128xf32>
      %15 = vector.multi_reduction <add>, %12, %cst_14 [0] : vector<16x128xf32> to vector<128xf32>
      %16 = vector.shape_cast %15 : vector<128xf32> to vector<1x128xf32>
      %17 = arith.mulf %12, %12 : vector<16x128xf32>
      %cst_15 = arith.constant dense<0.000000e+00> : vector<128xf32>
      %18 = vector.multi_reduction <add>, %17, %cst_15 [0] : vector<16x128xf32> to vector<128xf32>
      %19 = vector.shape_cast %18 : vector<128xf32> to vector<1x128xf32>
      %20 = tpu.concatenate %16, %19 in 0 : vector<1x128xf32>, vector<1x128xf32> -> vector<2x128xf32>
      %21 = vector.shape_cast %20 : vector<2x128xf32> to vector<1x2x128xf32>
      %c0_16 = arith.constant 0 : index
      %c0_17 = arith.constant 0 : index
      %c0_18 = arith.constant 0 : index
      %22 = vector.load %arg6[%c0_16, %c0_17, %c0_18] : memref<1x2x128xf32, #tpu.memory_space<vmem>>, vector<1x2x128xf32>
      tpu.vector_store %arg6[%c0_16, %c0_17, %c0_18], %21 {strides = array<i32>} : memref<1x2x128xf32, #tpu.memory_space<vmem>>, vector<1x2x128xf32>,
    } else {
    }
    return
  }
  func.func @transform_0(%arg0: i32, %arg1: i32, %arg2: i32) -> (i32, i32) {
    %c0_i32 = arith.constant 0 : i32
    return %arg0, %arg2 : i32, i32
  }
  func.func @transform_1(%arg0: i32, %arg1: i32, %arg2: i32) -> (i32, i32) {
    %c0_i32 = arith.constant 0 : i32
    return %arg2, %arg1 : i32, i32
  }
  func.func @transform_2(%arg0: i32, %arg1: i32, %arg2: i32) -> (i32, i32) {
    %c0_i32 = arith.constant 0 : i32
    return %arg0, %arg1 : i32, i32
  }
  func.func @transform_3(%arg0: i32, %arg1: i32, %arg2: i32) -> (i32, i32, i32) {
    %c0_i32 = arith.constant 0 : i32
    %c0_i32_0 = arith.constant 0 : i32
    return %arg0, %c0_i32, %arg1 : i32, i32, i32
  }
}

module attributes {stable_mosaic.version = 11 : i64} {
  func.func @_bn_act_kernel(%arg0: i32, %arg1: memref<2x128xbf16, #tpu.memory_space<vmem>>, %arg2: memref<1x128xf32, #tpu.memory_space<vmem>>, %arg3: memref<1x128xf32, #tpu.memory_space<vmem>>, %arg4: memref<2x128xbf16, #tpu.memory_space<vmem>>) attributes {dimension_semantics = [#tpu.dimension_semantics<parallel>], iteration_bounds = array<i64: 1>, scalar_prefetch = 0 : i64, scratch_operands = 0 : i64, tpu.core_type = #tpu.core_type<tc>, window_params = [{transform_indices = @transform_0, window_bounds = array<i64: 2, 128>}, {pipeline_mode = #tpu.pipeline_mode<synchronous>, transform_indices = @transform_1, window_bounds = array<i64: 1, 128>}, {pipeline_mode = #tpu.pipeline_mode<synchronous>, transform_indices = @transform_2, window_bounds = array<i64: 1, 128>}, {transform_indices = @transform_3, window_bounds = array<i64: 2, 128>}]} {
    %c0 = arith.constant 0 : index
    %c0_0 = arith.constant 0 : index
    %0 = vector.load %arg1[%c0, %c0_0] : memref<2x128xbf16, #tpu.memory_space<vmem>>, vector<2x128xbf16>
    %1 = arith.extf %0 : vector<2x128xbf16> to vector<2x128xf32>
    %c0_1 = arith.constant 0 : index
    %c0_2 = arith.constant 0 : index
    %2 = vector.load %arg2[%c0_1, %c0_2] : memref<1x128xf32, #tpu.memory_space<vmem>>, vector<1x128xf32>
    %3 = vector.broadcast %2 : vector<1x128xf32> to vector<2x128xf32>
    %4 = arith.mulf %1, %3 : vector<2x128xf32>
    %c0_3 = arith.constant 0 : index
    %c0_4 = arith.constant 0 : index
    %5 = vector.load %arg3[%c0_3, %c0_4] : memref<1x128xf32, #tpu.memory_space<vmem>>, vector<1x128xf32>
    %6 = vector.broadcast %5 : vector<1x128xf32> to vector<2x128xf32>
    %7 = arith.addf %4, %6 : vector<2x128xf32>
    %cst = arith.constant 0.000000e+00 : f32
    %8 = vector.broadcast %cst : f32 to vector<2x128xf32>
    %9 = arith.maximumf %7, %8 : vector<2x128xf32>
    %10 = arith.truncf %9 : vector<2x128xf32> to vector<2x128xbf16>
    %c0_5 = arith.constant 0 : index
    %c0_6 = arith.constant 0 : index
    %11 = vector.load %arg4[%c0_5, %c0_6] : memref<2x128xbf16, #tpu.memory_space<vmem>>, vector<2x128xbf16>
    tpu.vector_store %arg4[%c0_5, %c0_6], %10 {strides = array<i32>} : memref<2x128xbf16, #tpu.memory_space<vmem>>, vector<2x128xbf16>,
    return
  }
  func.func @transform_0(%arg0: i32) -> (i32, i32) {
    %c0_i32 = arith.constant 0 : i32
    %c0_i32_0 = arith.constant 0 : i32
    return %arg0, %c0_i32 : i32, i32
  }
  func.func @transform_1(%arg0: i32) -> (i32, i32) {
    %c0_i32 = arith.constant 0 : i32
    %c0_i32_0 = arith.constant 0 : i32
    %c0_i32_1 = arith.constant 0 : i32
    return %c0_i32, %c0_i32_0 : i32, i32
  }
  func.func @transform_2(%arg0: i32) -> (i32, i32) {
    %c0_i32 = arith.constant 0 : i32
    %c0_i32_0 = arith.constant 0 : i32
    %c0_i32_1 = arith.constant 0 : i32
    return %c0_i32, %c0_i32_0 : i32, i32
  }
  func.func @transform_3(%arg0: i32) -> (i32, i32) {
    %c0_i32 = arith.constant 0 : i32
    %c0_i32_0 = arith.constant 0 : i32
    return %arg0, %c0_i32 : i32, i32
  }
}

module attributes {stable_mosaic.version = 11 : i64} {
  func.func @_conv_mm_kernel(%arg0: i32, %arg1: i32, %arg2: i32, %arg3: memref<16x256xbf16, #tpu.memory_space<vmem>>, %arg4: memref<256x128xbf16, #tpu.memory_space<vmem>>, %arg5: memref<16x128xbf16, #tpu.memory_space<vmem>>, %arg6: memref<1x2x128xf32, #tpu.memory_space<vmem>>, %arg7: memref<16x128xf32, #tpu.memory_space<vmem>>) attributes {dimension_semantics = [#tpu.dimension_semantics<parallel>, #tpu.dimension_semantics<parallel>, #tpu.dimension_semantics<arbitrary>], iteration_bounds = array<i64: 1, 1, 1>, scalar_prefetch = 0 : i64, scratch_operands = 1 : i64, tpu.core_type = #tpu.core_type<tc>, window_params = [{transform_indices = @transform_0, window_bounds = array<i64: 16, 256>}, {transform_indices = @transform_1, window_bounds = array<i64: 256, 128>}, {transform_indices = @transform_2, window_bounds = array<i64: 16, 128>}, {transform_indices = @transform_3, window_bounds = array<i64: 1, 2, 128>}]} {
    %c0_i32 = arith.constant 0 : i32
    %0 = arith.cmpi eq, %arg2, %c0_i32 : i32
    %1 = arith.extui %0 : i1 to i32
    %c0_i32_0 = arith.constant 0 : i32
    %2 = arith.cmpi ne, %1, %c0_i32_0 : i32
    scf.if %2 {
      %cst_10 = arith.constant 0.000000e+00 : f32
      %12 = vector.broadcast %cst_10 : f32 to vector<16x128xf32>
      %c0_11 = arith.constant 0 : index
      %c0_12 = arith.constant 0 : index
      %13 = vector.load %arg7[%c0_11, %c0_12] : memref<16x128xf32, #tpu.memory_space<vmem>>, vector<16x128xf32>
      tpu.vector_store %arg7[%c0_11, %c0_12], %12 {strides = array<i32>} : memref<16x128xf32, #tpu.memory_space<vmem>>, vector<16x128xf32>,
    } else {
    }
    %c0 = arith.constant 0 : index
    %c0_1 = arith.constant 0 : index
    %3 = vector.load %arg7[%c0, %c0_1] : memref<16x128xf32, #tpu.memory_space<vmem>>, vector<16x128xf32>
    %c0_2 = arith.constant 0 : index
    %c0_3 = arith.constant 0 : index
    %4 = vector.load %arg3[%c0_2, %c0_3] : memref<16x256xbf16, #tpu.memory_space<vmem>>, vector<16x256xbf16>
    %c0_4 = arith.constant 0 : index
    %c0_5 = arith.constant 0 : index
    %5 = vector.load %arg4[%c0_4, %c0_5] : memref<256x128xbf16, #tpu.memory_space<vmem>>, vector<256x128xbf16>
    %cst = arith.constant dense<0.000000e+00> : vector<16x128xf32>
    %6 = tpu.matmul %4, %5, %cst {dimension_numbers = #tpu.dot_dimension_numbers<[1], [0], [0], [1], [0, 0, 1, 1], [], []>} : vector<16x256xbf16>, vector<256x128xbf16>, vector<16x128xf32> -> vector<16x128xf32>
    %7 = arith.addf %3, %6 : vector<16x128xf32>
    %c0_6 = arith.constant 0 : index
    %c0_7 = arith.constant 0 : index
    %8 = vector.load %arg7[%c0_6, %c0_7] : memref<16x128xf32, #tpu.memory_space<vmem>>, vector<16x128xf32>
    tpu.vector_store %arg7[%c0_6, %c0_7], %7 {strides = array<i32>} : memref<16x128xf32, #tpu.memory_space<vmem>>, vector<16x128xf32>,
    %c0_i32_8 = arith.constant 0 : i32
    %9 = arith.cmpi eq, %arg2, %c0_i32_8 : i32
    %10 = arith.extui %9 : i1 to i32
    %c0_i32_9 = arith.constant 0 : i32
    %11 = arith.cmpi ne, %10, %c0_i32_9 : i32
    scf.if %11 {
      %c0_10 = arith.constant 0 : index
      %c0_11 = arith.constant 0 : index
      %12 = vector.load %arg7[%c0_10, %c0_11] : memref<16x128xf32, #tpu.memory_space<vmem>>, vector<16x128xf32>
      %13 = arith.truncf %12 : vector<16x128xf32> to vector<16x128xbf16>
      %c0_12 = arith.constant 0 : index
      %c0_13 = arith.constant 0 : index
      %14 = vector.load %arg5[%c0_12, %c0_13] : memref<16x128xbf16, #tpu.memory_space<vmem>>, vector<16x128xbf16>
      tpu.vector_store %arg5[%c0_12, %c0_13], %13 {strides = array<i32>} : memref<16x128xbf16, #tpu.memory_space<vmem>>, vector<16x128xbf16>,
      %cst_14 = arith.constant dense<0.000000e+00> : vector<128xf32>
      %15 = vector.multi_reduction <add>, %12, %cst_14 [0] : vector<16x128xf32> to vector<128xf32>
      %16 = vector.shape_cast %15 : vector<128xf32> to vector<1x128xf32>
      %17 = arith.mulf %12, %12 : vector<16x128xf32>
      %cst_15 = arith.constant dense<0.000000e+00> : vector<128xf32>
      %18 = vector.multi_reduction <add>, %17, %cst_15 [0] : vector<16x128xf32> to vector<128xf32>
      %19 = vector.shape_cast %18 : vector<128xf32> to vector<1x128xf32>
      %20 = tpu.concatenate %16, %19 in 0 : vector<1x128xf32>, vector<1x128xf32> -> vector<2x128xf32>
      %21 = vector.shape_cast %20 : vector<2x128xf32> to vector<1x2x128xf32>
      %c0_16 = arith.constant 0 : index
      %c0_17 = arith.constant 0 : index
      %c0_18 = arith.constant 0 : index
      %22 = vector.load %arg6[%c0_16, %c0_17, %c0_18] : memref<1x2x128xf32, #tpu.memory_space<vmem>>, vector<1x2x128xf32>
      tpu.vector_store %arg6[%c0_16, %c0_17, %c0_18], %21 {strides = array<i32>} : memref<1x2x128xf32, #tpu.memory_space<vmem>>, vector<1x2x128xf32>,
    } else {
    }
    return
  }
  func.func @transform_0(%arg0: i32, %arg1: i32, %arg2: i32) -> (i32, i32) {
    %c0_i32 = arith.constant 0 : i32
    return %arg0, %arg2 : i32, i32
  }
  func.func @transform_1(%arg0: i32, %arg1: i32, %arg2: i32) -> (i32, i32) {
    %c0_i32 = arith.constant 0 : i32
    return %arg2, %arg1 : i32, i32
  }
  func.func @transform_2(%arg0: i32, %arg1: i32, %arg2: i32) -> (i32, i32) {
    %c0_i32 = arith.constant 0 : i32
    return %arg0, %arg1 : i32, i32
  }
  func.func @transform_3(%arg0: i32, %arg1: i32, %arg2: i32) -> (i32, i32, i32) {
    %c0_i32 = arith.constant 0 : i32
    %c0_i32_0 = arith.constant 0 : i32
    return %arg0, %c0_i32, %arg1 : i32, i32, i32
  }
}

module attributes {stable_mosaic.version = 11 : i64} {
  func.func @_conv_mm_kernel(%arg0: i32, %arg1: i32, %arg2: i32, %arg3: memref<16x384xbf16, #tpu.memory_space<vmem>>, %arg4: memref<384x128xbf16, #tpu.memory_space<vmem>>, %arg5: memref<16x128xbf16, #tpu.memory_space<vmem>>, %arg6: memref<1x2x128xf32, #tpu.memory_space<vmem>>, %arg7: memref<16x128xf32, #tpu.memory_space<vmem>>) attributes {dimension_semantics = [#tpu.dimension_semantics<parallel>, #tpu.dimension_semantics<parallel>, #tpu.dimension_semantics<arbitrary>], iteration_bounds = array<i64: 1, 1, 1>, scalar_prefetch = 0 : i64, scratch_operands = 1 : i64, tpu.core_type = #tpu.core_type<tc>, window_params = [{transform_indices = @transform_0, window_bounds = array<i64: 16, 384>}, {transform_indices = @transform_1, window_bounds = array<i64: 384, 128>}, {transform_indices = @transform_2, window_bounds = array<i64: 16, 128>}, {transform_indices = @transform_3, window_bounds = array<i64: 1, 2, 128>}]} {
    %c0_i32 = arith.constant 0 : i32
    %0 = arith.cmpi eq, %arg2, %c0_i32 : i32
    %1 = arith.extui %0 : i1 to i32
    %c0_i32_0 = arith.constant 0 : i32
    %2 = arith.cmpi ne, %1, %c0_i32_0 : i32
    scf.if %2 {
      %cst_10 = arith.constant 0.000000e+00 : f32
      %12 = vector.broadcast %cst_10 : f32 to vector<16x128xf32>
      %c0_11 = arith.constant 0 : index
      %c0_12 = arith.constant 0 : index
      %13 = vector.load %arg7[%c0_11, %c0_12] : memref<16x128xf32, #tpu.memory_space<vmem>>, vector<16x128xf32>
      tpu.vector_store %arg7[%c0_11, %c0_12], %12 {strides = array<i32>} : memref<16x128xf32, #tpu.memory_space<vmem>>, vector<16x128xf32>,
    } else {
    }
    %c0 = arith.constant 0 : index
    %c0_1 = arith.constant 0 : index
    %3 = vector.load %arg7[%c0, %c0_1] : memref<16x128xf32, #tpu.memory_space<vmem>>, vector<16x128xf32>
    %c0_2 = arith.constant 0 : index
    %c0_3 = arith.constant 0 : index
    %4 = vector.load %arg3[%c0_2, %c0_3] : memref<16x384xbf16, #tpu.memory_space<vmem>>, vector<16x384xbf16>
    %c0_4 = arith.constant 0 : index
    %c0_5 = arith.constant 0 : index
    %5 = vector.load %arg4[%c0_4, %c0_5] : memref<384x128xbf16, #tpu.memory_space<vmem>>, vector<384x128xbf16>
    %cst = arith.constant dense<0.000000e+00> : vector<16x128xf32>
    %6 = tpu.matmul %4, %5, %cst {dimension_numbers = #tpu.dot_dimension_numbers<[1], [0], [0], [1], [0, 0, 1, 1], [], []>} : vector<16x384xbf16>, vector<384x128xbf16>, vector<16x128xf32> -> vector<16x128xf32>
    %7 = arith.addf %3, %6 : vector<16x128xf32>
    %c0_6 = arith.constant 0 : index
    %c0_7 = arith.constant 0 : index
    %8 = vector.load %arg7[%c0_6, %c0_7] : memref<16x128xf32, #tpu.memory_space<vmem>>, vector<16x128xf32>
    tpu.vector_store %arg7[%c0_6, %c0_7], %7 {strides = array<i32>} : memref<16x128xf32, #tpu.memory_space<vmem>>, vector<16x128xf32>,
    %c0_i32_8 = arith.constant 0 : i32
    %9 = arith.cmpi eq, %arg2, %c0_i32_8 : i32
    %10 = arith.extui %9 : i1 to i32
    %c0_i32_9 = arith.constant 0 : i32
    %11 = arith.cmpi ne, %10, %c0_i32_9 : i32
    scf.if %11 {
      %c0_10 = arith.constant 0 : index
      %c0_11 = arith.constant 0 : index
      %12 = vector.load %arg7[%c0_10, %c0_11] : memref<16x128xf32, #tpu.memory_space<vmem>>, vector<16x128xf32>
      %13 = arith.truncf %12 : vector<16x128xf32> to vector<16x128xbf16>
      %c0_12 = arith.constant 0 : index
      %c0_13 = arith.constant 0 : index
      %14 = vector.load %arg5[%c0_12, %c0_13] : memref<16x128xbf16, #tpu.memory_space<vmem>>, vector<16x128xbf16>
      tpu.vector_store %arg5[%c0_12, %c0_13], %13 {strides = array<i32>} : memref<16x128xbf16, #tpu.memory_space<vmem>>, vector<16x128xbf16>,
      %cst_14 = arith.constant dense<0.000000e+00> : vector<128xf32>
      %15 = vector.multi_reduction <add>, %12, %cst_14 [0] : vector<16x128xf32> to vector<128xf32>
      %16 = vector.shape_cast %15 : vector<128xf32> to vector<1x128xf32>
      %17 = arith.mulf %12, %12 : vector<16x128xf32>
      %cst_15 = arith.constant dense<0.000000e+00> : vector<128xf32>
      %18 = vector.multi_reduction <add>, %17, %cst_15 [0] : vector<16x128xf32> to vector<128xf32>
      %19 = vector.shape_cast %18 : vector<128xf32> to vector<1x128xf32>
      %20 = tpu.concatenate %16, %19 in 0 : vector<1x128xf32>, vector<1x128xf32> -> vector<2x128xf32>
      %21 = vector.shape_cast %20 : vector<2x128xf32> to vector<1x2x128xf32>
      %c0_16 = arith.constant 0 : index
      %c0_17 = arith.constant 0 : index
      %c0_18 = arith.constant 0 : index
      %22 = vector.load %arg6[%c0_16, %c0_17, %c0_18] : memref<1x2x128xf32, #tpu.memory_space<vmem>>, vector<1x2x128xf32>
      tpu.vector_store %arg6[%c0_16, %c0_17, %c0_18], %21 {strides = array<i32>} : memref<1x2x128xf32, #tpu.memory_space<vmem>>, vector<1x2x128xf32>,
    } else {
    }
    return
  }
  func.func @transform_0(%arg0: i32, %arg1: i32, %arg2: i32) -> (i32, i32) {
    %c0_i32 = arith.constant 0 : i32
    return %arg0, %arg2 : i32, i32
  }
  func.func @transform_1(%arg0: i32, %arg1: i32, %arg2: i32) -> (i32, i32) {
    %c0_i32 = arith.constant 0 : i32
    return %arg2, %arg1 : i32, i32
  }
  func.func @transform_2(%arg0: i32, %arg1: i32, %arg2: i32) -> (i32, i32) {
    %c0_i32 = arith.constant 0 : i32
    return %arg0, %arg1 : i32, i32
  }
  func.func @transform_3(%arg0: i32, %arg1: i32, %arg2: i32) -> (i32, i32, i32) {
    %c0_i32 = arith.constant 0 : i32
    %c0_i32_0 = arith.constant 0 : i32
    return %arg0, %c0_i32, %arg1 : i32, i32, i32
  }
}

module attributes {stable_mosaic.version = 11 : i64} {
  func.func @_bn_add_relu_kernel(%arg0: i32, %arg1: memref<2x128xbf16, #tpu.memory_space<vmem>>, %arg2: memref<1x128xf32, #tpu.memory_space<vmem>>, %arg3: memref<1x128xf32, #tpu.memory_space<vmem>>, %arg4: memref<2x128xbf16, #tpu.memory_space<vmem>>, %arg5: memref<1x128xf32, #tpu.memory_space<vmem>>, %arg6: memref<1x128xf32, #tpu.memory_space<vmem>>, %arg7: memref<2x128xbf16, #tpu.memory_space<vmem>>) attributes {dimension_semantics = [#tpu.dimension_semantics<parallel>], iteration_bounds = array<i64: 1>, scalar_prefetch = 0 : i64, scratch_operands = 0 : i64, tpu.core_type = #tpu.core_type<tc>, window_params = [{transform_indices = @transform_0, window_bounds = array<i64: 2, 128>}, {pipeline_mode = #tpu.pipeline_mode<synchronous>, transform_indices = @transform_1, window_bounds = array<i64: 1, 128>}, {pipeline_mode = #tpu.pipeline_mode<synchronous>, transform_indices = @transform_2, window_bounds = array<i64: 1, 128>}, {transform_indices = @transform_3, window_bounds = array<i64: 2, 128>}, {pipeline_mode = #tpu.pipeline_mode<synchronous>, transform_indices = @transform_4, window_bounds = array<i64: 1, 128>}, {pipeline_mode = #tpu.pipeline_mode<synchronous>, transform_indices = @transform_5, window_bounds = array<i64: 1, 128>}, {transform_indices = @transform_6, window_bounds = array<i64: 2, 128>}]} {
    %c0 = arith.constant 0 : index
    %c0_0 = arith.constant 0 : index
    %0 = vector.load %arg1[%c0, %c0_0] : memref<2x128xbf16, #tpu.memory_space<vmem>>, vector<2x128xbf16>
    %1 = arith.extf %0 : vector<2x128xbf16> to vector<2x128xf32>
    %c0_1 = arith.constant 0 : index
    %c0_2 = arith.constant 0 : index
    %2 = vector.load %arg2[%c0_1, %c0_2] : memref<1x128xf32, #tpu.memory_space<vmem>>, vector<1x128xf32>
    %3 = vector.broadcast %2 : vector<1x128xf32> to vector<2x128xf32>
    %4 = arith.mulf %1, %3 : vector<2x128xf32>
    %c0_3 = arith.constant 0 : index
    %c0_4 = arith.constant 0 : index
    %5 = vector.load %arg3[%c0_3, %c0_4] : memref<1x128xf32, #tpu.memory_space<vmem>>, vector<1x128xf32>
    %6 = vector.broadcast %5 : vector<1x128xf32> to vector<2x128xf32>
    %7 = arith.addf %4, %6 : vector<2x128xf32>
    %c0_5 = arith.constant 0 : index
    %c0_6 = arith.constant 0 : index
    %8 = vector.load %arg4[%c0_5, %c0_6] : memref<2x128xbf16, #tpu.memory_space<vmem>>, vector<2x128xbf16>
    %9 = arith.extf %8 : vector<2x128xbf16> to vector<2x128xf32>
    %c0_7 = arith.constant 0 : index
    %c0_8 = arith.constant 0 : index
    %10 = vector.load %arg5[%c0_7, %c0_8] : memref<1x128xf32, #tpu.memory_space<vmem>>, vector<1x128xf32>
    %11 = vector.broadcast %10 : vector<1x128xf32> to vector<2x128xf32>
    %12 = arith.mulf %9, %11 : vector<2x128xf32>
    %c0_9 = arith.constant 0 : index
    %c0_10 = arith.constant 0 : index
    %13 = vector.load %arg6[%c0_9, %c0_10] : memref<1x128xf32, #tpu.memory_space<vmem>>, vector<1x128xf32>
    %14 = vector.broadcast %13 : vector<1x128xf32> to vector<2x128xf32>
    %15 = arith.addf %12, %14 : vector<2x128xf32>
    %16 = arith.addf %7, %15 : vector<2x128xf32>
    %cst = arith.constant 0.000000e+00 : f32
    %17 = vector.broadcast %cst : f32 to vector<2x128xf32>
    %18 = arith.maximumf %16, %17 : vector<2x128xf32>
    %19 = arith.truncf %18 : vector<2x128xf32> to vector<2x128xbf16>
    %c0_11 = arith.constant 0 : index
    %c0_12 = arith.constant 0 : index
    %20 = vector.load %arg7[%c0_11, %c0_12] : memref<2x128xbf16, #tpu.memory_space<vmem>>, vector<2x128xbf16>
    tpu.vector_store %arg7[%c0_11, %c0_12], %19 {strides = array<i32>} : memref<2x128xbf16, #tpu.memory_space<vmem>>, vector<2x128xbf16>,
    return
  }
  func.func @transform_0(%arg0: i32) -> (i32, i32) {
    %c0_i32 = arith.constant 0 : i32
    %c0_i32_0 = arith.constant 0 : i32
    return %arg0, %c0_i32 : i32, i32
  }
  func.func @transform_1(%arg0: i32) -> (i32, i32) {
    %c0_i32 = arith.constant 0 : i32
    %c0_i32_0 = arith.constant 0 : i32
    %c0_i32_1 = arith.constant 0 : i32
    return %c0_i32, %c0_i32_0 : i32, i32
  }
  func.func @transform_2(%arg0: i32) -> (i32, i32) {
    %c0_i32 = arith.constant 0 : i32
    %c0_i32_0 = arith.constant 0 : i32
    %c0_i32_1 = arith.constant 0 : i32
    return %c0_i32, %c0_i32_0 : i32, i32
  }
  func.func @transform_3(%arg0: i32) -> (i32, i32) {
    %c0_i32 = arith.constant 0 : i32
    %c0_i32_0 = arith.constant 0 : i32
    return %arg0, %c0_i32 : i32, i32
  }
  func.func @transform_4(%arg0: i32) -> (i32, i32) {
    %c0_i32 = arith.constant 0 : i32
    %c0_i32_0 = arith.constant 0 : i32
    %c0_i32_1 = arith.constant 0 : i32
    return %c0_i32, %c0_i32_0 : i32, i32
  }
  func.func @transform_5(%arg0: i32) -> (i32, i32) {
    %c0_i32 = arith.constant 0 : i32
    %c0_i32_0 = arith.constant 0 : i32
    %c0_i32_1 = arith.constant 0 : i32
    return %c0_i32, %c0_i32_0 : i32, i32
  }
  func.func @transform_6(%arg0: i32) -> (i32, i32) {
    %c0_i32 = arith.constant 0 : i32
    %c0_i32_0 = arith.constant 0 : i32
    return %arg0, %c0_i32 : i32, i32
  }
}

module attributes {stable_mosaic.version = 11 : i64} {
  func.func @_head_kernel(%arg0: i32, %arg1: memref<8x128xf32, #tpu.memory_space<vmem>>, %arg2: memref<128x128xf32, #tpu.memory_space<vmem>>, %arg3: memref<1x128xf32, #tpu.memory_space<vmem>>, %arg4: memref<1x128xf32, #tpu.memory_space<vmem>>, %arg5: memref<1x128xf32, #tpu.memory_space<vmem>>, %arg6: memref<128x128xf32, #tpu.memory_space<vmem>>, %arg7: memref<1x128xf32, #tpu.memory_space<vmem>>, %arg8: memref<1x128xf32, #tpu.memory_space<vmem>>, %arg9: memref<1x128xf32, #tpu.memory_space<vmem>>, %arg10: memref<128x128xf32, #tpu.memory_space<vmem>>, %arg11: memref<1x128xf32, #tpu.memory_space<vmem>>, %arg12: memref<128x128xf32, #tpu.memory_space<vmem>>, %arg13: memref<1x128xf32, #tpu.memory_space<vmem>>, %arg14: memref<8x128xf32, #tpu.memory_space<vmem>>) attributes {dimension_semantics = [#tpu.dimension_semantics<arbitrary>], iteration_bounds = array<i64: 1>, scalar_prefetch = 0 : i64, scratch_operands = 0 : i64, tpu.core_type = #tpu.core_type<tc>, window_params = [{pipeline_mode = #tpu.pipeline_mode<synchronous>, transform_indices = @transform_0, window_bounds = array<i64: 8, 128>}, {pipeline_mode = #tpu.pipeline_mode<synchronous>, transform_indices = @transform_1, window_bounds = array<i64: 128, 128>}, {pipeline_mode = #tpu.pipeline_mode<synchronous>, transform_indices = @transform_2, window_bounds = array<i64: 1, 128>}, {pipeline_mode = #tpu.pipeline_mode<synchronous>, transform_indices = @transform_3, window_bounds = array<i64: 1, 128>}, {pipeline_mode = #tpu.pipeline_mode<synchronous>, transform_indices = @transform_4, window_bounds = array<i64: 1, 128>}, {pipeline_mode = #tpu.pipeline_mode<synchronous>, transform_indices = @transform_5, window_bounds = array<i64: 128, 128>}, {pipeline_mode = #tpu.pipeline_mode<synchronous>, transform_indices = @transform_6, window_bounds = array<i64: 1, 128>}, {pipeline_mode = #tpu.pipeline_mode<synchronous>, transform_indices = @transform_7, window_bounds = array<i64: 1, 128>}, {pipeline_mode = #tpu.pipeline_mode<synchronous>, transform_indices = @transform_8, window_bounds = array<i64: 1, 128>}, {pipeline_mode = #tpu.pipeline_mode<synchronous>, transform_indices = @transform_9, window_bounds = array<i64: 128, 128>}, {pipeline_mode = #tpu.pipeline_mode<synchronous>, transform_indices = @transform_10, window_bounds = array<i64: 1, 128>}, {pipeline_mode = #tpu.pipeline_mode<synchronous>, transform_indices = @transform_11, window_bounds = array<i64: 128, 128>}, {pipeline_mode = #tpu.pipeline_mode<synchronous>, transform_indices = @transform_12, window_bounds = array<i64: 1, 128>}, {pipeline_mode = #tpu.pipeline_mode<synchronous>, transform_indices = @transform_13, window_bounds = array<i64: 8, 128>}]} {
    %c0 = arith.constant 0 : index
    %c0_0 = arith.constant 0 : index
    %0 = vector.load %arg1[%c0, %c0_0] : memref<8x128xf32, #tpu.memory_space<vmem>>, vector<8x128xf32>
    %1 = tpu.iota {dimensions = array<i32: 0>} : vector<8x1xi32>
    %c2_i32 = arith.constant 2 : i32
    %2 = vector.broadcast %c2_i32 : i32 to vector<8x1xi32>
    %3 = arith.cmpi slt, %1, %2 : vector<8x1xi32>
    %4 = arith.extui %3 : vector<8x1xi1> to vector<8x1xi32>
    %5 = arith.sitofp %4 : vector<8x1xi32> to vector<8x1xf32>
    %c0_1 = arith.constant 0 : index
    %c0_2 = arith.constant 0 : index
    %6 = vector.load %arg2[%c0_1, %c0_2] : memref<128x128xf32, #tpu.memory_space<vmem>>, vector<128x128xf32>
    %cst = arith.constant dense<0.000000e+00> : vector<8x128xf32>
    %7 = tpu.matmul %0, %6, %cst {dimension_numbers = #tpu.dot_dimension_numbers<[1], [0], [0], [1], [0, 0, 1, 1], [], []>} : vector<8x128xf32>, vector<128x128xf32>, vector<8x128xf32> -> vector<8x128xf32>
    %c0_3 = arith.constant 0 : index
    %c0_4 = arith.constant 0 : index
    %8 = vector.load %arg3[%c0_3, %c0_4] : memref<1x128xf32, #tpu.memory_space<vmem>>, vector<1x128xf32>
    %9 = vector.broadcast %8 : vector<1x128xf32> to vector<8x128xf32>
    %10 = arith.addf %7, %9 : vector<8x128xf32>
    %c0_5 = arith.constant 0 : index
    %c0_6 = arith.constant 0 : index
    %11 = vector.load %arg4[%c0_5, %c0_6] : memref<1x128xf32, #tpu.memory_space<vmem>>, vector<1x128xf32>
    %c0_7 = arith.constant 0 : index
    %c0_8 = arith.constant 0 : index
    %12 = vector.load %arg5[%c0_7, %c0_8] : memref<1x128xf32, #tpu.memory_space<vmem>>, vector<1x128xf32>
    %13 = vector.broadcast %5 : vector<8x1xf32> to vector<8x128xf32>
    %14 = arith.mulf %10, %13 : vector<8x128xf32>
    %cst_9 = arith.constant dense<0.000000e+00> : vector<128xf32>
    %15 = vector.multi_reduction <add>, %14, %cst_9 [0] : vector<8x128xf32> to vector<128xf32>
    %16 = vector.shape_cast %15 : vector<128xf32> to vector<1x128xf32>
    %cst_10 = arith.constant 5.000000e-01 : f32
    %17 = vector.broadcast %cst_10 : f32 to vector<1x128xf32>
    %18 = arith.mulf %16, %17 : vector<1x128xf32>
    %19 = arith.mulf %14, %14 : vector<8x128xf32>
    %cst_11 = arith.constant dense<0.000000e+00> : vector<128xf32>
    %20 = vector.multi_reduction <add>, %19, %cst_11 [0] : vector<8x128xf32> to vector<128xf32>
    %21 = vector.shape_cast %20 : vector<128xf32> to vector<1x128xf32>
    %cst_12 = arith.constant 5.000000e-01 : f32
    %22 = vector.broadcast %cst_12 : f32 to vector<1x128xf32>
    %23 = arith.mulf %21, %22 : vector<1x128xf32>
    %24 = arith.mulf %18, %18 : vector<1x128xf32>
    %25 = arith.subf %23, %24 : vector<1x128xf32>
    %cst_13 = arith.constant 0.000000e+00 : f32
    %26 = vector.broadcast %cst_13 : f32 to vector<1x128xf32>
    %27 = arith.maximumf %25, %26 : vector<1x128xf32>
    %28 = vector.broadcast %18 : vector<1x128xf32> to vector<8x128xf32>
    %29 = arith.subf %14, %28 : vector<8x128xf32>
    %cst_14 = arith.constant 9.99999974E-6 : f32
    %30 = vector.broadcast %cst_14 : f32 to vector<1x128xf32>
    %31 = arith.addf %27, %30 : vector<1x128xf32>
    %32 = math.rsqrt %31 : vector<1x128xf32>
    %33 = arith.mulf %11, %32 : vector<1x128xf32>
    %34 = vector.broadcast %33 : vector<1x128xf32> to vector<8x128xf32>
    %35 = arith.mulf %29, %34 : vector<8x128xf32>
    %36 = vector.broadcast %12 : vector<1x128xf32> to vector<8x128xf32>
    %37 = arith.addf %35, %36 : vector<8x128xf32>
    %c0_15 = arith.constant 0 : index
    %c0_16 = arith.constant 0 : index
    %38 = vector.load %arg6[%c0_15, %c0_16] : memref<128x128xf32, #tpu.memory_space<vmem>>, vector<128x128xf32>
    %cst_17 = arith.constant dense<0.000000e+00> : vector<8x128xf32>
    %39 = tpu.matmul %37, %38, %cst_17 {dimension_numbers = #tpu.dot_dimension_numbers<[1], [0], [0], [1], [0, 0, 1, 1], [], []>} : vector<8x128xf32>, vector<128x128xf32>, vector<8x128xf32> -> vector<8x128xf32>
    %c0_18 = arith.constant 0 : index
    %c0_19 = arith.constant 0 : index
    %40 = vector.load %arg7[%c0_18, %c0_19] : memref<1x128xf32, #tpu.memory_space<vmem>>, vector<1x128xf32>
    %41 = vector.broadcast %40 : vector<1x128xf32> to vector<8x128xf32>
    %42 = arith.addf %39, %41 : vector<8x128xf32>
    %cst_20 = arith.constant 0.000000e+00 : f32
    %43 = vector.broadcast %cst_20 : f32 to vector<8x128xf32>
    %44 = arith.maximumf %42, %43 : vector<8x128xf32>
    %c0_21 = arith.constant 0 : index
    %c0_22 = arith.constant 0 : index
    %45 = vector.load %arg8[%c0_21, %c0_22] : memref<1x128xf32, #tpu.memory_space<vmem>>, vector<1x128xf32>
    %c0_23 = arith.constant 0 : index
    %c0_24 = arith.constant 0 : index
    %46 = vector.load %arg9[%c0_23, %c0_24] : memref<1x128xf32, #tpu.memory_space<vmem>>, vector<1x128xf32>
    %47 = vector.broadcast %5 : vector<8x1xf32> to vector<8x128xf32>
    %48 = arith.mulf %44, %47 : vector<8x128xf32>
    %cst_25 = arith.constant dense<0.000000e+00> : vector<128xf32>
    %49 = vector.multi_reduction <add>, %48, %cst_25 [0] : vector<8x128xf32> to vector<128xf32>
    %50 = vector.shape_cast %49 : vector<128xf32> to vector<1x128xf32>
    %cst_26 = arith.constant 5.000000e-01 : f32
    %51 = vector.broadcast %cst_26 : f32 to vector<1x128xf32>
    %52 = arith.mulf %50, %51 : vector<1x128xf32>
    %53 = arith.mulf %48, %48 : vector<8x128xf32>
    %cst_27 = arith.constant dense<0.000000e+00> : vector<128xf32>
    %54 = vector.multi_reduction <add>, %53, %cst_27 [0] : vector<8x128xf32> to vector<128xf32>
    %55 = vector.shape_cast %54 : vector<128xf32> to vector<1x128xf32>
    %cst_28 = arith.constant 5.000000e-01 : f32
    %56 = vector.broadcast %cst_28 : f32 to vector<1x128xf32>
    %57 = arith.mulf %55, %56 : vector<1x128xf32>
    %58 = arith.mulf %52, %52 : vector<1x128xf32>
    %59 = arith.subf %57, %58 : vector<1x128xf32>
    %cst_29 = arith.constant 0.000000e+00 : f32
    %60 = vector.broadcast %cst_29 : f32 to vector<1x128xf32>
    %61 = arith.maximumf %59, %60 : vector<1x128xf32>
    %62 = vector.broadcast %52 : vector<1x128xf32> to vector<8x128xf32>
    %63 = arith.subf %48, %62 : vector<8x128xf32>
    %cst_30 = arith.constant 9.99999974E-6 : f32
    %64 = vector.broadcast %cst_30 : f32 to vector<1x128xf32>
    %65 = arith.addf %61, %64 : vector<1x128xf32>
    %66 = math.rsqrt %65 : vector<1x128xf32>
    %67 = arith.mulf %45, %66 : vector<1x128xf32>
    %68 = vector.broadcast %67 : vector<1x128xf32> to vector<8x128xf32>
    %69 = arith.mulf %63, %68 : vector<8x128xf32>
    %70 = vector.broadcast %46 : vector<1x128xf32> to vector<8x128xf32>
    %71 = arith.addf %69, %70 : vector<8x128xf32>
    %c0_31 = arith.constant 0 : index
    %c0_32 = arith.constant 0 : index
    %72 = vector.load %arg10[%c0_31, %c0_32] : memref<128x128xf32, #tpu.memory_space<vmem>>, vector<128x128xf32>
    %cst_33 = arith.constant dense<0.000000e+00> : vector<8x128xf32>
    %73 = tpu.matmul %71, %72, %cst_33 {dimension_numbers = #tpu.dot_dimension_numbers<[1], [0], [0], [1], [0, 0, 1, 1], [], []>} : vector<8x128xf32>, vector<128x128xf32>, vector<8x128xf32> -> vector<8x128xf32>
    %c0_34 = arith.constant 0 : index
    %c0_35 = arith.constant 0 : index
    %74 = vector.load %arg11[%c0_34, %c0_35] : memref<1x128xf32, #tpu.memory_space<vmem>>, vector<1x128xf32>
    %75 = vector.broadcast %74 : vector<1x128xf32> to vector<8x128xf32>
    %76 = arith.addf %73, %75 : vector<8x128xf32>
    %cst_36 = arith.constant 0.000000e+00 : f32
    %77 = vector.broadcast %cst_36 : f32 to vector<8x128xf32>
    %78 = arith.maximumf %76, %77 : vector<8x128xf32>
    %c0_37 = arith.constant 0 : index
    %c0_38 = arith.constant 0 : index
    %79 = vector.load %arg12[%c0_37, %c0_38] : memref<128x128xf32, #tpu.memory_space<vmem>>, vector<128x128xf32>
    %cst_39 = arith.constant dense<0.000000e+00> : vector<8x128xf32>
    %80 = tpu.matmul %78, %79, %cst_39 {dimension_numbers = #tpu.dot_dimension_numbers<[1], [0], [0], [1], [0, 0, 1, 1], [], []>} : vector<8x128xf32>, vector<128x128xf32>, vector<8x128xf32> -> vector<8x128xf32>
    %c0_40 = arith.constant 0 : index
    %c0_41 = arith.constant 0 : index
    %81 = vector.load %arg13[%c0_40, %c0_41] : memref<1x128xf32, #tpu.memory_space<vmem>>, vector<1x128xf32>
    %82 = vector.broadcast %81 : vector<1x128xf32> to vector<8x128xf32>
    %83 = arith.addf %80, %82 : vector<8x128xf32>
    %c0_42 = arith.constant 0 : index
    %c0_43 = arith.constant 0 : index
    %84 = vector.load %arg14[%c0_42, %c0_43] : memref<8x128xf32, #tpu.memory_space<vmem>>, vector<8x128xf32>
    tpu.vector_store %arg14[%c0_42, %c0_43], %83 {strides = array<i32>} : memref<8x128xf32, #tpu.memory_space<vmem>>, vector<8x128xf32>,
    return
  }
  func.func @transform_0(%arg0: i32) -> (i32, i32) {
    %c0_i32 = arith.constant 0 : i32
    %c0_i32_0 = arith.constant 0 : i32
    %c0_i32_1 = arith.constant 0 : i32
    return %c0_i32, %c0_i32_0 : i32, i32
  }
  func.func @transform_1(%arg0: i32) -> (i32, i32) {
    %c0_i32 = arith.constant 0 : i32
    %c0_i32_0 = arith.constant 0 : i32
    %c0_i32_1 = arith.constant 0 : i32
    return %c0_i32, %c0_i32_0 : i32, i32
  }
  func.func @transform_2(%arg0: i32) -> (i32, i32) {
    %c0_i32 = arith.constant 0 : i32
    %c0_i32_0 = arith.constant 0 : i32
    %c0_i32_1 = arith.constant 0 : i32
    return %c0_i32, %c0_i32_0 : i32, i32
  }
  func.func @transform_3(%arg0: i32) -> (i32, i32) {
    %c0_i32 = arith.constant 0 : i32
    %c0_i32_0 = arith.constant 0 : i32
    %c0_i32_1 = arith.constant 0 : i32
    return %c0_i32, %c0_i32_0 : i32, i32
  }
  func.func @transform_4(%arg0: i32) -> (i32, i32) {
    %c0_i32 = arith.constant 0 : i32
    %c0_i32_0 = arith.constant 0 : i32
    %c0_i32_1 = arith.constant 0 : i32
    return %c0_i32, %c0_i32_0 : i32, i32
  }
  func.func @transform_5(%arg0: i32) -> (i32, i32) {
    %c0_i32 = arith.constant 0 : i32
    %c0_i32_0 = arith.constant 0 : i32
    %c0_i32_1 = arith.constant 0 : i32
    return %c0_i32, %c0_i32_0 : i32, i32
  }
  func.func @transform_6(%arg0: i32) -> (i32, i32) {
    %c0_i32 = arith.constant 0 : i32
    %c0_i32_0 = arith.constant 0 : i32
    %c0_i32_1 = arith.constant 0 : i32
    return %c0_i32, %c0_i32_0 : i32, i32
  }
  func.func @transform_7(%arg0: i32) -> (i32, i32) {
    %c0_i32 = arith.constant 0 : i32
    %c0_i32_0 = arith.constant 0 : i32
    %c0_i32_1 = arith.constant 0 : i32
    return %c0_i32, %c0_i32_0 : i32, i32
  }
  func.func @transform_8(%arg0: i32) -> (i32, i32) {
    %c0_i32 = arith.constant 0 : i32
    %c0_i32_0 = arith.constant 0 : i32
    %c0_i32_1 = arith.constant 0 : i32
    return %c0_i32, %c0_i32_0 : i32, i32
  }
  func.func @transform_9(%arg0: i32) -> (i32, i32) {
    %c0_i32 = arith.constant 0 : i32
    %c0_i32_0 = arith.constant 0 : i32
    %c0_i32_1 = arith.constant 0 : i32
    return %c0_i32, %c0_i32_0 : i32, i32
  }
  func.func @transform_10(%arg0: i32) -> (i32, i32) {
    %c0_i32 = arith.constant 0 : i32
    %c0_i32_0 = arith.constant 0 : i32
    %c0_i32_1 = arith.constant 0 : i32
    return %c0_i32, %c0_i32_0 : i32, i32
  }
  func.func @transform_11(%arg0: i32) -> (i32, i32) {
    %c0_i32 = arith.constant 0 : i32
    %c0_i32_0 = arith.constant 0 : i32
    %c0_i32_1 = arith.constant 0 : i32
    return %c0_i32, %c0_i32_0 : i32, i32
  }
  func.func @transform_12(%arg0: i32) -> (i32, i32) {
    %c0_i32 = arith.constant 0 : i32
    %c0_i32_0 = arith.constant 0 : i32
    %c0_i32_1 = arith.constant 0 : i32
    return %c0_i32, %c0_i32_0 : i32, i32
  }
  func.func @transform_13(%arg0: i32) -> (i32, i32) {
    %c0_i32 = arith.constant 0 : i32
    %c0_i32_0 = arith.constant 0 : i32
    %c0_i32_1 = arith.constant 0 : i32
    return %c0_i32, %c0_i32_0 : i32, i32
  }
}

</mosaic_0001>

<bundles_post_ra>
// kernel: tile.173
= control target key start
LH: loop header
LB: loop body
LE: loop exit
PB: predicated region body
PF: predicated region fallthrough
CT: control target
= control target key end

     0   :  { %s28_s0 = inlined_call_operand.vmem [shape: f32[8], index: 0, kind: input, shape index: {}]   ;;  %s29_s1 = inlined_call_operand.vmem [shape: f32[16,8], index: 1, kind: output, shape index: {}]  }
   0x1   :  { %v4_v0 = vld [vmem:[%s28_s0] ss:$0 sm:$0xff] }
   0x2   :  { %5 = vst [vmem:[%s29_s1] sm:$0xff] %v4_v0  ;;  %8 = vst [vmem:[%s29_s1 + $0x8] sm:$0xff] %v4_v0 }

// kernel: tile.174
= control target key start
LH: loop header
LB: loop body
LE: loop exit
PB: predicated region body
PF: predicated region fallthrough
CT: control target
= control target key end

     0   :  { %s131_s10 = smov 120   ;;  %s132_s11 = smov 104   ;;  %vm3_vm0 = vcmask 64512   ;;  %vm9_vm1 = vcmask 1048512   ;;  %vm15_vm2 = vcmask 982912   ;;  %vm21_vm3 = vcmask 917312   ;;  %s207_s0 = inlined_call_operand.vmem [shape: f32[16,8], index: 0, kind: input, shape index: {}]   ;;  %s208_s1 = inlined_call_operand.vmem [shape: f32[1,128], index: 1, kind: output, shape index: {}]  }
   0x1   :  { %v101_v0 = vld [vmem:[%s207_s0 + $0xf] sm:$0x1]   ;;  %v103_v1 = vld [vmem:[%s207_s0 + $0xd] sm:$0x1]   ;;  %v102_v2 = vld [vmem:[%s207_s0 + $0xe] sm:$0x1]  }
   0x2   :  { %7 = vrot.lane.b32.xlu0 %v101_v0, %s131_s10  ;;  %19 = vrot.lane.b32.xlu1 %v103_v1, %s132_s11  ;;  %v104_v3 = vld [vmem:[%s207_s0 + $0xc] sm:$0x1]   ;;  %s133_s16 = smov 112   ;;  %s134_s17 = smov 96   ;;  %v105_v4 = vld [vmem:[%s207_s0 + $0xb] sm:$0x1]  }
   0x3   :  { %v106_v5 = vld [vmem:[%s207_s0 + $0xa] sm:$0x1]   ;;  %v2_v6 = vld [vmem:[%s207_s0] sm:$0x1]   ;;  %s135_s24 = smov 88   ;;  %s136_s25 = smov 80  }
   0x4   :  { %4 = vst.msk [vmem:[#allocation0] sm:$0x1] %vm3_vm0, %v2_v6   ;;  %v107_v7 = vld [vmem:[%s207_s0 + $0x9] sm:$0x1]   ;;  %v108_v8 = vld [vmem:[%s207_s0 + $0x8] sm:$0x1]  }
   0x5   :  { %s137_s30 = smov 72   ;;  %s138_s2 = smov 64   ;;  %v109_v9 = vld [vmem:[%s207_s0 + $0x7] sm:$0x1]   ;;  %v110_v10 = vld [vmem:[%s207_s0 + $0x6] sm:$0x1]  }
   0x6   :  { %13 = vrot.lane.b32.xlu0 %v102_v2, %s133_s16  ;;  %25 = vrot.lane.b32.xlu1 %v104_v3, %s134_s17  ;;  %s139_s7 = smov 56   ;;  %s140_s8 = smov 48   ;;  %v111_v11 = vld [vmem:[%s207_s0 + $0x5] sm:$0x1]   ;;  %v112_v12 = vld [vmem:[%s207_s0 + $0x4] sm:$0x1]  }
   0x7   :  { %s141_s13 = smov 40   ;;  %s142_s14 = smov 32   ;;  %v113_v13 = vld [vmem:[%s207_s0 + $0x3] sm:$0x1]   ;;  %v114_v14 = vld [vmem:[%s207_s0 + $0x2] sm:$0x1]  }
   0x8   :  { %s143_s19 = smov 24   ;;  %s144_s20 = smov 16   ;;  %v115_v15 = vld [vmem:[%s207_s0 + $0x1] sm:$0x1]   ;;  %vm27_vm4 = vcmask 851712   ;;  %vm33_vm5 = vcmask 786112  }
   0x9   :  { %s145_s0 = smov 8   ;;  %vm39_vm6 = vcmask 720512   ;;  %vm45_vm7 = vcmask 654912   ;;  %vm51_vm8 = vcmask 589312   ;;  %vm57_vm9 = vcmask 523712  }
   0xa   :  { %31 = vrot.lane.b32.xlu0 %v105_v4, %s135_s24  ;;  %37 = vrot.lane.b32.xlu1 %v106_v5, %s136_s25  ;;  %vm63_vm10 = vcmask 458112   ;;  %vm69_vm11 = vcmask 392512   ;;  %vm75_vm12 = vcmask 326912   ;;  %vm81_vm13 = vcmask 261312  }
   0xb   :  { %vm87_vm14 = vcmask 195712   ;;  %vm93_vm15 = vcmask 130112  }
   0xe   :  { %43 = vrot.lane.b32.xlu0 %v107_v7, %s137_s30  ;;  %49 = vrot.lane.b32.xlu1 %v108_v8, %s138_s2 }
  0x12   :  { %55 = vrot.lane.b32.xlu0 %v109_v9, %s139_s7  ;;  %61 = vrot.lane.b32.xlu1 %v110_v10, %s140_s8 }
  0x16   :  { %67 = vrot.lane.b32.xlu0 %v111_v11, %s141_s13  ;;  %73 = vrot.lane.b32.xlu1 %v112_v12, %s142_s14 }
  0x1a   :  { %79 = vrot.lane.b32.xlu0 %v113_v13, %s143_s19  ;;  %85 = vrot.lane.b32.xlu1 %v114_v14, %s144_s20 }
  0x1e   :  { %91 = vrot.lane.b32.xlu0 %v115_v15, %s145_s0 }
  0x74   :  { %v8_v16 = vpop.permute.xlu0 %7   ;;  %v20_v17 = vpop.permute.xlu1 %19  }
  0x75   :  { %10 = vst.msk [vmem:[#allocation0] sm:$0x1] %vm9_vm1, %v8_v16  }
  0x78   :  { %v14_v18 = vpop.permute.xlu0 %13   ;;  %v26_v19 = vpop.permute.xlu1 %25  }
  0x79   :  { %16 = vst.msk [vmem:[#allocation0] sm:$0x1] %vm15_vm2, %v14_v18  }
  0x7a   :  { %22 = vst.msk [vmem:[#allocation0] sm:$0x1] %vm21_vm3, %v20_v17  }
  0x7b   :  { %28 = vst.msk [vmem:[#allocation0] sm:$0x1] %vm27_vm4, %v26_v19  }
  0x7c   :  { %v32_v20 = vpop.permute.xlu0 %31   ;;  %v38_v21 = vpop.permute.xlu1 %37  }
  0x7d   :  { %34 = vst.msk [vmem:[#allocation0] sm:$0x1] %vm33_vm5, %v32_v20  }
  0x7e   :  { %40 = vst.msk [vmem:[#allocation0] sm:$0x1] %vm39_vm6, %v38_v21  }
  0x80   :  { %v44_v22 = vpop.permute.xlu0 %43   ;;  %v50_v23 = vpop.permute.xlu1 %49  }
  0x81   :  { %46 = vst.msk [vmem:[#allocation0] sm:$0x1] %vm45_vm7, %v44_v22  }
  0x82   :  { %52 = vst.msk [vmem:[#allocation0] sm:$0x1] %vm51_vm8, %v50_v23  }
  0x84   :  { %v56_v24 = vpop.permute.xlu0 %55   ;;  %v62_v25 = vpop.permute.xlu1 %61  }
  0x85   :  { %58 = vst.msk [vmem:[#allocation0] sm:$0x1] %vm57_vm9, %v56_v24  }
  0x86   :  { %64 = vst.msk [vmem:[#allocation0] sm:$0x1] %vm63_vm10, %v62_v25  }
  0x88   :  { %v68_v26 = vpop.permute.xlu0 %67   ;;  %v74_v27 = vpop.permute.xlu1 %73  }
  0x89   :  { %70 = vst.msk [vmem:[#allocation0] sm:$0x1] %vm69_vm11, %v68_v26  }
  0x8a   :  { %76 = vst.msk [vmem:[#allocation0] sm:$0x1] %vm75_vm12, %v74_v27  }
  0x8c   :  { %v80_v28 = vpop.permute.xlu0 %79   ;;  %v86_v29 = vpop.permute.xlu1 %85  }
  0x8d   :  { %82 = vst.msk [vmem:[#allocation0] sm:$0x1] %vm81_vm13, %v80_v28  }
  0x8e   :  { %88 = vst.msk [vmem:[#allocation0] sm:$0x1] %vm87_vm14, %v86_v29  }
  0x90   :  { %v92_v30 = vpop.permute.xlu0 %91  }
  0x91   :  { %94 = vst.msk [vmem:[#allocation0] sm:$0x1] %vm93_vm15, %v92_v30  }
  0x98   :  { %v98_v31 = vld [vmem:[#allocation0] sm:$0x1] }
  0x99   :  { %100 = vst [vmem:[%s208_s1] sm:$0x1] %v98_v31 }

// kernel: _lambda_.34
= control target key start
LH: loop header
LB: loop body
LE: loop exit
PB: predicated region body
PF: predicated region fallthrough
CT: control target
= control target key end

     0   :  { %s73_s0 = inlined_call_operand.vmem [shape: bf16[8,128], index: 0, kind: input, shape index: {}]   ;;  %s74_s1 = inlined_call_operand.vmem [shape: f32[1,128], index: 1, kind: input, shape index: {}]   ;;  %s75_s2 = inlined_call_operand.vmem [shape: f32[1,128], index: 2, kind: input, shape index: {}]   ;;  %s76_s3 = inlined_call_operand.vmem [shape: bf16[8,128], index: 3, kind: output, shape index: {}]  }
   0x1   :  { %v14_v0 = vld [vmem:[%s73_s0] sm:$0xf] }
   0x2   :  { %v39_v1 = vld [vmem:[%s74_s1] ss:$0 sm:$0xff]  ;;  %v15_v2 = vunpack.c.l.bf16 %v14_v0 }
   0x3   :  { %v40_v3 = vld [vmem:[%s75_s2] ss:$0 sm:$0xff] }
   0x4   :  { %v23_v4 = vmul.f32 %v39_v1, %v15_v2 }
   0x6   :  { %v31_v5 = vadd.f32 %v40_v3, %v23_v4 }
   0x8   :  { %v32_v6 = vmax.f32 %v31_v5, 0.0 }
   0xa   :  { %v33_v7 = vpack.c.bf16 %v32_v6, %v32_v6 }
   0xc   :  { %34 = vst [vmem:[%s76_s3] sm:$0xf] %v33_v7 }

// kernel: _lambda_.33
= control target key start
LH: loop header
LB: loop body
LE: loop exit
PB: predicated region body
PF: predicated region fallthrough
CT: control target
= control target key end

     0   :  { %s1011_s12 = smov 0   ;;  %s1013_s13 = smov 0   ;;  %s1120_s0 = inlined_call_operand.vmem [shape: bf16[128,256], index: 0, kind: input, shape index: {}]   ;;  %s1121_s1 = inlined_call_operand.vmem [shape: bf16[256,128], index: 1, kind: input, shape index: {}]   ;;  %s1122_s2 = inlined_call_operand.vmem [shape: bf16[128,128], index: 2, kind: output, shape index: {0}]   ;;  %s1123_s3 = inlined_call_operand.vmem [shape: f32[2,2,128], index: 3, kind: output, shape index: {1}]  }
   0x1   :  { %s1015_s14 = smov 0  }
   0x2 LB: > { %s33_s15 = sadd.s32 1, %s985_s13  ;;  %p786_p0 = scmp.ge.s32.totalorder %s989_s14, 1  ;;  %s989_s14 = sphi %s1015_s14, %s14_s14   ;;  %s985_s13 = sphi %s1013_s13, %s1125_s13   ;;  %s981_s12 = sphi %s1011_s12, %s1124_s12  }
   0x3   : > { %p35_p1 = scmp.ge.s32.totalorder %s33_s15, 2  ;;  %p188_p2 = scmp.lt.s32.totalorder %s989_s14, 3 }
   0x5   : > { %s1127_s15 = smov (%p35_p1, %s33_s15), 0  ;;  %p189_p3 = pnand %p786_p0, %p188_p2 }
   0x6   : > { %v939_v0 = vld [vmem:[%s1121_s1 + $0x40] sm:$0xff] (!%p189_p3)   ;;  %s787_s18 = sshll.u32 (!%p189_p3), %s981_s12, 3  ;;  %v941_v2 = vld [vmem:[%s1121_s1 + $0x48] sm:$0xff] (!%p189_p3)   ;;  %v943_v4 = vld [vmem:[%s1121_s1 + $0x50] sm:$0xff] (!%p189_p3)   ;;  %p265_p5 = scmp.lt.s32.totalorder (!%p189_p3), %s981_s12, 1  ;;  %vm635_vm0 = vcmask (!%p189_p3), 1040384  }
   0x7   : > { %192 = sbr.rel (%p189_p3) target bundleno = 290 (0x122), region = 28  ;;  %v940_v1 = vld [vmem:[%s1121_s1] sm:$0xff] (!%p189_p3)   ;;  %859 = vmatprep.subr.bf16.mxu0 (!%p189_p3), %v939_v0  ;;  %899 = vmatprep.subr.bf16.mxu1 (!%p189_p3), %v939_v0  ;;  %v942_v3 = vld [vmem:[%s1121_s1 + $0x8] sm:$0xff] (!%p189_p3)   ;;  %p237_p4 = scmp.lt.s32.totalorder (!%p189_p3), %s787_s18, 15  ;;  %v944_v5 = vld [vmem:[%s1121_s1 + $0x10] sm:$0xff] (!%p189_p3)  }
   0x8   : > { %860 = vmatpush3.bf16.msra.mxu0 (!%p189_p3), %v940_v1  ;;  %907 = vmatpush3.bf16.msra.mxu1 (!%p189_p3), %v940_v1  ;;  %v945_v6 = vld [vmem:[%s1121_s1 + $0x58] sm:$0xff] (!%p189_p3)   ;;  %v947_v8 = vld [vmem:[%s1121_s1 + $0x60] sm:$0xff] (!%p189_p3)   ;;  %v949_v10 = vld [vmem:[%s1121_s1 + $0x68] sm:$0xff] (!%p189_p3)  }
   0x9   : > { %861 = vmatprep.subr.bf16.mxu0 (!%p189_p3), %v941_v2  ;;  %900 = vmatprep.subr.bf16.mxu1 (!%p189_p3), %v941_v2  ;;  %v946_v7 = vld [vmem:[%s1121_s1 + $0x18] sm:$0xff] (!%p189_p3)   ;;  %v948_v9 = vld [vmem:[%s1121_s1 + $0x20] sm:$0xff] (!%p189_p3)   ;;  %v950_v13 = vld [vmem:[%s1121_s1 + $0x28] sm:$0xff] (!%p189_p3)  }
   0xa   : > { %v951_v14 = vld [vmem:[%s1121_s1 + $0x70] sm:$0xff] (!%p189_p3)   ;;  %v953_v16 = vld [vmem:[%s1121_s1 + $0x78] sm:$0xff] (!%p189_p3)  }
   0xb   : > { %v952_v15 = vld [vmem:[%s1121_s1 + $0x30] sm:$0xff] (!%p189_p3)   ;;  %v954_v17 = vld [vmem:[%s1121_s1 + $0x38] sm:$0xff] (!%p189_p3)  }
   0xc   : > { %862 = vmatpush3.bf16.msra.mxu0 (!%p189_p3), %v942_v3  ;;  %908 = vmatpush3.bf16.msra.mxu1 (!%p189_p3), %v942_v3 }
   0xd   : > { %863 = vmatprep.subr.bf16.mxu0 (!%p189_p3), %v943_v4  ;;  %901 = vmatprep.subr.bf16.mxu1 (!%p189_p3), %v943_v4 }
   0xe   : > { %s1129_s18 = smov (!%p237_p4, %s787_s18), 15  ;;  %s1131_s12 = smov (!%p265_p5, %s981_s12), 1 }
   0xf   : > { %s827_s6 = sshll.u32 %s1129_s18, 3  ;;  %s791_s4 = sshll.u32 %s1129_s18, 2 }
  0x10   : > { %864 = vmatpush3.bf16.msra.mxu0 %v944_v5  ;;  %909 = vmatpush3.bf16.msra.mxu1 %v944_v5  ;;  %s1065_s11 = scalar_lea.vmem %s1120_s0, %s827_s6  ;;  %s1100_s7 = scalar_lea.vmem %s1122_s2, %s791_s4 }
  0x11   : > { %865 = vmatprep.subr.bf16.mxu0 %v945_v6  ;;  %902 = vmatprep.subr.bf16.mxu1 %v945_v6  ;;  %v957_v11 = vld [vmem:[%s1065_s11 + $0x4] ss:$8 sps:$4 sm:$0xff]   ;;  %v955_v18 = vld [vmem:[%s1065_s11] ss:$8 sps:$4 sm:$0xff]   ;;  %v961_v20 = vld [vmem:[%s1065_s11 + $0x14] ss:$8 sps:$4 sm:$0xff]  }
  0x12   : > { %v960_v12 = vld [vmem:[%s1065_s11 + $0x24] ss:$8 sps:$4 sm:$0xff]   ;;  %501 = vmatprep.mubr.bf16.mxu0 %v957_v11  ;;  %v958_v19 = vld [vmem:[%s1065_s11 + $0x20] ss:$8 sps:$4 sm:$0xff]   ;;  %v964_v21 = vld [vmem:[%s1065_s11 + $0x34] ss:$8 sps:$4 sm:$0xff]  }
  0x13   : > { %517 = vmatprep.mubr.bf16.mxu1 %v960_v12  ;;  %v963_v22 = vld [vmem:[%s1065_s11 + $0x10] ss:$8 sps:$4 sm:$0xff]   ;;  %s792_s18 = sshll.u32 %s1131_s12, 1 }
  0x14   : > { %866 = vmatpush3.bf16.msra.mxu0 %v946_v7  ;;  %910 = vmatpush3.bf16.msra.mxu1 %v946_v7  ;;  %v966_v23 = vld [vmem:[%s1065_s11 + $0x30] ss:$8 sps:$4 sm:$0xff]   ;;  %s271_s10 = scalar_lea.vmem %s1123_s3, %s792_s18 }
  0x15   : > { %867 = vmatprep.subr.bf16.mxu0 %v947_v8  ;;  %903 = vmatprep.subr.bf16.mxu1 %v947_v8 }
  0x18   : > { %868 = vmatpush3.bf16.msra.mxu0 %v948_v9  ;;  %911 = vmatpush3.bf16.msra.mxu1 %v948_v9 }
  0x19   : > { %869 = vmatprep.subr.bf16.mxu0 %v949_v10  ;;  %904 = vmatprep.subr.bf16.mxu1 %v949_v10 }
  0x1c   : > { %870 = vmatpush3.bf16.msra.mxu0 %v950_v13  ;;  %912 = vmatpush3.bf16.msra.mxu1 %v950_v13 }
  0x1d   : > { %871 = vmatprep.subr.bf16.mxu0 %v951_v14  ;;  %905 = vmatprep.subr.bf16.mxu1 %v951_v14 }
  0x20   : > { %872 = vmatpush3.bf16.msra.mxu0 %v952_v15  ;;  %913 = vmatpush3.bf16.msra.mxu1 %v952_v15 }
  0x21   : > { %873 = vmatprep.subr.bf16.mxu0 %v953_v16  ;;  %906 = vmatprep.subr.bf16.mxu1 %v953_v16 }
  0x24   : > { %874 = vmatpush3.bf16.msra.mxu0 %v954_v17  ;;  %914 = vmatpush3.bf16.msra.mxu1 %v954_v17 }
  0x27   : > { %502 = vmatmul.mubr.bf16.vlgmr.msra.gmra.mrb[0].mxu0 %v955_v18  ;;  %518 = vmatmul.mubr.bf16.vlgmr.msra.gmra.mrb[0].mxu1 %v958_v19 }
  0x28   : > { %509 = vmatprep.mubr.bf16.mxu0 %v961_v20  ;;  %525 = vmatprep.mubr.bf16.mxu1 %v964_v21 }
  0x2f   : > { %510 = vmatmul.mubr.bf16.gmra.mrb[4].mxu0 %v963_v22  ;;  %526 = vmatmul.mubr.bf16.gmra.mrb[4].mxu1 %v966_v23 }
  0xfa   : > { %v875_v24 = vpop.f32.mrb[0].mxu0  ;;  %v887_v25 = vpop.f32.mrb[0].mxu1 }
  0xfb   : > { %v876_v26 = vpop.f32.mrb[1].mxu0  ;;  %v888_v27 = vpop.f32.mrb[1].mxu1 }
  0xfc   : > { %v877_v28 = vadd.f32 %v876_v26, %v875_v24  ;;  %v878_v29 = vpop.f32.mrb[2].mxu0  ;;  %v889_v30 = vadd.f32 %v888_v27, %v887_v25  ;;  %v890_v31 = vpop.f32.mrb[2].mxu1 }
  0xfd   : > { %v879_v32 = vpop.f32.mrb[3].mxu0  ;;  %v891_v33 = vpop.f32.mrb[3].mxu1 }
  0xfe   : > { %v880_v34 = vadd.f32 %v879_v32, %v878_v29  ;;  %v892_v35 = vadd.f32 %v891_v33, %v890_v31  ;;  %v614_v36 = vmul.f32 %v877_v28, %v877_v28  ;;  %v618_v61 = vmul.f32 %v889_v30, %v889_v30 }
 0x100   : > { %v839_v37 = vpack.c.bf16 %v880_v34, %v877_v28  ;;  %v601_v38 = vadd.f32 %v880_v34, %v877_v28  ;;  %v615_v39 = vmul.f32 %v880_v34, %v880_v34  ;;  %v849_v40 = vpack.c.bf16 %v892_v35, %v889_v30 }
 0x101   : > { %v619_v0 = vmul.f32 %v892_v35, %v892_v35 }
 0x102   : > { %840 = vst [vmem:[%s1100_s7] sm:$0xff] %v839_v37   ;;  %v622_v41 = vadd.f32 %v615_v39, %v614_v36  ;;  %v881_v42 = vpop.f32.mrb[4].mxu0  ;;  %857 = vst [vmem:[%s1100_s7 + $0x10] sm:$0xff] %v849_v40   ;;  %v893_v43 = vpop.f32.mrb[4].mxu1 }
 0x103   : > { %v882_v44 = vpop.f32.mrb[5].mxu0  ;;  %v894_v45 = vpop.f32.mrb[5].mxu1 }
 0x104   : > { %v883_v46 = vadd.f32 %v882_v44, %v881_v42  ;;  %v884_v47 = vpop.f32.mrb[6].mxu0  ;;  %v895_v48 = vadd.f32 %v894_v45, %v893_v43  ;;  %v896_v49 = vpop.f32.mrb[6].mxu1 }
 0x105   : > { %v885_v50 = vpop.f32.mrb[7].mxu0  ;;  %v897_v51 = vpop.f32.mrb[7].mxu1 }
 0x106   : > { %v602_v52 = vadd.f32 %v883_v46, %v601_v38  ;;  %v616_v53 = vmul.f32 %v883_v46, %v883_v46  ;;  %v886_v54 = vadd.f32 %v885_v50, %v884_v47  ;;  %v898_v55 = vadd.f32 %v897_v51, %v896_v49 }
 0x107   : > { %v620_v3 = vmul.f32 %v895_v48, %v895_v48 }
 0x108   : > { %v623_v56 = vadd.f32 %v622_v41, %v616_v53  ;;  %v844_v57 = vpack.c.bf16 %v886_v54, %v883_v46  ;;  %v603_v58 = vadd.f32 %v886_v54, %v602_v52  ;;  %v617_v59 = vmul.f32 %v886_v54, %v886_v54 }
 0x109   : > { %v854_v60 = vpack.c.bf16 %v898_v55, %v895_v48  ;;  %v621_v8 = vmul.f32 %v898_v55, %v898_v55 }
 0x10a   : > { %856 = vst [vmem:[%s1100_s7 + $0x8] sm:$0xff] %v844_v57   ;;  %v604_v62 = vadd.f32 %v889_v30, %v603_v58  ;;  %v624_v63 = vadd.f32 %v623_v56, %v617_v59 }
 0x10b   : > { %858 = vst [vmem:[%s1100_s7 + $0x18] sm:$0xff] %v854_v60  }
 0x10c   : > { %v625_v1 = vadd.f32 %v624_v63, %v618_v61  ;;  %v605_v2 = vadd.f32 %v892_v35, %v604_v62 }
 0x10e   : > { %v606_v4 = vadd.f32 %v895_v48, %v605_v2  ;;  %v626_v5 = vadd.f32 %v625_v1, %v619_v0 }
 0x110   : > { %v627_v6 = vadd.f32 %v626_v5, %v620_v3  ;;  %v607_v7 = vadd.f32 %v898_v55, %v606_v4 }
 0x112   : > { %v608_v9 = vrot.slane %v607_v7, 4  ;;  %v628_v10 = vadd.f32 %v627_v6, %v621_v8 }
 0x114   : > { %v609_v11 = vadd.f32 %v608_v9, %v607_v7  ;;  %v629_v12 = vrot.slane %v628_v10, 4 }
 0x116   : > { %v610_v13 = vrot.slane %v609_v11, 2  ;;  %v630_v14 = vadd.f32 %v629_v12, %v628_v10 }
 0x118   : > { %v611_v15 = vadd.f32 %v610_v13, %v609_v11  ;;  %v631_v16 = vrot.slane %v630_v14, 2 }
 0x11a   : > { %v612_v17 = vrot.slane %v611_v15, 1  ;;  %v632_v18 = vadd.f32 %v631_v16, %v630_v14 }
 0x11c   : > { %v633_v19 = vrot.slane %v632_v18, 1  ;;  %v613_v20 = vadd.f32 %v612_v17, %v611_v15 }
 0x11e   : > { %v634_v21 = vadd.f32 %v633_v19, %v632_v18 }
 0x120   : > { %v636_v22 = vsel %vm635_vm0, %v613_v20, %v634_v21 }
 0x121   : > { %637 = vst [vmem:[%s271_s10] sm:$0x3] %v636_v22 }
 0x122 PF: > { %s14_s14 = sadd.s32 1, %s989_s14   ;;  %s1124_s12 = smov %s985_s13 }
 0x123   : > { %p11_p6 = scmp.ge.s32.totalorder %s14_s14, 4   ;;  %s1125_s13 = smov %s1127_s15 }
 0x125   :  { %13 = sbr.rel (!%p11_p6) target bundleno = 2 (0x2), region = 81 }

// kernel: _lambda_.35
= control target key start
LH: loop header
LB: loop body
LE: loop exit
PB: predicated region body
PF: predicated region fallthrough
CT: control target
= control target key end

     0   :  { %s756_s12 = smov 0   ;;  %s758_s13 = smov 0   ;;  %s824_s0 = inlined_call_operand.vmem [shape: bf16[64,128], index: 0, kind: input, shape index: {}]   ;;  %s825_s1 = inlined_call_operand.vmem [shape: bf16[128,128], index: 1, kind: input, shape index: {}]   ;;  %s826_s2 = inlined_call_operand.vmem [shape: bf16[64,128], index: 2, kind: output, shape index: {0}]   ;;  %s827_s3 = inlined_call_operand.vmem [shape: f32[2,2,128], index: 3, kind: output, shape index: {1}]  }
   0x1   :  { %s760_s14 = smov 0  }
   0x2 LB: > { %s33_s15 = sadd.s32 1, %s730_s13  ;;  %p611_p0 = scmp.ge.s32.totalorder %s734_s14, 1  ;;  %s734_s14 = sphi %s760_s14, %s14_s14   ;;  %s730_s13 = sphi %s758_s13, %s829_s13   ;;  %s726_s12 = sphi %s756_s12, %s828_s12  }
   0x3   : > { %p35_p1 = scmp.ge.s32.totalorder %s33_s15, 2  ;;  %p185_p2 = scmp.lt.s32.totalorder %s734_s14, 3 }
   0x5   : > { %s831_s15 = smov (%p35_p1, %s33_s15), 0  ;;  %p186_p3 = pnand %p611_p0, %p185_p2 }
   0x6   : > { %v702_v0 = vld [vmem:[%s825_s1] sm:$0xff] (!%p186_p3)   ;;  %s612_s18 = sshll.u32 (!%p186_p3), %s726_s12, 2  ;;  %v703_v1 = vld [vmem:[%s825_s1 + $0x8] sm:$0xff] (!%p186_p3)   ;;  %v704_v2 = vld [vmem:[%s825_s1 + $0x10] sm:$0xff] (!%p186_p3)   ;;  %p257_p5 = scmp.lt.s32.totalorder (!%p186_p3), %s726_s12, 1  ;;  %vm463_vm0 = vcmask (!%p186_p3), 1040384  }
   0x7   : > { %189 = sbr.rel (%p186_p3) target bundleno = 276 (0x114), region = 28  ;;  %p231_p4 = scmp.lt.s32.totalorder (!%p186_p3), %s612_s18, 7  ;;  %658 = vmatprep.subr.bf16.mxu0 (!%p186_p3), %v702_v0  ;;  %v705_v3 = vld [vmem:[%s825_s1 + $0x18] sm:$0xff] (!%p186_p3)   ;;  %v706_v5 = vld [vmem:[%s825_s1 + $0x20] sm:$0xff] (!%p186_p3)   ;;  %v707_v6 = vld [vmem:[%s825_s1 + $0x28] sm:$0xff] (!%p186_p3)  }
   0x8   : > { %659 = vmatpush3.bf16.msra.mxu0 (!%p186_p3), %v702_v0  ;;  %v708_v7 = vld [vmem:[%s825_s1 + $0x30] sm:$0xff] (!%p186_p3)   ;;  %v709_v8 = vld [vmem:[%s825_s1 + $0x38] sm:$0xff] (!%p186_p3)  }
   0x9   : > { %660 = vmatprep.subr.bf16.mxu0 (!%p186_p3), %v703_v1 }
   0xc   : > { %661 = vmatpush3.bf16.msra.mxu0 (!%p186_p3), %v703_v1 }
   0xd   : > { %662 = vmatprep.subr.bf16.mxu0 (!%p186_p3), %v704_v2 }
   0xe   : > { %s833_s18 = smov (!%p231_p4, %s612_s18), 7  ;;  %s835_s12 = smov (!%p257_p5, %s726_s12), 1 }
   0xf   : > { %s613_s23 = sshll.u32 %s833_s18, 2  ;;  %s616_s17 = sshll.u32 %s835_s12, 1 }
  0x10   : > { %s237_s26 = scalar_lea.vmem %s824_s0, %s613_s23  ;;  %663 = vmatpush3.bf16.msra.mxu0 %v704_v2  ;;  %s255_s16 = scalar_lea.vmem %s826_s2, %s613_s23 }
  0x11   : > { %v710_v4 = vld [vmem:[%s237_s26] sm:$0xff]   ;;  %664 = vmatprep.subr.bf16.mxu0 %v705_v3  ;;  %v711_v9 = vld [vmem:[%s237_s26 + $0x8] sm:$0xff]   ;;  %s263_s20 = scalar_lea.vmem %s827_s3, %s616_s17 }
  0x12   : > { %674 = vmatprep.mubr.bf16.mxu0 %v710_v4 }
  0x14   : > { %665 = vmatpush3.bf16.msra.mxu0 %v705_v3 }
  0x15   : > { %666 = vmatprep.subr.bf16.mxu0 %v706_v5 }
  0x18   : > { %667 = vmatpush3.bf16.msra.mxu0 %v706_v5 }
  0x19   : > { %668 = vmatprep.subr.bf16.mxu0 %v707_v6 }
  0x1c   : > { %669 = vmatpush3.bf16.msra.mxu0 %v707_v6 }
  0x1d   : > { %670 = vmatprep.subr.bf16.mxu0 %v708_v7 }
  0x20   : > { %671 = vmatpush3.bf16.msra.mxu0 %v708_v7 }
  0x21   : > { %672 = vmatprep.subr.bf16.mxu0 %v709_v8 }
  0x24   : > { %673 = vmatpush3.bf16.msra.mxu0 %v709_v8 }
  0x27   : > { %675 = vmatmul.mubr.bf16.vlgmr.msra.gmra.mrb[0].mxu0 %v711_v9 }
  0xfa   : > { %v676_v10 = vpop.f32.mrb[0].mxu0 }
  0xfb   : > { %v391_v11 = vpop.f32.mrb[1].mxu0  ;;  %v452_v19 = vmul.f32 %v676_v10, %v676_v10 }
  0xfc   : > { %v677_v12 = vpop.f32.mrb[2].mxu0  ;;  %v450_v15 = vmul.f32 %v391_v11, %v391_v11 }
  0xfd   : > { %v645_v13 = vpack.c.bf16 %v677_v12, %v676_v10  ;;  %v394_v14 = vpop.f32.mrb[3].mxu0  ;;  %v453_v22 = vmul.f32 %v677_v12, %v677_v12 }
  0xfe   : > { %v640_v16 = vpack.c.bf16 %v394_v14, %v391_v11  ;;  %v441_v17 = vadd.f32 %v394_v14, %v391_v11  ;;  %v451_v18 = vmul.f32 %v394_v14, %v394_v14 }
  0xff   : > { %647 = vst [vmem:[%s255_s16 + $0x8] sm:$0xff] %v645_v13  }
 0x100   : > { %641 = vst [vmem:[%s255_s16] sm:$0xff] %v640_v16   ;;  %v442_v20 = vadd.f32 %v676_v10, %v441_v17  ;;  %v454_v21 = vadd.f32 %v451_v18, %v450_v15 }
 0x102   : > { %v443_v23 = vadd.f32 %v677_v12, %v442_v20  ;;  %v455_v24 = vadd.f32 %v454_v21, %v452_v19 }
 0x104   : > { %v444_v25 = vrot.slane %v443_v23, 4  ;;  %v456_v26 = vadd.f32 %v455_v24, %v453_v22 }
 0x106   : > { %v445_v27 = vadd.f32 %v444_v25, %v443_v23  ;;  %v457_v28 = vrot.slane %v456_v26, 4 }
 0x108   : > { %v446_v29 = vrot.slane %v445_v27, 2  ;;  %v458_v30 = vadd.f32 %v457_v28, %v456_v26 }
 0x10a   : > { %v447_v31 = vadd.f32 %v446_v29, %v445_v27  ;;  %v459_v32 = vrot.slane %v458_v30, 2 }
 0x10c   : > { %v448_v33 = vrot.slane %v447_v31, 1  ;;  %v460_v34 = vadd.f32 %v459_v32, %v458_v30 }
 0x10e   : > { %v461_v35 = vrot.slane %v460_v34, 1  ;;  %v449_v36 = vadd.f32 %v448_v33, %v447_v31 }
 0x110   : > { %v462_v37 = vadd.f32 %v461_v35, %v460_v34 }
 0x112   : > { %v464_v38 = vsel %vm463_vm0, %v449_v36, %v462_v37 }
 0x113   : > { %465 = vst [vmem:[%s263_s20] sm:$0x3] %v464_v38 }
 0x114 PF: > { %s14_s14 = sadd.s32 1, %s734_s14   ;;  %s828_s12 = smov %s730_s13 }
 0x115   : > { %p11_p6 = scmp.ge.s32.totalorder %s14_s14, 4   ;;  %s829_s13 = smov %s831_s15 }
 0x117   :  { %13 = sbr.rel (!%p11_p6) target bundleno = 2 (0x2), region = 81 }

// kernel: _lambda_.36
= control target key start
LH: loop header
LB: loop body
LE: loop exit
PB: predicated region body
PF: predicated region fallthrough
CT: control target
= control target key end

     0   :  { %s73_s0 = inlined_call_operand.vmem [shape: bf16[4,128], index: 0, kind: input, shape index: {}]   ;;  %s74_s1 = inlined_call_operand.vmem [shape: f32[1,128], index: 1, kind: input, shape index: {}]   ;;  %s75_s2 = inlined_call_operand.vmem [shape: f32[1,128], index: 2, kind: input, shape index: {}]   ;;  %s76_s3 = inlined_call_operand.vmem [shape: bf16[4,128], index: 3, kind: output, shape index: {}]  }
   0x1   :  { %v14_v0 = vld [vmem:[%s73_s0] sm:$0x3] }
   0x2   :  { %v39_v1 = vld [vmem:[%s74_s1] ss:$0 sm:$0xff]  ;;  %v15_v2 = vunpack.c.l.bf16 %v14_v0 }
   0x3   :  { %v40_v3 = vld [vmem:[%s75_s2] ss:$0 sm:$0xff] }
   0x4   :  { %v23_v4 = vmul.f32 %v39_v1, %v15_v2 }
   0x6   :  { %v31_v5 = vadd.f32 %v40_v3, %v23_v4 }
   0x8   :  { %v32_v6 = vmax.f32 %v31_v5, 0.0 }
   0xa   :  { %v33_v7 = vpack.c.bf16 %v32_v6, %v32_v6 }
   0xc   :  { %34 = vst [vmem:[%s76_s3] sm:$0x3] %v33_v7 }

// kernel: tile.243
= control target key start
LH: loop header
LB: loop body
LE: loop exit
PB: predicated region body
PF: predicated region fallthrough
CT: control target
= control target key end

     0   :  { %s22_s0 = inlined_call_operand.vmem [shape: f32[16], index: 0, kind: input, shape index: {}]   ;;  %s23_s1 = inlined_call_operand.vmem [shape: f32[8,16], index: 1, kind: output, shape index: {}]  }
   0x1   :  { %v4_v0 = vld [vmem:[%s22_s0] ss:$0 sm:$0xff] }
   0x2   :  { %5 = vst [vmem:[%s23_s1] sm:$0xff] %v4_v0 }

// kernel: tile.244
= control target key start
LH: loop header
LB: loop body
LE: loop exit
PB: predicated region body
PF: predicated region fallthrough
CT: control target
= control target key end

     0   :  { %s67_s10 = smov 112   ;;  %s68_s11 = smov 80   ;;  %vm3_vm0 = vcmask 130048   ;;  %vm9_vm1 = vcmask 1048448   ;;  %vm15_vm2 = vcmask 917248   ;;  %vm21_vm3 = vcmask 786048   ;;  %s111_s0 = inlined_call_operand.vmem [shape: f32[8,16], index: 0, kind: input, shape index: {}]   ;;  %s112_s1 = inlined_call_operand.vmem [shape: f32[1,128], index: 1, kind: output, shape index: {}]  }
   0x1   :  { %v53_v0 = vld [vmem:[%s111_s0 + $0x7] sm:$0x1]   ;;  %v55_v1 = vld [vmem:[%s111_s0 + $0x5] sm:$0x1]   ;;  %v54_v2 = vld [vmem:[%s111_s0 + $0x6] sm:$0x1]  }
   0x2   :  { %7 = vrot.lane.b32.xlu0 %v53_v0, %s67_s10  ;;  %19 = vrot.lane.b32.xlu1 %v55_v1, %s68_s11  ;;  %v56_v3 = vld [vmem:[%s111_s0 + $0x4] sm:$0x1]   ;;  %v2_v4 = vld [vmem:[%s111_s0] sm:$0x1]   ;;  %s69_s18 = smov 96   ;;  %s70_s19 = smov 64  }
   0x3   :  { %4 = vst.msk [vmem:[#allocation0] sm:$0x1] %vm3_vm0, %v2_v4   ;;  %v57_v5 = vld [vmem:[%s111_s0 + $0x3] sm:$0x1]   ;;  %v58_v6 = vld [vmem:[%s111_s0 + $0x2] sm:$0x1]  }
   0x4   :  { %s71_s24 = smov 48   ;;  %s72_s25 = smov 32   ;;  %v59_v7 = vld [vmem:[%s111_s0 + $0x1] sm:$0x1]   ;;  %vm27_vm4 = vcmask 654848   ;;  %vm33_vm5 = vcmask 523648  }
   0x5   :  { %s73_s0 = smov 16   ;;  %vm39_vm6 = vcmask 392448   ;;  %vm45_vm7 = vcmask 261248  }
   0x6   :  { %13 = vrot.lane.b32.xlu0 %v54_v2, %s69_s18  ;;  %25 = vrot.lane.b32.xlu1 %v56_v3, %s70_s19 }
   0xa   :  { %31 = vrot.lane.b32.xlu0 %v57_v5, %s71_s24  ;;  %37 = vrot.lane.b32.xlu1 %v58_v6, %s72_s25 }
   0xe   :  { %43 = vrot.lane.b32.xlu0 %v59_v7, %s73_s0 }
  0x74   :  { %v8_v8 = vpop.permute.xlu0 %7   ;;  %v20_v9 = vpop.permute.xlu1 %19  }
  0x75   :  { %10 = vst.msk [vmem:[#allocation0] sm:$0x1] %vm9_vm1, %v8_v8  }
  0x78   :  { %v14_v10 = vpop.permute.xlu0 %13   ;;  %v26_v11 = vpop.permute.xlu1 %25  }
  0x79   :  { %16 = vst.msk [vmem:[#allocation0] sm:$0x1] %vm15_vm2, %v14_v10  }
  0x7a   :  { %22 = vst.msk [vmem:[#allocation0] sm:$0x1] %vm21_vm3, %v20_v9  }
  0x7b   :  { %28 = vst.msk [vmem:[#allocation0] sm:$0x1] %vm27_vm4, %v26_v11  }
  0x7c   :  { %v32_v12 = vpop.permute.xlu0 %31   ;;  %v38_v13 = vpop.permute.xlu1 %37  }
  0x7d   :  { %34 = vst.msk [vmem:[#allocation0] sm:$0x1] %vm33_vm5, %v32_v12  }
  0x7e   :  { %40 = vst.msk [vmem:[#allocation0] sm:$0x1] %vm39_vm6, %v38_v13  }
  0x80   :  { %v44_v14 = vpop.permute.xlu0 %43  }
  0x81   :  { %46 = vst.msk [vmem:[#allocation0] sm:$0x1] %vm45_vm7, %v44_v14  }
  0x88   :  { %v50_v15 = vld [vmem:[#allocation0] sm:$0x1] }
  0x89   :  { %52 = vst [vmem:[%s112_s1] sm:$0x1] %v50_v15 }

// kernel: _lambda_.38
= control target key start
LH: loop header
LB: loop body
LE: loop exit
PB: predicated region body
PF: predicated region fallthrough
CT: control target
= control target key end

     0   :  { %s127_s0 = inlined_call_operand.vmem [shape: bf16[4,128], index: 0, kind: input, shape index: {}]   ;;  %s128_s1 = inlined_call_operand.vmem [shape: f32[1,128], index: 1, kind: input, shape index: {}]   ;;  %s129_s2 = inlined_call_operand.vmem [shape: f32[1,128], index: 2, kind: input, shape index: {}]   ;;  %s130_s3 = inlined_call_operand.vmem [shape: bf16[4,128], index: 3, kind: input, shape index: {}]   ;;  %s131_s4 = inlined_call_operand.vmem [shape: f32[1,128], index: 4, kind: input, shape index: {}]   ;;  %s132_s5 = inlined_call_operand.vmem [shape: f32[1,128], index: 5, kind: input, shape index: {}]   ;;  %s133_s6 = inlined_call_operand.vmem [shape: bf16[4,128], index: 6, kind: output, shape index: {}]  }
   0x1   :  { %v23_v0 = vld [vmem:[%s127_s0] sm:$0x3] }
   0x2   :  { %v67_v1 = vld [vmem:[%s128_s1] ss:$0 sm:$0xff]  ;;  %v24_v2 = vunpack.c.l.bf16 %v23_v0 }
   0x3   :  { %v41_v3 = vld [vmem:[%s130_s3] sm:$0x3] }
   0x4   :  { %v69_v4 = vld [vmem:[%s131_s4] ss:$0 sm:$0xff]  ;;  %v42_v6 = vunpack.c.l.bf16 %v41_v3  ;;  %v32_v7 = vmul.f32 %v67_v1, %v24_v2 }
   0x5   :  { %v68_v5 = vld [vmem:[%s129_s2] ss:$0 sm:$0xff] }
   0x6   :  { %v70_v8 = vld [vmem:[%s132_s5] ss:$0 sm:$0xff]  ;;  %v50_v9 = vmul.f32 %v69_v4, %v42_v6  ;;  %v40_v10 = vadd.f32 %v68_v5, %v32_v7 }
   0x8   :  { %v58_v11 = vadd.f32 %v70_v8, %v50_v9 }
   0xa   :  { %v59_v12 = vadd.f32 %v58_v11, %v40_v10 }
   0xc   :  { %v60_v13 = vmax.f32 %v59_v12, 0.0 }
   0xe   :  { %v61_v14 = vpack.c.bf16 %v60_v13, %v60_v13 }
  0x10   :  { %62 = vst [vmem:[%s133_s6] sm:$0x3] %v61_v14 }

// kernel: _lambda_.46
= control target key start
LH: loop header
LB: loop body
LE: loop exit
PB: predicated region body
PF: predicated region fallthrough
CT: control target
= control target key end

     0   :  { %s705_s12 = smov 0   ;;  %s707_s13 = smov 0   ;;  %s770_s0 = inlined_call_operand.vmem [shape: bf16[32,128], index: 0, kind: input, shape index: {}]   ;;  %s771_s1 = inlined_call_operand.vmem [shape: bf16[128,128], index: 1, kind: input, shape index: {}]   ;;  %s772_s2 = inlined_call_operand.vmem [shape: bf16[32,128], index: 2, kind: output, shape index: {0}]   ;;  %s773_s3 = inlined_call_operand.vmem [shape: f32[2,2,128], index: 3, kind: output, shape index: {1}]  }
   0x1   :  { %s709_s14 = smov 0  }
   0x2 LB: > { %s33_s15 = sadd.s32 1, %s677_s13  ;;  %p569_p0 = scmp.ge.s32.totalorder %s681_s14, 1  ;;  %s681_s14 = sphi %s709_s14, %s14_s14   ;;  %s677_s13 = sphi %s707_s13, %s775_s13   ;;  %s673_s12 = sphi %s705_s12, %s774_s12  }
   0x3   : > { %p35_p1 = scmp.ge.s32.totalorder %s33_s15, 2  ;;  %p185_p2 = scmp.lt.s32.totalorder %s681_s14, 3 }
   0x5   : > { %s777_s15 = smov (%p35_p1, %s33_s15), 0  ;;  %p186_p3 = pnand %p569_p0, %p185_p2 }
   0x6   : > { %v650_v0 = vld [vmem:[%s771_s1] sm:$0xff] (!%p186_p3)   ;;  %v683_v1 = vmov (!%p186_p3), 0.0   ;;  %v651_v2 = vld [vmem:[%s771_s1 + $0x8] sm:$0xff] (!%p186_p3)   ;;  %vm684_vm0 = vmmov (!%p186_p3), 0   ;;  %s570_s20 = sshll.u32 (!%p186_p3), %s673_s12, 1  ;;  %v652_v3 = vld [vmem:[%s771_s1 + $0x10] sm:$0xff] (!%p186_p3)  }
   0x7   : > { %189 = sbr.rel (%p186_p3) target bundleno = 271 (0x10f), region = 28  ;;  %604 = vmatprep.subr.bf16.mxu0 (!%p186_p3), %v683_v1  ;;  %620 = vmatprep.mubr.msk.bf16.mxu0 (!%p186_p3), %vm684_vm0, %v683_v1  ;;  %p231_p4 = scmp.lt.s32.totalorder (!%p186_p3), %s570_s20, 3  ;;  %v653_v4 = vld [vmem:[%s771_s1 + $0x18] sm:$0xff] (!%p186_p3)   ;;  %v654_v5 = vld [vmem:[%s771_s1 + $0x20] sm:$0xff] (!%p186_p3)   ;;  %v655_v6 = vld [vmem:[%s771_s1 + $0x28] sm:$0xff] (!%p186_p3)   ;;  %vm421_vm1 = vcmask (!%p186_p3), 1040384  }
   0x8   : > { %605 = vmatpush3.bf16.msra.mxu0 (!%p186_p3), %v650_v0  ;;  %v656_v7 = vld [vmem:[%s771_s1 + $0x30] sm:$0xff] (!%p186_p3)   ;;  %v657_v8 = vld [vmem:[%s771_s1 + $0x38] sm:$0xff] (!%p186_p3)   ;;  %p257_p5 = scmp.lt.s32.totalorder (!%p186_p3), %s673_s12, 1 }
   0x9   : > { %606 = vmatprep.subr.bf16.mxu0 (!%p186_p3), %v683_v1 }
   0xc   : > { %607 = vmatpush3.bf16.msra.mxu0 (!%p186_p3), %v651_v2 }
   0xd   : > { %608 = vmatprep.subr.bf16.mxu0 (!%p186_p3), %v683_v1 }
   0xe   : > { %s779_s20 = smov (!%p231_p4, %s570_s20), 3  ;;  %s781_s12 = smov (!%p257_p5, %s673_s12), 1 }
   0xf   : > { %s571_s23 = sshll.u32 %s779_s20, 2  ;;  %s574_s17 = sshll.u32 %s781_s12, 1 }
  0x10   : > { %s237_s26 = scalar_lea.vmem %s770_s0, %s571_s23  ;;  %609 = vmatpush3.bf16.msra.mxu0 %v652_v3  ;;  %s255_s16 = scalar_lea.vmem %s772_s2, %s571_s23 }
  0x11   : > { %610 = vmatprep.subr.bf16.mxu0 %v683_v1  ;;  %v658_v9 = vld [vmem:[%s237_s26] sm:$0xff]   ;;  %s263_s20 = scalar_lea.vmem %s773_s3, %s574_s17 }
  0x14   : > { %611 = vmatpush3.bf16.msra.mxu0 %v653_v4 }
  0x15   : > { %612 = vmatprep.subr.bf16.mxu0 %v683_v1 }
  0x18   : > { %613 = vmatpush3.bf16.msra.mxu0 %v654_v5 }
  0x19   : > { %614 = vmatprep.subr.bf16.mxu0 %v683_v1 }
  0x1c   : > { %615 = vmatpush3.bf16.msra.mxu0 %v655_v6 }
  0x1d   : > { %616 = vmatprep.subr.bf16.mxu0 %v683_v1 }
  0x20   : > { %617 = vmatpush3.bf16.msra.mxu0 %v656_v7 }
  0x21   : > { %618 = vmatprep.subr.bf16.mxu0 %v683_v1 }
  0x24   : > { %619 = vmatpush3.bf16.msra.mxu0 %v657_v8 }
  0x27   : > { %621 = vmatmul.mubr.bf16.vlgmr.msra.gmra.mrb[0].mxu0 %v658_v9 }
  0xfa   : > { %v379_v10 = vpop.f32.mrb[0].mxu0 }
  0xfb   : > { %v622_v11 = vpop.f32.mrb[1].mxu0  ;;  %v412_v13 = vmul.f32 %v379_v10, %v379_v10 }
  0xfc   : > { %v382_v12 = vpop.f32.mrb[2].mxu0 }
  0xfd   : > { %v593_v14 = vpack.c.bf16 %v382_v12, %v379_v10  ;;  %v405_v15 = vadd.f32 %v382_v12, %v379_v10  ;;  %v413_v16 = vmul.f32 %v382_v12, %v382_v12  ;;  %v623_v17 = vpop.f32.mrb[3].mxu0 }
  0xff   : > { %594 = vst [vmem:[%s255_s16] sm:$0xff] %v593_v14   ;;  %v406_v18 = vrot.slane %v405_v15, 4  ;;  %v414_v19 = vadd.f32 %v413_v16, %v412_v13 }
 0x101   : > { %v407_v20 = vadd.f32 %v406_v18, %v405_v15  ;;  %v415_v21 = vrot.slane %v414_v19, 4 }
 0x103   : > { %v408_v22 = vrot.slane %v407_v20, 2  ;;  %v416_v23 = vadd.f32 %v415_v21, %v414_v19 }
 0x105   : > { %v409_v24 = vadd.f32 %v408_v22, %v407_v20  ;;  %v417_v25 = vrot.slane %v416_v23, 2 }
 0x107   : > { %v410_v26 = vrot.slane %v409_v24, 1  ;;  %v418_v27 = vadd.f32 %v417_v25, %v416_v23 }
 0x109   : > { %v419_v28 = vrot.slane %v418_v27, 1  ;;  %v411_v29 = vadd.f32 %v410_v26, %v409_v24 }
 0x10b   : > { %v420_v30 = vadd.f32 %v419_v28, %v418_v27 }
 0x10d   : > { %v422_v31 = vsel %vm421_vm1, %v411_v29, %v420_v30 }
 0x10e   : > { %423 = vst [vmem:[%s263_s20] sm:$0x3] %v422_v31 }
 0x10f PF: > { %s14_s14 = sadd.s32 1, %s681_s14   ;;  %s774_s12 = smov %s677_s13 }
 0x110   : > { %p11_p6 = scmp.ge.s32.totalorder %s14_s14, 4   ;;  %s775_s13 = smov %s777_s15 }
 0x112   :  { %13 = sbr.rel (!%p11_p6) target bundleno = 2 (0x2), region = 81 }

// kernel: _lambda_.44
= control target key start
LH: loop header
LB: loop body
LE: loop exit
PB: predicated region body
PF: predicated region fallthrough
CT: control target
= control target key end

     0   :  { %vm34_vm0 = vcmask 1041408   ;;  %vm35_vm1 = vsmask.f32 1280  ;;  %s81_s0 = inlined_call_operand.vmem [shape: bf16[3,128], index: 0, kind: input, shape index: {}]   ;;  %s82_s1 = inlined_call_operand.vmem [shape: f32[1,128], index: 1, kind: input, shape index: {}]   ;;  %s83_s2 = inlined_call_operand.vmem [shape: f32[1,128], index: 2, kind: input, shape index: {}]   ;;  %s84_s3 = inlined_call_operand.vmem [shape: bf16[3,128], index: 3, kind: output, shape index: {}]  }
   0x1   :  { %v14_v0 = vld [vmem:[%s81_s0] sm:$0x3]  ;;  %vm36_vm2 = vmand %vm34_vm0, %vm35_vm1 }
   0x2   :  { %v44_v1 = vld [vmem:[%s82_s1] ss:$0 sm:$0xff]  ;;  %v15_v2 = vunpack.c.l.bf16 %v14_v0 }
   0x3   :  { %v45_v3 = vld [vmem:[%s83_s2] ss:$0 sm:$0xff] }
   0x4   :  { %v23_v4 = vmul.f32 %v44_v1, %v15_v2  ;;  %v37_v7 = vld [vmem:[%s84_s3] sm:$0x3] }
   0x6   :  { %v31_v5 = vadd.f32 %v45_v3, %v23_v4 }
   0x8   :  { %v32_v6 = vmax.f32 %v31_v5, 0.0 }
   0xa   :  { %v33_v8 = vpack.c.bf16 %v32_v6, %v32_v6 }
   0xc   :  { %v38_v9 = vsel %vm36_vm2, %v33_v8, %v37_v7 }
   0xd   :  { %39 = vst [vmem:[%s84_s3] sm:$0x3] %v38_v9 }

// kernel: _lambda_.45
= control target key start
LH: loop header
LB: loop body
LE: loop exit
PB: predicated region body
PF: predicated region fallthrough
CT: control target
= control target key end

     0   :  { %s794_s12 = smov 0   ;;  %s796_s13 = smov 0   ;;  %s887_s0 = inlined_call_operand.vmem [shape: bf16[32,256], index: 0, kind: input, shape index: {}]   ;;  %s888_s1 = inlined_call_operand.vmem [shape: bf16[256,128], index: 1, kind: input, shape index: {}]   ;;  %s889_s2 = inlined_call_operand.vmem [shape: bf16[32,128], index: 2, kind: output, shape index: {0}]   ;;  %s890_s3 = inlined_call_operand.vmem [shape: f32[2,2,128], index: 3, kind: output, shape index: {1}]  }
   0x1   :  { %s798_s14 = smov 0  }
   0x2 LB: > { %s33_s15 = sadd.s32 1, %s768_s13  ;;  %p648_p0 = scmp.ge.s32.totalorder %s772_s14, 1  ;;  %s772_s14 = sphi %s798_s14, %s14_s14   ;;  %s768_s13 = sphi %s796_s13, %s892_s13   ;;  %s764_s12 = sphi %s794_s12, %s891_s12  }
   0x3   : > { %p35_p1 = scmp.ge.s32.totalorder %s33_s15, 2  ;;  %p188_p2 = scmp.lt.s32.totalorder %s772_s14, 3 }
   0x5   : > { %s894_s15 = smov (%p35_p1, %s33_s15), 0  ;;  %p189_p3 = pnand %p648_p0, %p188_p2 }
   0x6   : > { %v731_v0 = vld [vmem:[%s888_s1 + $0x40] sm:$0xff] (!%p189_p3)   ;;  %s649_s18 = sshll.u32 (!%p189_p3), %s764_s12, 1  ;;  %v733_v2 = vld [vmem:[%s888_s1 + $0x48] sm:$0xff] (!%p189_p3)   ;;  %v735_v4 = vld [vmem:[%s888_s1 + $0x50] sm:$0xff] (!%p189_p3)   ;;  %p265_p5 = scmp.lt.s32.totalorder (!%p189_p3), %s764_s12, 1  ;;  %vm497_vm0 = vcmask (!%p189_p3), 1040384  }
   0x7   : > { %192 = sbr.rel (%p189_p3) target bundleno = 274 (0x112), region = 28  ;;  %v732_v1 = vld [vmem:[%s888_s1] sm:$0xff] (!%p189_p3)   ;;  %685 = vmatprep.subr.bf16.mxu0 (!%p189_p3), %v731_v0  ;;  %v734_v3 = vld [vmem:[%s888_s1 + $0x8] sm:$0xff] (!%p189_p3)   ;;  %p237_p4 = scmp.lt.s32.totalorder (!%p189_p3), %s649_s18, 3  ;;  %v736_v5 = vld [vmem:[%s888_s1 + $0x10] sm:$0xff] (!%p189_p3)  }
   0x8   : > { %686 = vmatpush3.bf16.msra.mxu0 (!%p189_p3), %v732_v1  ;;  %v737_v6 = vld [vmem:[%s888_s1 + $0x58] sm:$0xff] (!%p189_p3)   ;;  %v739_v8 = vld [vmem:[%s888_s1 + $0x60] sm:$0xff] (!%p189_p3)   ;;  %v741_v10 = vld [vmem:[%s888_s1 + $0x68] sm:$0xff] (!%p189_p3)  }
   0x9   : > { %687 = vmatprep.subr.bf16.mxu0 (!%p189_p3), %v733_v2  ;;  %v738_v7 = vld [vmem:[%s888_s1 + $0x18] sm:$0xff] (!%p189_p3)   ;;  %v740_v9 = vld [vmem:[%s888_s1 + $0x20] sm:$0xff] (!%p189_p3)   ;;  %v742_v12 = vld [vmem:[%s888_s1 + $0x28] sm:$0xff] (!%p189_p3)  }
   0xa   : > { %v743_v13 = vld [vmem:[%s888_s1 + $0x70] sm:$0xff] (!%p189_p3)   ;;  %v745_v15 = vld [vmem:[%s888_s1 + $0x78] sm:$0xff] (!%p189_p3)  }
   0xb   : > { %v744_v14 = vld [vmem:[%s888_s1 + $0x30] sm:$0xff] (!%p189_p3)   ;;  %v746_v16 = vld [vmem:[%s888_s1 + $0x38] sm:$0xff] (!%p189_p3)  }
   0xc   : > { %688 = vmatpush3.bf16.msra.mxu0 (!%p189_p3), %v734_v3 }
   0xd   : > { %689 = vmatprep.subr.bf16.mxu0 (!%p189_p3), %v735_v4 }
   0xe   : > { %s896_s18 = smov (!%p237_p4, %s649_s18), 3  ;;  %s898_s12 = smov (!%p265_p5, %s764_s12), 1 }
   0xf   : > { %s677_s6 = sshll.u32 %s896_s18, 3  ;;  %s653_s4 = sshll.u32 %s896_s18, 2 }
  0x10   : > { %690 = vmatpush3.bf16.msra.mxu0 %v736_v5  ;;  %s244_s11 = scalar_lea.vmem %s887_s0, %s677_s6  ;;  %s263_s7 = scalar_lea.vmem %s889_s2, %s653_s4 }
  0x11   : > { %691 = vmatprep.subr.bf16.mxu0 %v737_v6  ;;  %v749_v11 = vld [vmem:[%s244_s11 + $0x4] ss:$8 sps:$4 sm:$0xff]   ;;  %v747_v17 = vld [vmem:[%s244_s11] ss:$8 sps:$4 sm:$0xff]   ;;  %s654_s18 = sshll.u32 %s898_s12, 1 }
  0x12   : > { %453 = vmatprep.mubr.bf16.mxu0 %v749_v11  ;;  %s271_s10 = scalar_lea.vmem %s890_s3, %s654_s18 }
  0x14   : > { %692 = vmatpush3.bf16.msra.mxu0 %v738_v7 }
  0x15   : > { %693 = vmatprep.subr.bf16.mxu0 %v739_v8 }
  0x18   : > { %694 = vmatpush3.bf16.msra.mxu0 %v740_v9 }
  0x19   : > { %695 = vmatprep.subr.bf16.mxu0 %v741_v10 }
  0x1c   : > { %696 = vmatpush3.bf16.msra.mxu0 %v742_v12 }
  0x1d   : > { %697 = vmatprep.subr.bf16.mxu0 %v743_v13 }
  0x20   : > { %698 = vmatpush3.bf16.msra.mxu0 %v744_v14 }
  0x21   : > { %699 = vmatprep.subr.bf16.mxu0 %v745_v15 }
  0x24   : > { %700 = vmatpush3.bf16.msra.mxu0 %v746_v16 }
  0x27   : > { %454 = vmatmul.mubr.bf16.vlgmr.msra.gmra.mrb[0].mxu0 %v747_v17 }
  0xfa   : > { %v701_v18 = vpop.f32.mrb[0].mxu0 }
  0xfb   : > { %v702_v19 = vpop.f32.mrb[1].mxu0 }
  0xfc   : > { %v703_v20 = vadd.f32 %v702_v19, %v701_v18  ;;  %v704_v21 = vpop.f32.mrb[2].mxu0 }
  0xfd   : > { %v705_v22 = vpop.f32.mrb[3].mxu0 }
  0xfe   : > { %v706_v23 = vadd.f32 %v705_v22, %v704_v21  ;;  %v488_v24 = vmul.f32 %v703_v20, %v703_v20 }
 0x100   : > { %v683_v25 = vpack.c.bf16 %v706_v23, %v703_v20  ;;  %v481_v26 = vadd.f32 %v706_v23, %v703_v20  ;;  %v489_v27 = vmul.f32 %v706_v23, %v706_v23 }
 0x102   : > { %684 = vst [vmem:[%s263_s7] sm:$0xff] %v683_v25   ;;  %v482_v28 = vrot.slane %v481_v26, 4  ;;  %v490_v29 = vadd.f32 %v489_v27, %v488_v24 }
 0x104   : > { %v483_v30 = vadd.f32 %v482_v28, %v481_v26  ;;  %v491_v31 = vrot.slane %v490_v29, 4 }
 0x106   : > { %v484_v32 = vrot.slane %v483_v30, 2  ;;  %v492_v33 = vadd.f32 %v491_v31, %v490_v29 }
 0x108   : > { %v485_v34 = vadd.f32 %v484_v32, %v483_v30  ;;  %v493_v35 = vrot.slane %v492_v33, 2 }
 0x10a   : > { %v486_v36 = vrot.slane %v485_v34, 1  ;;  %v494_v37 = vadd.f32 %v493_v35, %v492_v33 }
 0x10c   : > { %v495_v38 = vrot.slane %v494_v37, 1  ;;  %v487_v39 = vadd.f32 %v486_v36, %v485_v34 }
 0x10e   : > { %v496_v40 = vadd.f32 %v495_v38, %v494_v37 }
 0x110   : > { %v498_v41 = vsel %vm497_vm0, %v487_v39, %v496_v40 }
 0x111   : > { %499 = vst [vmem:[%s271_s10] sm:$0x3] %v498_v41 }
 0x112 PF: > { %s14_s14 = sadd.s32 1, %s772_s14   ;;  %s891_s12 = smov %s768_s13 }
 0x113   : > { %p11_p6 = scmp.ge.s32.totalorder %s14_s14, 4   ;;  %s892_s13 = smov %s894_s15 }
 0x115   :  { %13 = sbr.rel (!%p11_p6) target bundleno = 2 (0x2), region = 81 }

// kernel: tile.293
= control target key start
LH: loop header
LB: loop body
LE: loop exit
PB: predicated region body
PF: predicated region fallthrough
CT: control target
= control target key end

     0   :  { %s22_s0 = inlined_call_operand.vmem [shape: f32[32], index: 0, kind: input, shape index: {}]   ;;  %s23_s1 = inlined_call_operand.vmem [shape: f32[4,32], index: 1, kind: output, shape index: {}]  }
   0x1   :  { %v4_v0 = vld [vmem:[%s22_s0] ss:$0 sm:$0xff] }
   0x2   :  { %5 = vst [vmem:[%s23_s1] sm:$0xf] %v4_v0 }

// kernel: tile.294
= control target key start
LH: loop header
LB: loop body
LE: loop exit
PB: predicated region body
PF: predicated region fallthrough
CT: control target
= control target key end

     0   :  { %vm7_vm0 = vcmask 261120   ;;  %s37_s8 = smov 32   ;;  %s38_s9 = smov 64   ;;  %vm13_vm1 = vcmask 1048320   ;;  %vm19_vm2 = vcmask 785920   ;;  %vm25_vm3 = vcmask 523520   ;;  %s55_s0 = inlined_call_operand.vmem [shape: f32[4,32], index: 0, kind: input, shape index: {}]   ;;  %s56_s1 = inlined_call_operand.vmem [shape: f32[1,128], index: 1, kind: output, shape index: {}]  }
   0x1   :  { %v4_v0 = vld [vmem:[%s55_s0] sm:$0xf]  ;;  %s36_s0 = smov 96  }
   0x2   :  { %5 = vst [vmem:[#allocation1] sm:$0xf] %v4_v0 }
   0x9   :  { %v10_v1 = vld [vmem:[#allocation1 + $0x3] sm:$0x1]   ;;  %v22_v2 = vld [vmem:[#allocation1 + $0x1] sm:$0x1]   ;;  %v6_v3 = vld [vmem:[#allocation1] sm:$0x1]  }
   0xa   :  { %11 = vrot.lane.b32.xlu0 %v10_v1, %s36_s0  ;;  %23 = vrot.lane.b32.xlu1 %v22_v2, %s37_s8  ;;  %v16_v4 = vld [vmem:[#allocation1 + $0x2] sm:$0x1]   ;;  %8 = vst.msk [vmem:[#allocation0] sm:$0x1] %vm7_vm0, %v6_v3  }
   0xe   :  { %17 = vrot.lane.b32.xlu0 %v16_v4, %s38_s9 }
  0x7c   :  { %v12_v5 = vpop.permute.xlu0 %11   ;;  %v24_v6 = vpop.permute.xlu1 %23  }
  0x7d   :  { %14 = vst.msk [vmem:[#allocation0] sm:$0x1] %vm13_vm1, %v12_v5  }
  0x80   :  { %v18_v7 = vpop.permute.xlu0 %17  }
  0x81   :  { %20 = vst.msk [vmem:[#allocation0] sm:$0x1] %vm19_vm2, %v18_v7  }
  0x82   :  { %26 = vst.msk [vmem:[#allocation0] sm:$0x1] %vm25_vm3, %v24_v6  }
  0x89   :  { %v30_v8 = vld [vmem:[#allocation0] sm:$0x1] }
  0x8a   :  { %32 = vst [vmem:[%s56_s1] sm:$0x1] %v30_v8 }

// kernel: _lambda_.47
= control target key start
LH: loop header
LB: loop body
LE: loop exit
PB: predicated region body
PF: predicated region fallthrough
CT: control target
= control target key end

     0   :  { %vm62_vm0 = vcmask 1041408   ;;  %vm63_vm1 = vsmask.f32 1280  ;;  %s135_s0 = inlined_call_operand.vmem [shape: bf16[3,128], index: 0, kind: input, shape index: {}]   ;;  %s136_s1 = inlined_call_operand.vmem [shape: f32[1,128], index: 1, kind: input, shape index: {}]   ;;  %s137_s2 = inlined_call_operand.vmem [shape: f32[1,128], index: 2, kind: input, shape index: {}]   ;;  %s138_s3 = inlined_call_operand.vmem [shape: bf16[3,128], index: 3, kind: input, shape index: {}]   ;;  %s139_s4 = inlined_call_operand.vmem [shape: f32[1,128], index: 4, kind: input, shape index: {}]   ;;  %s140_s5 = inlined_call_operand.vmem [shape: f32[1,128], index: 5, kind: input, shape index: {}]   ;;  %s141_s6 = inlined_call_operand.vmem [shape: bf16[3,128], index: 6, kind: output, shape index: {}]  }
   0x1   :  { %v23_v0 = vld [vmem:[%s135_s0] sm:$0x3]  ;;  %vm64_vm2 = vmand %vm62_vm0, %vm63_vm1 }
   0x2   :  { %v72_v1 = vld [vmem:[%s136_s1] ss:$0 sm:$0xff]  ;;  %v24_v2 = vunpack.c.l.bf16 %v23_v0 }
   0x3   :  { %v41_v3 = vld [vmem:[%s138_s3] sm:$0x3] }
   0x4   :  { %v74_v4 = vld [vmem:[%s139_s4] ss:$0 sm:$0xff]  ;;  %v42_v6 = vunpack.c.l.bf16 %v41_v3  ;;  %v32_v7 = vmul.f32 %v72_v1, %v24_v2 }
   0x5   :  { %v73_v5 = vld [vmem:[%s137_s2] ss:$0 sm:$0xff] }
   0x6   :  { %v75_v8 = vld [vmem:[%s140_s5] ss:$0 sm:$0xff]  ;;  %v50_v9 = vmul.f32 %v74_v4, %v42_v6  ;;  %v40_v10 = vadd.f32 %v73_v5, %v32_v7 }
   0x7   :  { %v65_v14 = vld [vmem:[%s141_s6] sm:$0x3] }
   0x8   :  { %v58_v11 = vadd.f32 %v75_v8, %v50_v9 }
   0xa   :  { %v59_v12 = vadd.f32 %v58_v11, %v40_v10 }
   0xc   :  { %v60_v13 = vmax.f32 %v59_v12, 0.0 }
   0xe   :  { %v61_v15 = vpack.c.bf16 %v60_v13, %v60_v13 }
  0x10   :  { %v66_v16 = vsel %vm64_vm2, %v61_v15, %v65_v14 }
  0x11   :  { %67 = vst [vmem:[%s141_s6] sm:$0x3] %v66_v16 }

// kernel: _lambda_.55
= control target key start
LH: loop header
LB: loop body
LE: loop exit
PB: predicated region body
PF: predicated region fallthrough
CT: control target
= control target key end

     0   :  { %v239_v0 = vmov 0.0   ;;  %vm240_vm0 = vmmov 0   ;;  %vm170_vm1 = vcmask 1040384   ;;  %s294_s1 = inlined_call_operand.vmem [shape: bf16[128,128], index: 1, kind: input, shape index: {}]   ;;  %s295_s0 = inlined_call_operand.vmem [shape: bf16[16,128], index: 0, kind: input, shape index: {}]   ;;  %s296_s2 = inlined_call_operand.vmem [shape: bf16[16,128], index: 2, kind: output, shape index: {0}]   ;;  %s297_s3 = inlined_call_operand.vmem [shape: f32[1,2,128], index: 3, kind: output, shape index: {1}]  }
   0x1   :  { %208 = vmatprep.subr.bf16.mxu0 %v239_v0  ;;  %v230_v1 = vld [vmem:[%s294_s1] sm:$0xff]   ;;  %224 = vmatprep.mubr.msk.bf16.mxu0 %vm240_vm0, %v239_v0  ;;  %v231_v2 = vld [vmem:[%s294_s1 + $0x8] sm:$0xff]   ;;  %v232_v3 = vld [vmem:[%s294_s1 + $0x10] sm:$0xff]  }
   0x2   :  { %209 = vmatpush3.bf16.msra.mxu0 %v230_v1  ;;  %v233_v4 = vld [vmem:[%s294_s1 + $0x18] sm:$0xff]   ;;  %v234_v5 = vld [vmem:[%s294_s1 + $0x20] sm:$0xff]   ;;  %v235_v6 = vld [vmem:[%s294_s1 + $0x28] sm:$0xff]  }
   0x3   :  { %210 = vmatprep.subr.bf16.mxu0 %v239_v0  ;;  %v236_v7 = vld [vmem:[%s294_s1 + $0x30] sm:$0xff]   ;;  %v237_v8 = vld [vmem:[%s294_s1 + $0x38] sm:$0xff]   ;;  %v238_v9 = vld [vmem:[%s295_s0] sm:$0xff]  }
   0x6   :  { %211 = vmatpush3.bf16.msra.mxu0 %v231_v2 }
   0x7   :  { %212 = vmatprep.subr.bf16.mxu0 %v239_v0 }
   0xa   :  { %213 = vmatpush3.bf16.msra.mxu0 %v232_v3 }
   0xb   :  { %214 = vmatprep.subr.bf16.mxu0 %v239_v0 }
   0xe   :  { %215 = vmatpush3.bf16.msra.mxu0 %v233_v4 }
   0xf   :  { %216 = vmatprep.subr.bf16.mxu0 %v239_v0 }
  0x12   :  { %217 = vmatpush3.bf16.msra.mxu0 %v234_v5 }
  0x13   :  { %218 = vmatprep.subr.bf16.mxu0 %v239_v0 }
  0x16   :  { %219 = vmatpush3.bf16.msra.mxu0 %v235_v6 }
  0x17   :  { %220 = vmatprep.subr.bf16.mxu0 %v239_v0 }
  0x1a   :  { %221 = vmatpush3.bf16.msra.mxu0 %v236_v7 }
  0x1b   :  { %222 = vmatprep.subr.bf16.mxu0 %v239_v0 }
  0x1e   :  { %223 = vmatpush3.bf16.msra.mxu0 %v237_v8 }
  0x21   :  { %225 = vmatmul.mubr.bf16.vlgmr.msra.gmra.mrb[0].mxu0 %v238_v9 }
  0xf4   :  { %v128_v10 = vpop.f32.mrb[0].mxu0 }
  0xf5   :  { %v226_v11 = vpop.f32.mrb[1].mxu0  ;;  %v161_v13 = vmul.f32 %v128_v10, %v128_v10 }
  0xf6   :  { %v131_v12 = vpop.f32.mrb[2].mxu0 }
  0xf7   :  { %v197_v14 = vpack.c.bf16 %v131_v12, %v128_v10  ;;  %v154_v15 = vadd.f32 %v131_v12, %v128_v10  ;;  %v162_v16 = vmul.f32 %v131_v12, %v131_v12  ;;  %v227_v17 = vpop.f32.mrb[3].mxu0 }
  0xf9   :  { %198 = vst [vmem:[%s296_s2] sm:$0xff] %v197_v14   ;;  %v155_v18 = vrot.slane %v154_v15, 4  ;;  %v163_v19 = vadd.f32 %v162_v16, %v161_v13 }
  0xfb   :  { %v156_v20 = vadd.f32 %v155_v18, %v154_v15  ;;  %v164_v21 = vrot.slane %v163_v19, 4 }
  0xfd   :  { %v157_v22 = vrot.slane %v156_v20, 2  ;;  %v165_v23 = vadd.f32 %v164_v21, %v163_v19 }
  0xff   :  { %v158_v24 = vadd.f32 %v157_v22, %v156_v20  ;;  %v166_v25 = vrot.slane %v165_v23, 2 }
 0x101   :  { %v159_v26 = vrot.slane %v158_v24, 1  ;;  %v167_v27 = vadd.f32 %v166_v25, %v165_v23 }
 0x103   :  { %v168_v28 = vrot.slane %v167_v27, 1  ;;  %v160_v29 = vadd.f32 %v159_v26, %v158_v24 }
 0x105   :  { %v169_v30 = vadd.f32 %v168_v28, %v167_v27 }
 0x107   :  { %v171_v31 = vsel %vm170_vm1, %v160_v29, %v169_v30 }
 0x108   :  { %172 = vst [vmem:[%s297_s3] sm:$0x3] %v171_v31 }

// kernel: _lambda_.53
= control target key start
LH: loop header
LB: loop body
LE: loop exit
PB: predicated region body
PF: predicated region fallthrough
CT: control target
= control target key end

     0   :  { %s73_s0 = inlined_call_operand.vmem [shape: bf16[2,128], index: 0, kind: input, shape index: {}]   ;;  %s74_s1 = inlined_call_operand.vmem [shape: f32[1,128], index: 1, kind: input, shape index: {}]   ;;  %s75_s2 = inlined_call_operand.vmem [shape: f32[1,128], index: 2, kind: input, shape index: {}]   ;;  %s76_s3 = inlined_call_operand.vmem [shape: bf16[2,128], index: 3, kind: output, shape index: {}]  }
   0x1   :  { %v14_v0 = vld [vmem:[%s73_s0] sm:$0x1] }
   0x2   :  { %v39_v1 = vld [vmem:[%s74_s1] ss:$0 sm:$0xff]  ;;  %v15_v2 = vunpack.c.l.bf16 %v14_v0 }
   0x3   :  { %v40_v3 = vld [vmem:[%s75_s2] ss:$0 sm:$0xff] }
   0x4   :  { %v23_v4 = vmul.f32 %v39_v1, %v15_v2 }
   0x6   :  { %v31_v5 = vadd.f32 %v40_v3, %v23_v4 }
   0x8   :  { %v32_v6 = vmax.f32 %v31_v5, 0.0 }
   0xa   :  { %v33_v7 = vpack.c.bf16 %v32_v6, %v32_v6 }
   0xc   :  { %34 = vst [vmem:[%s76_s3] sm:$0x1] %v33_v7 }

// kernel: _lambda_.56
= control target key start
LH: loop header
LB: loop body
LE: loop exit
PB: predicated region body
PF: predicated region fallthrough
CT: control target
= control target key end

     0   :  { %s127_s0 = inlined_call_operand.vmem [shape: bf16[2,128], index: 0, kind: input, shape index: {}]   ;;  %s128_s1 = inlined_call_operand.vmem [shape: f32[1,128], index: 1, kind: input, shape index: {}]   ;;  %s129_s2 = inlined_call_operand.vmem [shape: f32[1,128], index: 2, kind: input, shape index: {}]   ;;  %s130_s3 = inlined_call_operand.vmem [shape: bf16[2,128], index: 3, kind: input, shape index: {}]   ;;  %s131_s4 = inlined_call_operand.vmem [shape: f32[1,128], index: 4, kind: input, shape index: {}]   ;;  %s132_s5 = inlined_call_operand.vmem [shape: f32[1,128], index: 5, kind: input, shape index: {}]   ;;  %s133_s6 = inlined_call_operand.vmem [shape: bf16[2,128], index: 6, kind: output, shape index: {}]  }
   0x1   :  { %v23_v0 = vld [vmem:[%s127_s0] sm:$0x1] }
   0x2   :  { %v67_v1 = vld [vmem:[%s128_s1] ss:$0 sm:$0xff]  ;;  %v24_v2 = vunpack.c.l.bf16 %v23_v0 }
   0x3   :  { %v41_v3 = vld [vmem:[%s130_s3] sm:$0x1] }
   0x4   :  { %v69_v4 = vld [vmem:[%s131_s4] ss:$0 sm:$0xff]  ;;  %v42_v6 = vunpack.c.l.bf16 %v41_v3  ;;  %v32_v7 = vmul.f32 %v67_v1, %v24_v2 }
   0x5   :  { %v68_v5 = vld [vmem:[%s129_s2] ss:$0 sm:$0xff] }
   0x6   :  { %v70_v8 = vld [vmem:[%s132_s5] ss:$0 sm:$0xff]  ;;  %v50_v9 = vmul.f32 %v69_v4, %v42_v6  ;;  %v40_v10 = vadd.f32 %v68_v5, %v32_v7 }
   0x8   :  { %v58_v11 = vadd.f32 %v70_v8, %v50_v9 }
   0xa   :  { %v59_v12 = vadd.f32 %v58_v11, %v40_v10 }
   0xc   :  { %v60_v13 = vmax.f32 %v59_v12, 0.0 }
   0xe   :  { %v61_v14 = vpack.c.bf16 %v60_v13, %v60_v13 }
  0x10   :  { %62 = vst [vmem:[%s133_s6] sm:$0x1] %v61_v14 }

// kernel: _lambda_.54
= control target key start
LH: loop header
LB: loop body
LE: loop exit
PB: predicated region body
PF: predicated region fallthrough
CT: control target
= control target key end

     0   :  { %v479_v1 = vmov 0.0   ;;  %vm480_vm0 = vmmov 0   ;;  %vm351_vm1 = vcmask 1040384   ;;  %s588_s1 = inlined_call_operand.vmem [shape: bf16[384,128], index: 1, kind: input, shape index: {}]   ;;  %s589_s0 = inlined_call_operand.vmem [shape: bf16[16,384], index: 0, kind: input, shape index: {}]   ;;  %s590_s2 = inlined_call_operand.vmem [shape: bf16[16,128], index: 2, kind: output, shape index: {0}]   ;;  %s591_s3 = inlined_call_operand.vmem [shape: f32[1,2,128], index: 3, kind: output, shape index: {1}]  }
   0x1   :  { %v451_v0 = vld [vmem:[%s588_s1 + $0x40] sm:$0xff]   ;;  %429 = vmatprep.subr.bf16.mxu1 %v479_v1  ;;  %445 = vmatprep.mubr.msk.bf16.mxu1 %vm480_vm0, %v479_v1  ;;  %v454_v4 = vld [vmem:[%s588_s1 + $0x48] sm:$0xff]   ;;  %v457_v7 = vld [vmem:[%s588_s1 + $0x50] sm:$0xff]  }
   0x2   :  { %v452_v2 = vld [vmem:[%s588_s1] sm:$0xff]   ;;  %398 = vmatprep.subr.bf16.mxu0 %v451_v0  ;;  %v455_v5 = vld [vmem:[%s588_s1 + $0x8] sm:$0xff]   ;;  %v458_v8 = vld [vmem:[%s588_s1 + $0x10] sm:$0xff]  }
   0x3   :  { %v453_v3 = vld [vmem:[%s588_s1 + $0x80] sm:$0xff]   ;;  %399 = vmatpush3.bf16.msra.mxu0 %v452_v2  ;;  %v456_v6 = vld [vmem:[%s588_s1 + $0x88] sm:$0xff]   ;;  %v459_v9 = vld [vmem:[%s588_s1 + $0x90] sm:$0xff]  }
   0x4   :  { %430 = vmatpush3.bf16.msra.mxu1 %v453_v3  ;;  %400 = vmatprep.subr.bf16.mxu0 %v454_v4  ;;  %v460_v10 = vld [vmem:[%s588_s1 + $0x58] sm:$0xff]   ;;  %v463_v13 = vld [vmem:[%s588_s1 + $0x60] sm:$0xff]   ;;  %v466_v16 = vld [vmem:[%s588_s1 + $0x68] sm:$0xff]  }
   0x5   :  { %431 = vmatprep.subr.bf16.mxu1 %v479_v1  ;;  %v461_v11 = vld [vmem:[%s588_s1 + $0x18] sm:$0xff]   ;;  %v464_v14 = vld [vmem:[%s588_s1 + $0x20] sm:$0xff]   ;;  %v467_v17 = vld [vmem:[%s588_s1 + $0x28] sm:$0xff]  }
   0x6   :  { %v462_v12 = vld [vmem:[%s588_s1 + $0x98] sm:$0xff]   ;;  %v465_v15 = vld [vmem:[%s588_s1 + $0xa0] sm:$0xff]   ;;  %v468_v18 = vld [vmem:[%s588_s1 + $0xa8] sm:$0xff]  }
   0x7   :  { %401 = vmatpush3.bf16.msra.mxu0 %v455_v5  ;;  %v469_v19 = vld [vmem:[%s588_s1 + $0x70] sm:$0xff]   ;;  %v472_v22 = vld [vmem:[%s588_s1 + $0x78] sm:$0xff]   ;;  %v475_v26 = vld [vmem:[%s589_s0] ss:$12 sps:$4 sm:$0xff]  }
   0x8   :  { %432 = vmatpush3.bf16.msra.mxu1 %v456_v6  ;;  %402 = vmatprep.subr.bf16.mxu0 %v457_v7  ;;  %v470_v20 = vld [vmem:[%s588_s1 + $0x30] sm:$0xff]   ;;  %v473_v24 = vld [vmem:[%s588_s1 + $0x38] sm:$0xff]  }
   0x9   :  { %433 = vmatprep.subr.bf16.mxu1 %v479_v1  ;;  %v471_v21 = vld [vmem:[%s588_s1 + $0xb0] sm:$0xff]   ;;  %v474_v25 = vld [vmem:[%s588_s1 + $0xb8] sm:$0xff]  }
   0xa   :  { %v477_v23 = vld [vmem:[%s589_s0 + $0x4] ss:$12 sps:$4 sm:$0xff]   ;;  %v478_v27 = vld [vmem:[%s589_s0 + $0x8] ss:$12 sps:$4 sm:$0xff]  }
   0xb   :  { %403 = vmatpush3.bf16.msra.mxu0 %v458_v8  ;;  %266 = vmatprep.mubr.bf16.mxu0 %v477_v23 }
   0xc   :  { %434 = vmatpush3.bf16.msra.mxu1 %v459_v9  ;;  %404 = vmatprep.subr.bf16.mxu0 %v460_v10 }
   0xd   :  { %435 = vmatprep.subr.bf16.mxu1 %v479_v1 }
   0xf   :  { %405 = vmatpush3.bf16.msra.mxu0 %v461_v11 }
  0x10   :  { %436 = vmatpush3.bf16.msra.mxu1 %v462_v12  ;;  %406 = vmatprep.subr.bf16.mxu0 %v463_v13 }
  0x11   :  { %437 = vmatprep.subr.bf16.mxu1 %v479_v1 }
  0x13   :  { %407 = vmatpush3.bf16.msra.mxu0 %v464_v14 }
  0x14   :  { %438 = vmatpush3.bf16.msra.mxu1 %v465_v15  ;;  %408 = vmatprep.subr.bf16.mxu0 %v466_v16 }
  0x15   :  { %439 = vmatprep.subr.bf16.mxu1 %v479_v1 }
  0x17   :  { %409 = vmatpush3.bf16.msra.mxu0 %v467_v17 }
  0x18   :  { %440 = vmatpush3.bf16.msra.mxu1 %v468_v18  ;;  %410 = vmatprep.subr.bf16.mxu0 %v469_v19 }
  0x19   :  { %441 = vmatprep.subr.bf16.mxu1 %v479_v1 }
  0x1b   :  { %411 = vmatpush3.bf16.msra.mxu0 %v470_v20 }
  0x1c   :  { %442 = vmatpush3.bf16.msra.mxu1 %v471_v21  ;;  %412 = vmatprep.subr.bf16.mxu0 %v472_v22 }
  0x1d   :  { %443 = vmatprep.subr.bf16.mxu1 %v479_v1 }
  0x1f   :  { %413 = vmatpush3.bf16.msra.mxu0 %v473_v24 }
  0x20   :  { %444 = vmatpush3.bf16.msra.mxu1 %v474_v25 }
  0x22   :  { %267 = vmatmul.mubr.bf16.vlgmr.msra.gmra.mrb[0].mxu0 %v475_v26 }
  0x23   :  { %446 = vmatmul.mubr.bf16.vlgmr.msra.gmra.mrb[0].mxu1 %v478_v27 }
  0xf5   :  { %v414_v28 = vpop.f32.mrb[0].mxu0 }
  0xf6   :  { %v309_v29 = vpop.f32.mrb[0].mxu1  ;;  %v415_v30 = vpop.f32.mrb[1].mxu0 }
  0xf7   :  { %v416_v31 = vadd.f32 %v415_v30, %v414_v28  ;;  %v447_v32 = vpop.f32.mrb[1].mxu1  ;;  %v417_v33 = vpop.f32.mrb[2].mxu0 }
  0xf8   :  { %v312_v34 = vpop.f32.mrb[2].mxu1  ;;  %v418_v35 = vpop.f32.mrb[3].mxu0 }
  0xf9   :  { %v310_v36 = vadd.f32 %v416_v31, %v309_v29  ;;  %v419_v37 = vadd.f32 %v418_v35, %v417_v33  ;;  %v448_v38 = vpop.f32.mrb[3].mxu1 }
  0xfb   :  { %v313_v39 = vadd.f32 %v419_v37, %v312_v34  ;;  %v342_v40 = vmul.f32 %v310_v36, %v310_v36 }
  0xfd   :  { %v396_v41 = vpack.c.bf16 %v313_v39, %v310_v36  ;;  %v335_v42 = vadd.f32 %v313_v39, %v310_v36  ;;  %v343_v43 = vmul.f32 %v313_v39, %v313_v39 }
  0xff   :  { %397 = vst [vmem:[%s590_s2] sm:$0xff] %v396_v41   ;;  %v336_v44 = vrot.slane %v335_v42, 4  ;;  %v344_v45 = vadd.f32 %v343_v43, %v342_v40 }
 0x101   :  { %v337_v46 = vadd.f32 %v336_v44, %v335_v42  ;;  %v345_v47 = vrot.slane %v344_v45, 4 }
 0x103   :  { %v338_v48 = vrot.slane %v337_v46, 2  ;;  %v346_v49 = vadd.f32 %v345_v47, %v344_v45 }
 0x105   :  { %v339_v50 = vadd.f32 %v338_v48, %v337_v46  ;;  %v347_v51 = vrot.slane %v346_v49, 2 }
 0x107   :  { %v340_v52 = vrot.slane %v339_v50, 1  ;;  %v348_v53 = vadd.f32 %v347_v51, %v346_v49 }
 0x109   :  { %v349_v54 = vrot.slane %v348_v53, 1  ;;  %v341_v55 = vadd.f32 %v340_v52, %v339_v50 }
 0x10b   :  { %v350_v56 = vadd.f32 %v349_v54, %v348_v53 }
 0x10d   :  { %v352_v57 = vsel %vm351_vm1, %v341_v55, %v350_v56 }
 0x10e   :  { %353 = vst [vmem:[%s591_s3] sm:$0x3] %v352_v57 }

// kernel: _lambda_.52
= control target key start
LH: loop header
LB: loop body
LE: loop exit
PB: predicated region body
PF: predicated region fallthrough
CT: control target
= control target key end

     0   :  { %vm238_vm0 = vcmask 1040384   ;;  %s397_s1 = inlined_call_operand.vmem [shape: bf16[256,128], index: 1, kind: input, shape index: {}]   ;;  %s398_s0 = inlined_call_operand.vmem [shape: bf16[16,256], index: 0, kind: input, shape index: {}]   ;;  %s399_s2 = inlined_call_operand.vmem [shape: bf16[16,128], index: 2, kind: output, shape index: {0}]   ;;  %s400_s3 = inlined_call_operand.vmem [shape: f32[1,2,128], index: 3, kind: output, shape index: {1}]  }
   0x1   :  { %v298_v0 = vld [vmem:[%s397_s1 + $0x40] sm:$0xff]   ;;  %v300_v2 = vld [vmem:[%s397_s1 + $0x48] sm:$0xff]   ;;  %v302_v4 = vld [vmem:[%s397_s1 + $0x50] sm:$0xff]  }
   0x2   :  { %v299_v1 = vld [vmem:[%s397_s1] sm:$0xff]   ;;  %276 = vmatprep.subr.bf16.mxu0 %v298_v0  ;;  %v301_v3 = vld [vmem:[%s397_s1 + $0x8] sm:$0xff]   ;;  %v303_v5 = vld [vmem:[%s397_s1 + $0x10] sm:$0xff]  }
   0x3   :  { %277 = vmatpush3.bf16.msra.mxu0 %v299_v1  ;;  %v304_v6 = vld [vmem:[%s397_s1 + $0x58] sm:$0xff]   ;;  %v306_v8 = vld [vmem:[%s397_s1 + $0x60] sm:$0xff]   ;;  %v308_v10 = vld [vmem:[%s397_s1 + $0x68] sm:$0xff]  }
   0x4   :  { %278 = vmatprep.subr.bf16.mxu0 %v300_v2  ;;  %v305_v7 = vld [vmem:[%s397_s1 + $0x18] sm:$0xff]   ;;  %v307_v9 = vld [vmem:[%s397_s1 + $0x20] sm:$0xff]   ;;  %v309_v12 = vld [vmem:[%s397_s1 + $0x28] sm:$0xff]  }
   0x5   :  { %v316_v11 = vld [vmem:[%s398_s0 + $0x4] ss:$8 sps:$4 sm:$0xff]   ;;  %v310_v13 = vld [vmem:[%s397_s1 + $0x70] sm:$0xff]   ;;  %v312_v15 = vld [vmem:[%s397_s1 + $0x78] sm:$0xff]  }
   0x6   :  { %194 = vmatprep.mubr.bf16.mxu0 %v316_v11  ;;  %v311_v14 = vld [vmem:[%s397_s1 + $0x30] sm:$0xff]   ;;  %v313_v16 = vld [vmem:[%s397_s1 + $0x38] sm:$0xff]   ;;  %v314_v17 = vld [vmem:[%s398_s0] ss:$8 sps:$4 sm:$0xff]  }
   0x7   :  { %279 = vmatpush3.bf16.msra.mxu0 %v301_v3 }
   0x8   :  { %280 = vmatprep.subr.bf16.mxu0 %v302_v4 }
   0xb   :  { %281 = vmatpush3.bf16.msra.mxu0 %v303_v5 }
   0xc   :  { %282 = vmatprep.subr.bf16.mxu0 %v304_v6 }
   0xf   :  { %283 = vmatpush3.bf16.msra.mxu0 %v305_v7 }
  0x10   :  { %284 = vmatprep.subr.bf16.mxu0 %v306_v8 }
  0x13   :  { %285 = vmatpush3.bf16.msra.mxu0 %v307_v9 }
  0x14   :  { %286 = vmatprep.subr.bf16.mxu0 %v308_v10 }
  0x17   :  { %287 = vmatpush3.bf16.msra.mxu0 %v309_v12 }
  0x18   :  { %288 = vmatprep.subr.bf16.mxu0 %v310_v13 }
  0x1b   :  { %289 = vmatpush3.bf16.msra.mxu0 %v311_v14 }
  0x1c   :  { %290 = vmatprep.subr.bf16.mxu0 %v312_v15 }
  0x1f   :  { %291 = vmatpush3.bf16.msra.mxu0 %v313_v16 }
  0x22   :  { %195 = vmatmul.mubr.bf16.vlgmr.msra.gmra.mrb[0].mxu0 %v314_v17 }
  0xf5   :  { %v292_v18 = vpop.f32.mrb[0].mxu0 }
  0xf6   :  { %v293_v19 = vpop.f32.mrb[1].mxu0 }
  0xf7   :  { %v294_v20 = vadd.f32 %v293_v19, %v292_v18  ;;  %v295_v21 = vpop.f32.mrb[2].mxu0 }
  0xf8   :  { %v296_v22 = vpop.f32.mrb[3].mxu0 }
  0xf9   :  { %v297_v23 = vadd.f32 %v296_v22, %v295_v21  ;;  %v229_v24 = vmul.f32 %v294_v20, %v294_v20 }
  0xfb   :  { %v274_v25 = vpack.c.bf16 %v297_v23, %v294_v20  ;;  %v222_v26 = vadd.f32 %v297_v23, %v294_v20  ;;  %v230_v27 = vmul.f32 %v297_v23, %v297_v23 }
  0xfd   :  { %275 = vst [vmem:[%s399_s2] sm:$0xff] %v274_v25   ;;  %v223_v28 = vrot.slane %v222_v26, 4  ;;  %v231_v29 = vadd.f32 %v230_v27, %v229_v24 }
  0xff   :  { %v224_v30 = vadd.f32 %v223_v28, %v222_v26  ;;  %v232_v31 = vrot.slane %v231_v29, 4 }
 0x101   :  { %v225_v32 = vrot.slane %v224_v30, 2  ;;  %v233_v33 = vadd.f32 %v232_v31, %v231_v29 }
 0x103   :  { %v226_v34 = vadd.f32 %v225_v32, %v224_v30  ;;  %v234_v35 = vrot.slane %v233_v33, 2 }
 0x105   :  { %v227_v36 = vrot.slane %v226_v34, 1  ;;  %v235_v37 = vadd.f32 %v234_v35, %v233_v33 }
 0x107   :  { %v236_v38 = vrot.slane %v235_v37, 1  ;;  %v228_v39 = vadd.f32 %v227_v36, %v226_v34 }
 0x109   :  { %v237_v40 = vadd.f32 %v236_v38, %v235_v37 }
 0x10b   :  { %v239_v41 = vsel %vm238_vm0, %v228_v39, %v237_v40 }
 0x10c   :  { %240 = vst [vmem:[%s400_s3] sm:$0x3] %v239_v41 }

// kernel: _lambda_.65
= control target key start
LH: loop header
LB: loop body
LE: loop exit
PB: predicated region body
PF: predicated region fallthrough
CT: control target
= control target key end

     0   :  { %v825_v0 = vmov 0.0|0.0   ;;  %vm826_vm0 = vmmov 0   ;;  %v827_v4 = vmov 0.0   ;;  %v45_v51 = vlaneseq  ;;  %s1173_s1 = inlined_call_operand.vmem [shape: f32[128,128], index: 1, kind: input, shape index: {}]   ;;  %s1174_s0 = inlined_call_operand.vmem [shape: f32[8,128], index: 0, kind: input, shape index: {}]   ;;  %s1175_s5 = inlined_call_operand.vmem [shape: f32[128,128], index: 5, kind: input, shape index: {}]   ;;  %s1176_s2 = inlined_call_operand.vmem [shape: f32[1,128], index: 2, kind: input, shape index: {}]   ;;  %s1177_s3 = inlined_call_operand.vmem [shape: f32[1,128], index: 3, kind: input, shape index: {}]   ;;  %s1178_s4 = inlined_call_operand.vmem [shape: f32[1,128], index: 4, kind: input, shape index: {}]   ;;  %s1179_s9 = inlined_call_operand.vmem [shape: f32[128,128], index: 9, kind: input, shape index: {}]   ;;  %s1180_s11 = inlined_call_operand.vmem [shape: f32[128,128], index: 11, kind: input, shape index: {}]   ;;  %s1181_s6 = inlined_call_operand.vmem [shape: f32[1,128], index: 6, kind: input, shape index: {}]   ;;  %s1182_s7 = inlined_call_operand.vmem [shape: f32[1,128], index: 7, kind: input, shape index: {}]   ;;  %s1183_s8 = inlined_call_operand.vmem [shape: f32[1,128], index: 8, kind: input, shape index: {}]   ;;  %s1184_s10 = inlined_call_operand.vmem [shape: f32[1,128], index: 10, kind: input, shape index: {}]   ;;  %s1185_s12 = inlined_call_operand.vmem [shape: f32[1,128], index: 12, kind: input, shape index: {}]   ;;  %s1186_s13 = inlined_call_operand.vmem [shape: f32[8,128], index: 13, kind: output, shape index: {}]  }
   0x1   :  { %722 = vmatprep.subr.bf16.mxu0 %v825_v0  ;;  %v50_v1 = vld [vmem:[%s1173_s1] sm:$0xff]  ;;  %v51_v2 = vld [vmem:[%s1173_s1 + $0x8] sm:$0xff]  ;;  %v52_v3 = vld [vmem:[%s1173_s1 + $0x10] sm:$0xff]  ;;  %614 = vmatprep.mubr.msk.f32.mxu0 %vm826_vm0, %v827_v4 }
   0x2   :  { %v723_v5 = vpack.c.bf16 %v51_v2, %v50_v1  ;;  %v53_v6 = vld [vmem:[%s1173_s1 + $0x18] sm:$0xff]  ;;  %746 = vmatprep.subr.bf16.mxu1 %v825_v0  ;;  %649 = vmatprep.mubr.msk.f32.mxu1 %vm826_vm0, %v827_v4  ;;  %v54_v8 = vld [vmem:[%s1173_s1 + $0x20] sm:$0xff]  ;;  %v55_v9 = vld [vmem:[%s1173_s1 + $0x28] sm:$0xff]  ;;  %v1021_v52 = vshrl.u32 %v45_v51, 7 }
   0x3   :  { %v726_v7 = vpack.c.bf16 %v53_v6, %v52_v3  ;;  %v729_v10 = vpack.c.bf16 %v55_v9, %v54_v8  ;;  %v56_v11 = vld [vmem:[%s1173_s1 + $0x30] sm:$0xff]  ;;  %v57_v12 = vld [vmem:[%s1173_s1 + $0x38] sm:$0xff]  ;;  %v58_v14 = vld [vmem:[%s1173_s1 + $0x40] sm:$0xff] }
   0x4   :  { %724 = vmatpush3.bf16.msra.mxu0 %v723_v5  ;;  %v732_v13 = vpack.c.bf16 %v57_v12, %v56_v11  ;;  %v59_v15 = vld [vmem:[%s1173_s1 + $0x48] sm:$0xff]  ;;  %v60_v17 = vld [vmem:[%s1173_s1 + $0x50] sm:$0xff]  ;;  %v61_v18 = vld [vmem:[%s1173_s1 + $0x58] sm:$0xff]  ;;  %vm47_vm1 = vcmp.lt.s32.totalorder %v1021_v52, 2 }
   0x5   :  { %725 = vmatprep.subr.bf16.mxu0 %v825_v0  ;;  %v735_v16 = vpack.c.bf16 %v59_v15, %v58_v14  ;;  %v738_v19 = vpack.c.bf16 %v61_v18, %v60_v17  ;;  %v62_v20 = vld [vmem:[%s1173_s1 + $0x60] sm:$0xff]  ;;  %v63_v21 = vld [vmem:[%s1173_s1 + $0x68] sm:$0xff]  ;;  %v64_v23 = vld [vmem:[%s1173_s1 + $0x70] sm:$0xff]  ;;  %v1028_v54 = vsel %vm47_vm1, 1.0, %v827_v4  ;;  %v171_v17 = vsub.s32 0, %v1021_v52 }
   0x6   :  { %v741_v22 = vpack.c.bf16 %v63_v21, %v62_v20  ;;  %v65_v24 = vld [vmem:[%s1173_s1 + $0x78] sm:$0xff]  ;;  %v44_v26 = vld [vmem:[%s1174_s0] sm:$0xff]  ;;  %v183_v28 = vld [vmem:[%s1175_s5 + $0x8] sm:$0xff] }
   0x7   :  { %v744_v25 = vpack.c.bf16 %v65_v24, %v64_v23  ;;  %v182_v27 = vld [vmem:[%s1175_s5] sm:$0xff]  ;;  %v184_v30 = vld [vmem:[%s1175_s5 + $0x10] sm:$0xff]  ;;  %v185_v31 = vld [vmem:[%s1175_s5 + $0x18] sm:$0xff] }
   0x8   :  { %727 = vmatpush3.bf16.msra.mxu0 %v726_v7  ;;  %v747_v29 = vpack.c.bf16 %v183_v28, %v182_v27  ;;  %v750_v32 = vpack.c.bf16 %v185_v31, %v184_v30  ;;  %v186_v33 = vld [vmem:[%s1175_s5 + $0x20] sm:$0xff]  ;;  %v187_v34 = vld [vmem:[%s1175_s5 + $0x28] sm:$0xff]  ;;  %v188_v36 = vld [vmem:[%s1175_s5 + $0x30] sm:$0xff] }
   0x9   :  { %728 = vmatprep.subr.bf16.mxu0 %v825_v0  ;;  %v753_v35 = vpack.c.bf16 %v187_v34, %v186_v33  ;;  %v189_v37 = vld [vmem:[%s1175_s5 + $0x38] sm:$0xff]  ;;  %v190_v39 = vld [vmem:[%s1175_s5 + $0x40] sm:$0xff]  ;;  %v191_v40 = vld [vmem:[%s1175_s5 + $0x48] sm:$0xff] }
   0xa   :  { %748 = vmatpush3.bf16.msra.mxu1 %v747_v29  ;;  %v756_v38 = vpack.c.bf16 %v189_v37, %v188_v36  ;;  %v759_v41 = vpack.c.bf16 %v191_v40, %v190_v39  ;;  %v192_v42 = vld [vmem:[%s1175_s5 + $0x50] sm:$0xff]  ;;  %v193_v43 = vld [vmem:[%s1175_s5 + $0x58] sm:$0xff]  ;;  %v194_v45 = vld [vmem:[%s1175_s5 + $0x60] sm:$0xff] }
   0xb   :  { %749 = vmatprep.subr.bf16.mxu1 %v825_v0  ;;  %v762_v44 = vpack.c.bf16 %v193_v43, %v192_v42  ;;  %v195_v46 = vld [vmem:[%s1175_s5 + $0x68] sm:$0xff]  ;;  %v196_v48 = vld [vmem:[%s1175_s5 + $0x70] sm:$0xff]  ;;  %v197_v49 = vld [vmem:[%s1175_s5 + $0x78] sm:$0xff] }
   0xc   :  { %730 = vmatpush3.bf16.msra.mxu0 %v729_v10  ;;  %v765_v47 = vpack.c.bf16 %v195_v46, %v194_v45  ;;  %v768_v50 = vpack.c.bf16 %v197_v49, %v196_v48  ;;  %v508_v53 = vld [vmem:[%s1176_s2] ss:$0 sm:$0xff]  ;;  %v317_v28 = vld [vmem:[%s1179_s9 + $0x10] sm:$0xff]  ;;  %v320_v31 = vld [vmem:[%s1179_s9 + $0x28] sm:$0xff] }
   0xd   :  { %731 = vmatprep.subr.bf16.mxu0 %v825_v0  ;;  %v319_v30 = vld [vmem:[%s1179_s9 + $0x20] sm:$0xff]  ;;  %v321_v33 = vld [vmem:[%s1179_s9 + $0x30] sm:$0xff]  ;;  %v322_v34 = vld [vmem:[%s1179_s9 + $0x38] sm:$0xff] }
   0xe   :  { %751 = vmatpush3.bf16.msra.mxu1 %v750_v32  ;;  %v777_v32 = vpack.c.bf16 %v320_v31, %v319_v30  ;;  %v323_v36 = vld [vmem:[%s1179_s9 + $0x40] sm:$0xff]  ;;  %v324_v37 = vld [vmem:[%s1179_s9 + $0x48] sm:$0xff]  ;;  %v325_v39 = vld [vmem:[%s1179_s9 + $0x50] sm:$0xff] }
   0xf   :  { %752 = vmatprep.subr.bf16.mxu1 %v825_v0  ;;  %v326_v40 = vld [vmem:[%s1179_s9 + $0x58] sm:$0xff]  ;;  %v327_v42 = vld [vmem:[%s1179_s9 + $0x60] sm:$0xff]  ;;  %v328_v43 = vld [vmem:[%s1179_s9 + $0x68] sm:$0xff] }
  0x10   :  { %733 = vmatpush3.bf16.msra.mxu0 %v732_v13  ;;  %v329_v45 = vld [vmem:[%s1179_s9 + $0x70] sm:$0xff]  ;;  %v330_v46 = vld [vmem:[%s1179_s9 + $0x78] sm:$0xff]  ;;  %v409_v48 = vld [vmem:[%s1180_s11] sm:$0xff] }
  0x11   :  { %734 = vmatprep.subr.bf16.mxu0 %v825_v0  ;;  %v410_v49 = vld [vmem:[%s1180_s11 + $0x8] sm:$0xff]  ;;  %v512_v52 = vld [vmem:[%s1184_s10] ss:$0 sm:$0xff] }
  0x12   :  { %754 = vmatpush3.bf16.msra.mxu1 %v753_v35  ;;  %v780_v35 = vpack.c.bf16 %v322_v34, %v321_v33  ;;  %v795_v51 = vpack.c.bf16 %v410_v49, %v409_v48 }
  0x13   :  { %755 = vmatprep.subr.bf16.mxu1 %v825_v0 }
  0x14   :  { %736 = vmatpush3.bf16.msra.mxu0 %v735_v16  ;;  %v143_v16 = vld [vmem:[%s1177_s3] sm:$0x1] }
  0x15   :  { %737 = vmatprep.subr.bf16.mxu0 %v825_v0 }
  0x16   :  { %757 = vmatpush3.bf16.msra.mxu1 %v756_v38  ;;  %v783_v38 = vpack.c.bf16 %v324_v37, %v323_v36  ;;  %v511_v37 = vld [vmem:[%s1183_s8] ss:$0 sm:$0xff] }
  0x17   :  { %758 = vmatprep.subr.bf16.mxu1 %v825_v0 }
  0x18   :  { %739 = vmatpush3.bf16.msra.mxu0 %v738_v19 }
  0x19   :  { %740 = vmatprep.subr.bf16.mxu0 %v825_v0 }
  0x1a   :  { %760 = vmatpush3.bf16.msra.mxu1 %v759_v41  ;;  %v786_v41 = vpack.c.bf16 %v326_v40, %v325_v39  ;;  %v423_v40 = vld [vmem:[%s1180_s11 + $0x70] sm:$0xff] }
  0x1b   :  { %761 = vmatprep.subr.bf16.mxu1 %v825_v0 }
  0x1c   :  { %742 = vmatpush3.bf16.msra.mxu0 %v741_v22  ;;  %v509_v22 = vld [vmem:[%s1178_s4] ss:$0 sm:$0xff] }
  0x1d   :  { %743 = vmatprep.subr.bf16.mxu0 %v825_v0 }
  0x1e   :  { %763 = vmatpush3.bf16.msra.mxu1 %v762_v44  ;;  %v789_v44 = vpack.c.bf16 %v328_v43, %v327_v42 }
  0x1f   :  { %764 = vmatprep.subr.bf16.mxu1 %v825_v0 }
  0x20   :  { %745 = vmatpush3.bf16.msra.mxu0 %v744_v25  ;;  %v315_v25 = vld [vmem:[%s1179_s9] sm:$0xff] }
  0x21   :  { %770 = vmatprep.subr.bf16.mxu0 %v825_v0 }
  0x22   :  { %766 = vmatpush3.bf16.msra.mxu1 %v765_v47  ;;  %v792_v47 = vpack.c.bf16 %v330_v46, %v329_v45  ;;  %v513_v46 = vld [vmem:[%s1185_s12] ss:$0 sm:$0xff] }
  0x23   :  { %615 = vmatmul.mubr.f32.vlgmr.msra.gmra.mrb[0].mxu0 %v44_v26  ;;  %767 = vmatprep.subr.bf16.mxu1 %v825_v0  ;;  %v316_v26 = vld [vmem:[%s1179_s9 + $0x8] sm:$0xff] }
  0x24   :  { %684 = vmatprep.mubr.msk.f32.mxu0 %vm826_vm0, %v827_v4  ;;  %v771_v27 = vpack.c.bf16 %v316_v26, %v315_v25 }
  0x26   :  { %769 = vmatpush3.bf16.msra.mxu1 %v768_v50  ;;  %772 = vmatpush3.bf16.msra.mxu0 %v771_v27  ;;  %v411_v50 = vld [vmem:[%s1180_s11 + $0x10] sm:$0xff] }
  0x27   :  { %794 = vmatprep.subr.bf16.mxu1 %v825_v0  ;;  %773 = vmatprep.subr.bf16.mxu0 %v825_v0 }
  0xf6   :  { %v139_v55 = vpop.f32.mrb[0].mxu0 }
  0xf7   :  { %v140_v56 = vadd.f32 %v508_v53, %v139_v55  ;;  %v616_v57 = vpop.f32.mrb[1].mxu0  ;;  %v412_v53 = vld [vmem:[%s1180_s11 + $0x18] sm:$0xff] }
  0xf8   :  { %v798_v55 = vpack.c.bf16 %v412_v53, %v411_v50  ;;  %v414_v57 = vld [vmem:[%s1180_s11 + $0x28] sm:$0xff] }
  0xf9   :  { %v145_v58 = vmul.f32 %v1028_v54, %v140_v56  ;;  %v413_v56 = vld [vmem:[%s1180_s11 + $0x20] sm:$0xff] }
  0xfb   :  { %v146_v59 = vrot.slane %v145_v58, 4  ;;  %v153_v60 = vmul.f32 %v145_v58, %v145_v58 }
  0xfd   :  { %v147_v61 = vadd.f32 %v146_v59, %v145_v58  ;;  %v154_v62 = vrot.slane %v153_v60, 4  ;;  %v415_v59 = vld [vmem:[%s1180_s11 + $0x30] sm:$0xff] }
  0xff   :  { %v148_v63 = vrot.slane %v147_v61, 2  ;;  %v155_v1 = vadd.f32 %v154_v62, %v153_v60  ;;  %v416_v60 = vld [vmem:[%s1180_s11 + $0x38] sm:$0xff]  ;;  %v417_v62 = vld [vmem:[%s1180_s11 + $0x40] sm:$0xff] }
 0x101   :  { %v156_v2 = vrot.slane %v155_v1, 2  ;;  %v149_v3 = vadd.f32 %v148_v63, %v147_v61  ;;  %v804_v61 = vpack.c.bf16 %v416_v60, %v415_v59  ;;  %v418_v63 = vld [vmem:[%s1180_s11 + $0x48] sm:$0xff] }
 0x103   :  { %v157_v5 = vadd.f32 %v156_v2, %v155_v1  ;;  %v150_v6 = vrot.slane %v149_v3, 1  ;;  %v807_v1 = vpack.c.bf16 %v418_v63, %v417_v62  ;;  %v419_v2 = vld [vmem:[%s1180_s11 + $0x50] sm:$0xff] }
 0x105   :  { %v158_v7 = vrot.slane %v157_v5, 1  ;;  %v151_v8 = vadd.f32 %v150_v6, %v149_v3  ;;  %v420_v3 = vld [vmem:[%s1180_s11 + $0x58] sm:$0xff]  ;;  %v421_v6 = vld [vmem:[%s1180_s11 + $0x60] sm:$0xff] }
 0x107   :  { %v152_v9 = vmul.f32 0.5, %v151_v8  ;;  %v159_v10 = vadd.f32 %v158_v7, %v157_v5  ;;  %v810_v5 = vpack.c.bf16 %v420_v3, %v419_v2  ;;  %v422_v7 = vld [vmem:[%s1180_s11 + $0x68] sm:$0xff] }
 0x108   :  { %v813_v8 = vpack.c.bf16 %v422_v7, %v421_v6 }
 0x109   :  { %v160_v11 = vmul.f32 0.5, %v159_v10  ;;  %v161_v12 = vmul.f32 %v152_v9, %v152_v9  ;;  %v164_v20 = vsub.f32 %v145_v58, %v152_v9  ;;  %v801_v58 = vpack.c.bf16 %v414_v57, %v413_v56  ;;  %v510_v9 = vld [vmem:[%s1181_s6] ss:$0 sm:$0xff] }
 0x10b   :  { %v162_v13 = vsub.f32 %v160_v11, %v161_v12 }
 0x10d   :  { %v163_v14 = vmax.f32 %v162_v13, 0.0 }
 0x10f   :  { %v165_v15 = vadd.f32 1e-05, %v163_v14 }
 0x111   :  { %821 = vrsqrt.f32 %v165_v15 }
 0x11b   :  { %v822_v18 = vpop.eup %821 }
 0x11c   :  { %v167_v19 = vmul.f32 %v822_v18, %v143_v16 }
 0x11e   :  { %v172_v21 = vrot.slane %v167_v19, %v171_v17 }
 0x120   :  { %v174_v23 = vmul.f32 %v172_v21, %v164_v20 }
 0x122   :  { %v181_v24 = vadd.f32 %v509_v22, %v174_v23 }
 0x124   :  { %650 = vmatmul.mubr.f32.vlgmr.msra.gmra.mrb[0].mxu1 %v181_v24 }
 0x125   :  { %719 = vmatprep.mubr.msk.f32.mxu1 %vm826_vm0, %v827_v4  ;;  %v318_v4 = vld [vmem:[%s1179_s9 + $0x18] sm:$0xff]  ;;  %796 = vmatpush3.bf16.msra.mxu1 %v795_v51 }
 0x126   :  { %v774_v29 = vpack.c.bf16 %v318_v4, %v317_v28  ;;  %797 = vmatprep.subr.bf16.mxu1 %v825_v0 }
 0x128   :  { %775 = vmatpush3.bf16.msra.mxu0 %v774_v29 }
 0x129   :  { %776 = vmatprep.subr.bf16.mxu0 %v825_v0  ;;  %799 = vmatpush3.bf16.msra.mxu1 %v798_v55 }
 0x12a   :  { %800 = vmatprep.subr.bf16.mxu1 %v825_v0 }
 0x12c   :  { %778 = vmatpush3.bf16.msra.mxu0 %v777_v32 }
 0x12d   :  { %779 = vmatprep.subr.bf16.mxu0 %v825_v0  ;;  %802 = vmatpush3.bf16.msra.mxu1 %v801_v58 }
 0x12e   :  { %803 = vmatprep.subr.bf16.mxu1 %v825_v0 }
 0x130   :  { %781 = vmatpush3.bf16.msra.mxu0 %v780_v35 }
 0x131   :  { %782 = vmatprep.subr.bf16.mxu0 %v825_v0  ;;  %805 = vmatpush3.bf16.msra.mxu1 %v804_v61 }
 0x132   :  { %806 = vmatprep.subr.bf16.mxu1 %v825_v0 }
 0x134   :  { %784 = vmatpush3.bf16.msra.mxu0 %v783_v38 }
 0x135   :  { %785 = vmatprep.subr.bf16.mxu0 %v825_v0  ;;  %808 = vmatpush3.bf16.msra.mxu1 %v807_v1 }
 0x136   :  { %809 = vmatprep.subr.bf16.mxu1 %v825_v0 }
 0x138   :  { %787 = vmatpush3.bf16.msra.mxu0 %v786_v41  ;;  %v424_v41 = vld [vmem:[%s1180_s11 + $0x78] sm:$0xff] }
 0x139   :  { %788 = vmatprep.subr.bf16.mxu0 %v825_v0  ;;  %811 = vmatpush3.bf16.msra.mxu1 %v810_v5  ;;  %v816_v42 = vpack.c.bf16 %v424_v41, %v423_v40 }
 0x13a   :  { %812 = vmatprep.subr.bf16.mxu1 %v825_v0 }
 0x13c   :  { %790 = vmatpush3.bf16.msra.mxu0 %v789_v44 }
 0x13d   :  { %791 = vmatprep.subr.bf16.mxu0 %v825_v0  ;;  %814 = vmatpush3.bf16.msra.mxu1 %v813_v8 }
 0x13e   :  { %815 = vmatprep.subr.bf16.mxu1 %v825_v0 }
 0x140   :  { %793 = vmatpush3.bf16.msra.mxu0 %v792_v47 }
 0x141   :  { %817 = vmatpush3.bf16.msra.mxu1 %v816_v42 }
 0x1f7   :  { %v271_v10 = vpop.f32.mrb[0].mxu1 }
 0x1f8   :  { %v272_v11 = vadd.f32 %v510_v9, %v271_v10  ;;  %v651_v12 = vpop.f32.mrb[1].mxu1 }
 0x1fa   :  { %v275_v13 = vmax.f32 %v272_v11, 0.0 }
 0x1fc   :  { %v278_v14 = vmul.f32 %v1028_v54, %v275_v13  ;;  %v276_v54 = vld [vmem:[%s1182_s7] sm:$0x1] }
 0x1fe   :  { %v279_v15 = vrot.slane %v278_v14, 4  ;;  %v286_v16 = vmul.f32 %v278_v14, %v278_v14 }
 0x200   :  { %v280_v18 = vadd.f32 %v279_v15, %v278_v14  ;;  %v287_v19 = vrot.slane %v286_v16, 4 }
 0x202   :  { %v281_v20 = vrot.slane %v280_v18, 2  ;;  %v288_v21 = vadd.f32 %v287_v19, %v286_v16 }
 0x204   :  { %v282_v22 = vadd.f32 %v281_v20, %v280_v18  ;;  %v289_v23 = vrot.slane %v288_v21, 2 }
 0x206   :  { %v283_v24 = vrot.slane %v282_v22, 1  ;;  %v290_v0 = vadd.f32 %v289_v23, %v288_v21 }
 0x208   :  { %v284_v25 = vadd.f32 %v283_v24, %v282_v22  ;;  %v291_v26 = vrot.slane %v290_v0, 1 }
 0x20a   :  { %v285_v27 = vmul.f32 0.5, %v284_v25  ;;  %v292_v28 = vadd.f32 %v291_v26, %v290_v0 }
 0x20c   :  { %v293_v4 = vmul.f32 0.5, %v292_v28  ;;  %v294_v29 = vmul.f32 %v285_v27, %v285_v27  ;;  %v297_v35 = vsub.f32 %v278_v14, %v285_v27 }
 0x20e   :  { %v295_v30 = vsub.f32 %v293_v4, %v294_v29 }
 0x210   :  { %v296_v31 = vmax.f32 %v295_v30, 0.0 }
 0x212   :  { %v298_v32 = vadd.f32 1e-05, %v296_v31 }
 0x214   :  { %823 = vrsqrt.f32 %v298_v32 }
 0x21e   :  { %v824_v33 = vpop.eup %823 }
 0x21f   :  { %v300_v34 = vmul.f32 %v824_v33, %v276_v54 }
 0x221   :  { %v305_v36 = vrot.slane %v300_v34, %v171_v17 }
 0x223   :  { %v307_v38 = vmul.f32 %v305_v36, %v297_v35 }
 0x225   :  { %v314_v39 = vadd.f32 %v511_v37, %v307_v38 }
 0x227   :  { %685 = vmatmul.mubr.f32.vlgmr.msra.gmra.mrb[2].mxu0 %v314_v39 }
 0x2fa   :  { %v404_v17 = vpop.f32.mrb[2].mxu0 }
 0x2fb   :  { %v405_v43 = vadd.f32 %v512_v52, %v404_v17  ;;  %v686_v44 = vpop.f32.mrb[3].mxu0 }
 0x2fd   :  { %v408_v45 = vmax.f32 %v405_v43, 0.0 }
 0x2ff   :  { %720 = vmatmul.mubr.f32.vlgmr.msra.gmra.mrb[2].mxu1 %v408_v45 }
 0x3d2   :  { %v498_v47 = vpop.f32.mrb[2].mxu1 }
 0x3d3   :  { %v499_v48 = vadd.f32 %v513_v46, %v498_v47  ;;  %v721_v49 = vpop.f32.mrb[3].mxu1 }
 0x3d5   :  { %502 = vst [vmem:[%s1186_s13] sm:$0xff] %v499_v48 }

</bundles_post_ra>
